<compile_context>
chip_gen: v7x
topology: tpu7x:2x2x1
jax: 0.10.0
libtpu: 0.0.40
codegen_flags: <defaults>
</compile_context>

<pallas_src>
import functools

import jax
import jax.numpy as jnp
import numpy as np
from jax import lax
from jax.experimental import pallas as pl
from jax.experimental.pallas import tpu as pltpu


# --------------------------------------------------------------------------- #
# Pallas kernel
# --------------------------------------------------------------------------- #
def _bottleneck_kernel(x_ref, w1_ref, b1_ref, w2_ref, b2_ref, w3_ref, b3_ref,
                       *rest, H, W, Cin, C1, C4, stride, downsampling):
    if downsampling:
        wd_ref, bd_ref, o_ref, pad_ref = rest
    else:
        o_ref, pad_ref = rest

    Ho = (H - 1) // stride + 1
    Wo = (W - 1) // stride + 1

    # ---- 1x1 conv (bf16 MXU operands, f32 accumulate) + bias + ReLU ---------
    x = x_ref[0].reshape(H * W, Cin)                       # bf16 (cast in wrapper)
    t1 = jnp.dot(x, w1_ref[...], preferred_element_type=jnp.float32)
    t1 = jnp.maximum(t1 + b1_ref[...], 0.0)                # (H*W, C1) f32

    # ---- 3x3 conv (padding=1, stride) as a single im2col matmul -------------
    # The interior of pad_ref is fully overwritten every grid step, so only the
    # 1-pixel halo needs zeroing.  Zero just the four border strips each step
    # (cheap; and correct even when the "parallel" batch axis is sharded across
    # TensorCores, where each core owns its own scratch buffer).
    pad_ref[0:1, :, :] = jnp.zeros((1, W + 2, C1), pad_ref.dtype)
    pad_ref[H + 1:H + 2, :, :] = jnp.zeros((1, W + 2, C1), pad_ref.dtype)
    pad_ref[:, 0:1, :] = jnp.zeros((H + 2, 1, C1), pad_ref.dtype)
    pad_ref[:, W + 1:W + 2, :] = jnp.zeros((H + 2, 1, C1), pad_ref.dtype)
    pad_ref[1:H + 1, 1:W + 1, :] = t1.reshape(H, W, C1).astype(pad_ref.dtype)

    def patch(dy, dx):
        if stride == 1:
            return pad_ref[dy:dy + Ho, dx:dx + Wo, :]
        # TODO(synk): stride>1 strided-window extraction is untested on TPU HW.
        return lax.slice(pad_ref[...], (dy, dx, 0),
                         (dy + (Ho - 1) * stride + 1,
                          dx + (Wo - 1) * stride + 1, C1),
                         (stride, stride, 1))

    patches = jnp.concatenate(
        [patch(dy, dx).astype(jnp.bfloat16)
         for dy in range(3) for dx in range(3)], axis=-1)
    patches = patches.reshape(Ho * Wo, 9 * C1)             # K = 9*C1 (MXU-friendly)
    t2 = jnp.dot(patches, w2_ref[...], preferred_element_type=jnp.float32)
    t2 = jnp.maximum(t2 + b2_ref[...], 0.0)                # (Ho*Wo, C1) f32

    # ---- 1x1 conv + bias ------------------------------------------------------
    t3 = jnp.dot(t2.astype(jnp.bfloat16), w3_ref[...],
                 preferred_element_type=jnp.float32)
    t3 = t3 + b3_ref[...]                                  # (Ho*Wo, C4) f32

    # ---- residual branch (re-read x_ref here to keep its live range short) ---
    if downsampling:
        if stride == 1:
            xr = x_ref[0].reshape(H * W, Cin)
        else:
            # TODO(synk): stride>1 residual subsampling is untested on TPU HW.
            xr = lax.slice(x_ref[0], (0, 0, 0),
                           ((Ho - 1) * stride + 1, (Wo - 1) * stride + 1, Cin),
                           (stride, stride, 1)).reshape(Ho * Wo, Cin)
        res = jnp.dot(xr, wd_ref[...], preferred_element_type=jnp.float32)
        res = res + bd_ref[...]
    else:
        # identity residual: wrapper asserts Cin == C4 and stride == 1
        res = x_ref[0].reshape(Ho * Wo, C4).astype(jnp.float32)

    out = jnp.maximum(t3 + res, 0.0)
    o_ref[...] = out.reshape(1, Ho, Wo, C4).astype(o_ref.dtype)


# --------------------------------------------------------------------------- #
# Wrapper helpers
# --------------------------------------------------------------------------- #
def _round_up(x, m):
    return ((x + m - 1) // m) * m


def _lane_pad(c):
    # Lane-dense channel width: small channel counts are padded to a full
    # 128-lane register; real ResNet widths (>=128) pass through (multiple of 8).
    return _round_up(c, 128) if c < 128 else _round_up(c, 8)


def _pad_axis(a, axis, target):
    pad = target - a.shape[axis]
    if pad == 0:
        return a
    cfg = [(0, 0)] * a.ndim
    cfg[axis] = (0, pad)
    return jnp.pad(a, cfg)


# --------------------------------------------------------------------------- #
# Wrappers
# --------------------------------------------------------------------------- #
def bottleneck_pallas_nhwc(x_nhwc, params, *, stride=1, downsampling=False):
    """x_nhwc: (N, H, W, Cin). Returns NHWC output (N, Ho, Wo, C4), float32."""
    N, H, W, Cin = x_nhwc.shape
    w1, s1, b1, w2, s2, b2, w3, s3, b3 = params["main"]
    C1 = w1.shape[1]
    C4 = w3.shape[1]
    if not downsampling:
        assert stride == 1 and Cin == C4, (
            "identity residual requires stride == 1 and in_channels == out_channels")
    Ho = (H - 1) // stride + 1
    Wo = (W - 1) // stride + 1

    Cin_p, C1_p, C4_p = _lane_pad(Cin), _lane_pad(C1), _lane_pad(C4)

    # -- host-side prep: fold BN scale into weights, pad channels, cast bf16 ----
    x_p = _pad_axis(x_nhwc.astype(jnp.bfloat16), 3, Cin_p)

    w1_p = _pad_axis(_pad_axis(w1 * s1[0], 0, Cin_p), 1, C1_p).astype(jnp.bfloat16)
    b1_p = _pad_axis(b1, 1, C1_p).astype(jnp.float32)

    w2_f = (w2 * s2[0]).astype(jnp.float32)                # (3,3,C1,C1), scale on cout
    w2_p = _pad_axis(_pad_axis(w2_f, 2, C1_p), 3, C1_p)
    w2_p = w2_p.reshape(9 * C1_p, C1_p).astype(jnp.bfloat16)   # im2col weight layout
    b2_p = _pad_axis(b2, 1, C1_p).astype(jnp.float32)

    w3_p = _pad_axis(_pad_axis(w3 * s3[0], 0, C1_p), 1, C4_p).astype(jnp.bfloat16)
    b3_p = _pad_axis(b3, 1, C4_p).astype(jnp.float32)

    inputs = [x_p, w1_p, b1_p, w2_p, b2_p, w3_p, b3_p]
    in_specs = [
        pl.BlockSpec((1, H, W, Cin_p), lambda n: (n, 0, 0, 0)),
        pl.BlockSpec((Cin_p, C1_p), lambda n: (0, 0)),
        pl.BlockSpec((1, C1_p), lambda n: (0, 0)),
        pl.BlockSpec((9 * C1_p, C1_p), lambda n: (0, 0)),
        pl.BlockSpec((1, C1_p), lambda n: (0, 0)),
        pl.BlockSpec((C1_p, C4_p), lambda n: (0, 0)),
        pl.BlockSpec((1, C4_p), lambda n: (0, 0)),
    ]
    if downsampling:
        wd, sd, bd = params["down"]
        wd_p = _pad_axis(_pad_axis(wd * sd[0], 0, Cin_p), 1, C4_p).astype(jnp.bfloat16)
        bd_p = _pad_axis(bd, 1, C4_p).astype(jnp.float32)
        inputs += [wd_p, bd_p]
        in_specs += [
            pl.BlockSpec((Cin_p, C4_p), lambda n: (0, 0)),
            pl.BlockSpec((1, C4_p), lambda n: (0, 0)),
        ]

    kernel = functools.partial(
        _bottleneck_kernel, H=H, W=W, Cin=Cin_p, C1=C1_p, C4=C4_p,
        stride=stride, downsampling=downsampling)

    # -- cost estimate & explicit VMEM budget ------------------------------------
    flops = (2 * H * W * Cin_p * C1_p
             + 2 * Ho * Wo * 9 * C1_p * C1_p
             + 2 * Ho * Wo * C1_p * C4_p)
    if downsampling:
        flops += 2 * Ho * Wo * Cin_p * C4_p
    flops *= N
    weight_bytes = sum(int(a.size) * a.dtype.itemsize for a in inputs[1:])
    bytes_accessed = (int(x_p.size) * x_p.dtype.itemsize
                      + N * Ho * Wo * C4_p * 4 + weight_bytes)

    blk_bytes = (2 * H * W * Cin_p * 2             # double-buffered bf16 input block
                 + 2 * Ho * Wo * C4_p * 4          # double-buffered f32 output block
                 + 2 * weight_bytes                # weights (conservatively x2)
                 + (H + 2) * (W + 2) * C1_p * 4    # padded 3x3 scratch (f32)
                 + 4 * Ho * Wo * 9 * C1_p * 2)     # im2col patches + live-value headroom
    vmem_limit = int(min(48 * 2**20, max(16 * 2**20, 2 * blk_bytes)))

    out_p = pl.pallas_call(
        kernel,
        out_shape=jax.ShapeDtypeStruct((N, Ho, Wo, C4_p), jnp.float32),
        grid_spec=pltpu.PrefetchScalarGridSpec(
            num_scalar_prefetch=0,
            grid=(N,),
            in_specs=in_specs,
            out_specs=pl.BlockSpec((1, Ho, Wo, C4_p), lambda n: (n, 0, 0, 0)),
            scratch_shapes=[pltpu.VMEM((H + 2, W + 2, C1_p), jnp.float32)],
        ),
        compiler_params=pltpu.CompilerParams(
            dimension_semantics=("parallel",),
            vmem_limit_bytes=vmem_limit,
        ),
        cost_estimate=pl.CostEstimate(
            flops=int(flops), transcendentals=0, bytes_accessed=int(bytes_accessed)),
    )(*inputs)

    return out_p[..., :C4]                                   # drop channel padding


def bottleneck_pallas(x_nchw, params, *, stride=1, downsampling=False):
    """x_nchw: (N, Cin, H, W) (PyTorch convention). Returns NCHW output."""
    # TODO(synk): keep the surrounding model NHWC end-to-end to avoid these two
    #             boundary transposes (each is a full HBM round trip).
    x = jnp.transpose(x_nchw, (0, 2, 3, 1))
    y = bottleneck_pallas_nhwc(x, params, stride=stride, downsampling=downsampling)
    return jnp.transpose(y, (0, 3, 1, 2))


# --------------------------------------------------------------------------- #
# Deterministic parameter initialization (synthetic weights, no checkpoint)
# --------------------------------------------------------------------------- #
def _fold_bn(gamma, beta, mean, var, eps=1e-5):
    scale = gamma / jnp.sqrt(var + eps)
    bias = beta - mean * scale
    return (scale.reshape(1, -1).astype(jnp.float32),
            bias.reshape(1, -1).astype(jnp.float32))


def init_params(key, in_places, places, expansion=4, downsampling=False):
    C1 = places
    C4 = places * expansion
    keys = jax.random.split(key, 8)

    def conv_w(k, cin, cout, kh, kw):
        # PyTorch layout (cout, cin, kh, kw) -> kernel layout (kh, kw, cin, cout)
        w = 0.1 * jax.random.normal(k, (cout, cin, kh, kw), jnp.float32)
        return jnp.transpose(w, (2, 3, 1, 0))

    def bn(k, c):
        k1, k2, k3, k4 = jax.random.split(k, 4)
        gamma = 1.0 + 0.1 * jax.random.normal(k1, (c,), jnp.float32)
        beta = 0.1 * jax.random.normal(k2, (c,), jnp.float32)
        mean = 0.1 * jax.random.normal(k3, (c,), jnp.float32)
        var = jax.random.uniform(k4, (c,), jnp.float32, minval=0.5, maxval=1.5)
        return _fold_bn(gamma, beta, mean, var)

    w1 = conv_w(keys[0], in_places, C1, 1, 1)[0, 0]          # (Cin, C1)
    s1, b1 = bn(keys[1], C1)
    w2 = conv_w(keys[2], C1, C1, 3, 3)                       # (3,3,C1,C1)
    s2, b2 = bn(keys[3], C1)
    w3 = conv_w(keys[4], C1, C4, 1, 1)[0, 0]                 # (C1, C4)
    s3, b3 = bn(keys[5], C4)
    params = {"main": (w1, s1, b1, w2, s2, b2, w3, s3, b3)}
    if downsampling:
        wd = conv_w(keys[6], in_places, C4, 1, 1)[0, 0]      # (Cin, C4)
        sd, bd = bn(keys[7], C4)
        params["down"] = (wd, sd, bd)
    return params


# --------------------------------------------------------------------------- #
# Pure-JAX reference (same folded-BN inference semantics), full f32
# --------------------------------------------------------------------------- #
def bottleneck_ref(x_nchw, params, *, stride=1, downsampling=False):
    x = jnp.transpose(x_nchw, (0, 2, 3, 1)).astype(jnp.float32)
    w1, s1, b1, w2, s2, b2, w3, s3, b3 = params["main"]
    dn = ("NHWC", "HWIO", "NHWC")

    def conv(v, w, strides, padding):
        return lax.conv_general_dilated(v, w, strides, padding, dimension_numbers=dn)

    def affine(v, s, b):
        return v * s.reshape(1, 1, 1, -1) + b.reshape(1, 1, 1, -1)

    t = conv(x, w1.reshape(1, 1, *w1.shape), (1, 1), "VALID")
    t = jnp.maximum(affine(t, s1, b1), 0.0)
    t = conv(t, w2, (stride, stride), ((1, 1), (1, 1)))
    t = jnp.maximum(affine(t, s2, b2), 0.0)
    t = conv(t, w3.reshape(1, 1, *w3.shape), (1, 1), "VALID")
    t = affine(t, s3, b3)
    if downsampling:
        wd, sd, bd = params["down"]
        r = conv(x, wd.reshape(1, 1, *wd.shape), (stride, stride), "VALID")
        r = affine(r, sd, bd)
    else:
        r = x
    out = jnp.maximum(t + r, 0.0)
    return jnp.transpose(out, (0, 3, 1, 2))


# --------------------------------------------------------------------------- #
if __name__ == "__main__":
    key = jax.random.PRNGKey(0)
    kx, kp = jax.random.split(key)

    # Small shapes consistent with the module: Bottleneck(in_places=4, places=4,
    # stride=1, downsampling=True, expansion=4)
    N, Cin, H, W = 2, 4, 16, 16
    places, expansion, stride, downsampling = 4, 4, 1, True

    x = jax.random.normal(kx, (N, Cin, H, W), jnp.float32)   # NCHW input
    params = init_params(kp, Cin, places, expansion, downsampling)

    out = bottleneck_pallas(x, params, stride=stride, downsampling=downsampling)
    out = jax.block_until_ready(out)

    ref = bottleneck_ref(x, params, stride=stride, downsampling=downsampling)
    # Kernel uses bf16 MXU operands (f32 accumulation); reference is full f32,
    # hence the slightly relaxed tolerance.
    np.testing.assert_allclose(np.asarray(out), np.asarray(ref), atol=2e-2, rtol=2e-2)

    print("KERNEL_OK")
</pallas_src>

<mosaic_0001>
module attributes {stable_mosaic.version = 11 : i64} {
  func.func @_bottleneck_kernel(%arg0: i32, %arg1: memref<1x16x16x128xbf16, #tpu.memory_space<vmem>>, %arg2: memref<128x128xbf16, #tpu.memory_space<vmem>>, %arg3: memref<1x128xf32, #tpu.memory_space<vmem>>, %arg4: memref<1152x128xbf16, #tpu.memory_space<vmem>>, %arg5: memref<1x128xf32, #tpu.memory_space<vmem>>, %arg6: memref<128x128xbf16, #tpu.memory_space<vmem>>, %arg7: memref<1x128xf32, #tpu.memory_space<vmem>>, %arg8: memref<128x128xbf16, #tpu.memory_space<vmem>>, %arg9: memref<1x128xf32, #tpu.memory_space<vmem>>, %arg10: memref<1x16x16x128xf32, #tpu.memory_space<vmem>>, %arg11: memref<18x18x128xf32, #tpu.memory_space<vmem>>) attributes {dimension_semantics = [#tpu.dimension_semantics<parallel>], iteration_bounds = array<i64: 2>, scalar_prefetch = 0 : i64, scratch_operands = 1 : i64, tpu.core_type = #tpu.core_type<tc>, window_params = [{transform_indices = @transform_0, window_bounds = array<i64: 1, 16, 16, 128>}, {pipeline_mode = #tpu.pipeline_mode<synchronous>, transform_indices = @transform_1, window_bounds = array<i64: 128, 128>}, {pipeline_mode = #tpu.pipeline_mode<synchronous>, transform_indices = @transform_2, window_bounds = array<i64: 1, 128>}, {pipeline_mode = #tpu.pipeline_mode<synchronous>, transform_indices = @transform_3, window_bounds = array<i64: 1152, 128>}, {pipeline_mode = #tpu.pipeline_mode<synchronous>, transform_indices = @transform_4, window_bounds = array<i64: 1, 128>}, {pipeline_mode = #tpu.pipeline_mode<synchronous>, transform_indices = @transform_5, window_bounds = array<i64: 128, 128>}, {pipeline_mode = #tpu.pipeline_mode<synchronous>, transform_indices = @transform_6, window_bounds = array<i64: 1, 128>}, {pipeline_mode = #tpu.pipeline_mode<synchronous>, transform_indices = @transform_7, window_bounds = array<i64: 128, 128>}, {pipeline_mode = #tpu.pipeline_mode<synchronous>, transform_indices = @transform_8, window_bounds = array<i64: 1, 128>}, {transform_indices = @transform_9, window_bounds = array<i64: 1, 16, 16, 128>}]} {
    %c0 = arith.constant 0 : index
    %c0_0 = arith.constant 0 : index
    %c0_1 = arith.constant 0 : index
    %c0_2 = arith.constant 0 : index
    %0 = vector.load %arg1[%c0, %c0_0, %c0_1, %c0_2] : memref<1x16x16x128xbf16, #tpu.memory_space<vmem>>, vector<1x16x16x128xbf16>
    %1 = vector.shape_cast %0 : vector<1x16x16x128xbf16> to vector<16x16x128xbf16>
    %2 = vector.shape_cast %1 : vector<16x16x128xbf16> to vector<256x128xbf16>
    %c0_3 = arith.constant 0 : index
    %c0_4 = arith.constant 0 : index
    %3 = vector.load %arg2[%c0_3, %c0_4] : memref<128x128xbf16, #tpu.memory_space<vmem>>, vector<128x128xbf16>
    %cst = arith.constant dense<0.000000e+00> : vector<256x128xf32>
    %4 = tpu.matmul %2, %3, %cst {dimension_numbers = #tpu.dot_dimension_numbers<[1], [0], [0], [1], [0, 0, 1, 1], [], []>} : vector<256x128xbf16>, vector<128x128xbf16>, vector<256x128xf32> -> vector<256x128xf32>
    %c0_5 = arith.constant 0 : index
    %c0_6 = arith.constant 0 : index
    %5 = vector.load %arg3[%c0_5, %c0_6] : memref<1x128xf32, #tpu.memory_space<vmem>>, vector<1x128xf32>
    %6 = vector.broadcast %5 : vector<1x128xf32> to vector<256x128xf32>
    %7 = arith.addf %4, %6 : vector<256x128xf32>
    %cst_7 = arith.constant 0.000000e+00 : f32
    %8 = vector.broadcast %cst_7 : f32 to vector<256x128xf32>
    %9 = arith.maximumf %7, %8 : vector<256x128xf32>
    %cst_8 = arith.constant 0.000000e+00 : f32
    %10 = vector.broadcast %cst_8 : f32 to vector<1x18x128xf32>
    %c0_9 = arith.constant 0 : index
    %c0_10 = arith.constant 0 : index
    %c0_11 = arith.constant 0 : index
    %11 = vector.load %arg11[%c0_9, %c0_10, %c0_11] : memref<18x18x128xf32, #tpu.memory_space<vmem>>, vector<1x18x128xf32>
    tpu.vector_store %arg11[%c0_9, %c0_10, %c0_11], %10 {strides = array<i32>} : memref<18x18x128xf32, #tpu.memory_space<vmem>>, vector<1x18x128xf32>,
    %cst_12 = arith.constant 0.000000e+00 : f32
    %12 = vector.broadcast %cst_12 : f32 to vector<1x18x128xf32>
    %c17 = arith.constant 17 : index
    %c0_13 = arith.constant 0 : index
    %c0_14 = arith.constant 0 : index
    %13 = vector.load %arg11[%c17, %c0_13, %c0_14] : memref<18x18x128xf32, #tpu.memory_space<vmem>>, vector<1x18x128xf32>
    tpu.vector_store %arg11[%c17, %c0_13, %c0_14], %12 {strides = array<i32>} : memref<18x18x128xf32, #tpu.memory_space<vmem>>, vector<1x18x128xf32>,
    %cst_15 = arith.constant 0.000000e+00 : f32
    %14 = vector.broadcast %cst_15 : f32 to vector<18x1x128xf32>
    %c0_16 = arith.constant 0 : index
    %c0_17 = arith.constant 0 : index
    %c0_18 = arith.constant 0 : index
    %15 = vector.load %arg11[%c0_16, %c0_17, %c0_18] : memref<18x18x128xf32, #tpu.memory_space<vmem>>, vector<18x1x128xf32>
    tpu.vector_store %arg11[%c0_16, %c0_17, %c0_18], %14 {strides = array<i32>} : memref<18x18x128xf32, #tpu.memory_space<vmem>>, vector<18x1x128xf32>,
    %cst_19 = arith.constant 0.000000e+00 : f32
    %16 = vector.broadcast %cst_19 : f32 to vector<18x1x128xf32>
    %c0_20 = arith.constant 0 : index
    %c17_21 = arith.constant 17 : index
    %c0_22 = arith.constant 0 : index
    %17 = vector.load %arg11[%c0_20, %c17_21, %c0_22] : memref<18x18x128xf32, #tpu.memory_space<vmem>>, vector<18x1x128xf32>
    tpu.vector_store %arg11[%c0_20, %c17_21, %c0_22], %16 {strides = array<i32>} : memref<18x18x128xf32, #tpu.memory_space<vmem>>, vector<18x1x128xf32>,
    %18 = vector.shape_cast %9 : vector<256x128xf32> to vector<16x16x128xf32>
    %c1 = arith.constant 1 : index
    %c1_23 = arith.constant 1 : index
    %c0_24 = arith.constant 0 : index
    %19 = vector.load %arg11[%c1, %c1_23, %c0_24] : memref<18x18x128xf32, #tpu.memory_space<vmem>>, vector<16x16x128xf32>
    tpu.vector_store %arg11[%c1, %c1_23, %c0_24], %18 {strides = array<i32>} : memref<18x18x128xf32, #tpu.memory_space<vmem>>, vector<16x16x128xf32>,
    %c0_25 = arith.constant 0 : index
    %c0_26 = arith.constant 0 : index
    %c0_27 = arith.constant 0 : index
    %20 = vector.load %arg11[%c0_25, %c0_26, %c0_27] : memref<18x18x128xf32, #tpu.memory_space<vmem>>, vector<16x16x128xf32>
    %21 = arith.truncf %20 : vector<16x16x128xf32> to vector<16x16x128xbf16>
    %c0_28 = arith.constant 0 : index
    %c1_29 = arith.constant 1 : index
    %c0_30 = arith.constant 0 : index
    %22 = vector.load %arg11[%c0_28, %c1_29, %c0_30] : memref<18x18x128xf32, #tpu.memory_space<vmem>>, vector<16x16x128xf32>
    %23 = arith.truncf %22 : vector<16x16x128xf32> to vector<16x16x128xbf16>
    %c0_31 = arith.constant 0 : index
    %c2 = arith.constant 2 : index
    %c0_32 = arith.constant 0 : index
    %24 = vector.load %arg11[%c0_31, %c2, %c0_32] : memref<18x18x128xf32, #tpu.memory_space<vmem>>, vector<16x16x128xf32>
    %25 = arith.truncf %24 : vector<16x16x128xf32> to vector<16x16x128xbf16>
    %c1_33 = arith.constant 1 : index
    %c0_34 = arith.constant 0 : index
    %c0_35 = arith.constant 0 : index
    %26 = vector.load %arg11[%c1_33, %c0_34, %c0_35] : memref<18x18x128xf32, #tpu.memory_space<vmem>>, vector<16x16x128xf32>
    %27 = arith.truncf %26 : vector<16x16x128xf32> to vector<16x16x128xbf16>
    %c1_36 = arith.constant 1 : index
    %c1_37 = arith.constant 1 : index
    %c0_38 = arith.constant 0 : index
    %28 = vector.load %arg11[%c1_36, %c1_37, %c0_38] : memref<18x18x128xf32, #tpu.memory_space<vmem>>, vector<16x16x128xf32>
    %29 = arith.truncf %28 : vector<16x16x128xf32> to vector<16x16x128xbf16>
    %c1_39 = arith.constant 1 : index
    %c2_40 = arith.constant 2 : index
    %c0_41 = arith.constant 0 : index
    %30 = vector.load %arg11[%c1_39, %c2_40, %c0_41] : memref<18x18x128xf32, #tpu.memory_space<vmem>>, vector<16x16x128xf32>
    %31 = arith.truncf %30 : vector<16x16x128xf32> to vector<16x16x128xbf16>
    %c2_42 = arith.constant 2 : index
    %c0_43 = arith.constant 0 : index
    %c0_44 = arith.constant 0 : index
    %32 = vector.load %arg11[%c2_42, %c0_43, %c0_44] : memref<18x18x128xf32, #tpu.memory_space<vmem>>, vector<16x16x128xf32>
    %33 = arith.truncf %32 : vector<16x16x128xf32> to vector<16x16x128xbf16>
    %c2_45 = arith.constant 2 : index
    %c1_46 = arith.constant 1 : index
    %c0_47 = arith.constant 0 : index
    %34 = vector.load %arg11[%c2_45, %c1_46, %c0_47] : memref<18x18x128xf32, #tpu.memory_space<vmem>>, vector<16x16x128xf32>
    %35 = arith.truncf %34 : vector<16x16x128xf32> to vector<16x16x128xbf16>
    %c2_48 = arith.constant 2 : index
    %c2_49 = arith.constant 2 : index
    %c0_50 = arith.constant 0 : index
    %36 = vector.load %arg11[%c2_48, %c2_49, %c0_50] : memref<18x18x128xf32, #tpu.memory_space<vmem>>, vector<16x16x128xf32>
    %37 = arith.truncf %36 : vector<16x16x128xf32> to vector<16x16x128xbf16>
    %38 = tpu.concatenate %21, %23, %25, %27, %29, %31, %33, %35, %37 in 2 : vector<16x16x128xbf16>, vector<16x16x128xbf16>, vector<16x16x128xbf16>, vector<16x16x128xbf16>, vector<16x16x128xbf16>, vector<16x16x128xbf16>, vector<16x16x128xbf16>, vector<16x16x128xbf16>, vector<16x16x128xbf16> -> vector<16x16x1152xbf16>
    %39 = vector.shape_cast %38 : vector<16x16x1152xbf16> to vector<256x1152xbf16>
    %c0_51 = arith.constant 0 : index
    %c0_52 = arith.constant 0 : index
    %40 = vector.load %arg4[%c0_51, %c0_52] : memref<1152x128xbf16, #tpu.memory_space<vmem>>, vector<1152x128xbf16>
    %cst_53 = arith.constant dense<0.000000e+00> : vector<256x128xf32>
    %41 = tpu.matmul %39, %40, %cst_53 {dimension_numbers = #tpu.dot_dimension_numbers<[1], [0], [0], [1], [0, 0, 1, 1], [], []>} : vector<256x1152xbf16>, vector<1152x128xbf16>, vector<256x128xf32> -> vector<256x128xf32>
    %c0_54 = arith.constant 0 : index
    %c0_55 = arith.constant 0 : index
    %42 = vector.load %arg5[%c0_54, %c0_55] : memref<1x128xf32, #tpu.memory_space<vmem>>, vector<1x128xf32>
    %43 = vector.broadcast %42 : vector<1x128xf32> to vector<256x128xf32>
    %44 = arith.addf %41, %43 : vector<256x128xf32>
    %cst_56 = arith.constant 0.000000e+00 : f32
    %45 = vector.broadcast %cst_56 : f32 to vector<256x128xf32>
    %46 = arith.maximumf %44, %45 : vector<256x128xf32>
    %47 = arith.truncf %46 : vector<256x128xf32> to vector<256x128xbf16>
    %c0_57 = arith.constant 0 : index
    %c0_58 = arith.constant 0 : index
    %48 = vector.load %arg6[%c0_57, %c0_58] : memref<128x128xbf16, #tpu.memory_space<vmem>>, vector<128x128xbf16>
    %cst_59 = arith.constant dense<0.000000e+00> : vector<256x128xf32>
    %49 = tpu.matmul %47, %48, %cst_59 {dimension_numbers = #tpu.dot_dimension_numbers<[1], [0], [0], [1], [0, 0, 1, 1], [], []>} : vector<256x128xbf16>, vector<128x128xbf16>, vector<256x128xf32> -> vector<256x128xf32>
    %c0_60 = arith.constant 0 : index
    %c0_61 = arith.constant 0 : index
    %50 = vector.load %arg7[%c0_60, %c0_61] : memref<1x128xf32, #tpu.memory_space<vmem>>, vector<1x128xf32>
    %51 = vector.broadcast %50 : vector<1x128xf32> to vector<256x128xf32>
    %52 = arith.addf %49, %51 : vector<256x128xf32>
    %c0_62 = arith.constant 0 : index
    %c0_63 = arith.constant 0 : index
    %c0_64 = arith.constant 0 : index
    %c0_65 = arith.constant 0 : index
    %53 = vector.load %arg1[%c0_62, %c0_63, %c0_64, %c0_65] : memref<1x16x16x128xbf16, #tpu.memory_space<vmem>>, vector<1x16x16x128xbf16>
    %54 = vector.shape_cast %53 : vector<1x16x16x128xbf16> to vector<16x16x128xbf16>
    %55 = vector.shape_cast %54 : vector<16x16x128xbf16> to vector<256x128xbf16>
    %c0_66 = arith.constant 0 : index
    %c0_67 = arith.constant 0 : index
    %56 = vector.load %arg8[%c0_66, %c0_67] : memref<128x128xbf16, #tpu.memory_space<vmem>>, vector<128x128xbf16>
    %cst_68 = arith.constant dense<0.000000e+00> : vector<256x128xf32>
    %57 = tpu.matmul %55, %56, %cst_68 {dimension_numbers = #tpu.dot_dimension_numbers<[1], [0], [0], [1], [0, 0, 1, 1], [], []>} : vector<256x128xbf16>, vector<128x128xbf16>, vector<256x128xf32> -> vector<256x128xf32>
    %c0_69 = arith.constant 0 : index
    %c0_70 = arith.constant 0 : index
    %58 = vector.load %arg9[%c0_69, %c0_70] : memref<1x128xf32, #tpu.memory_space<vmem>>, vector<1x128xf32>
    %59 = vector.broadcast %58 : vector<1x128xf32> to vector<256x128xf32>
    %60 = arith.addf %57, %59 : vector<256x128xf32>
    %61 = arith.addf %52, %60 : vector<256x128xf32>
    %cst_71 = arith.constant 0.000000e+00 : f32
    %62 = vector.broadcast %cst_71 : f32 to vector<256x128xf32>
    %63 = arith.maximumf %61, %62 : vector<256x128xf32>
    %64 = vector.shape_cast %63 : vector<256x128xf32> to vector<1x16x16x128xf32>
    %c0_72 = arith.constant 0 : index
    %c0_73 = arith.constant 0 : index
    %c0_74 = arith.constant 0 : index
    %c0_75 = arith.constant 0 : index
    %65 = vector.load %arg10[%c0_72, %c0_73, %c0_74, %c0_75] : memref<1x16x16x128xf32, #tpu.memory_space<vmem>>, vector<1x16x16x128xf32>
    tpu.vector_store %arg10[%c0_72, %c0_73, %c0_74, %c0_75], %64 {strides = array<i32>} : memref<1x16x16x128xf32, #tpu.memory_space<vmem>>, vector<1x16x16x128xf32>,
    return
  }
  func.func @transform_0(%arg0: i32) -> (i32, i32, i32, i32) {
    %c0_i32 = arith.constant 0 : i32
    %c0_i32_0 = arith.constant 0 : i32
    %c0_i32_1 = arith.constant 0 : i32
    %c0_i32_2 = arith.constant 0 : i32
    return %arg0, %c0_i32, %c0_i32_0, %c0_i32_1 : i32, i32, i32, i32
  }
  func.func @transform_1(%arg0: i32) -> (i32, i32) {
    %c0_i32 = arith.constant 0 : i32
    %c0_i32_0 = arith.constant 0 : i32
    %c0_i32_1 = arith.constant 0 : i32
    return %c0_i32, %c0_i32_0 : i32, i32
  }
  func.func @transform_2(%arg0: i32) -> (i32, i32) {
    %c0_i32 = arith.constant 0 : i32
    %c0_i32_0 = arith.constant 0 : i32
    %c0_i32_1 = arith.constant 0 : i32
    return %c0_i32, %c0_i32_0 : i32, i32
  }
  func.func @transform_3(%arg0: i32) -> (i32, i32) {
    %c0_i32 = arith.constant 0 : i32
    %c0_i32_0 = arith.constant 0 : i32
    %c0_i32_1 = arith.constant 0 : i32
    return %c0_i32, %c0_i32_0 : i32, i32
  }
  func.func @transform_4(%arg0: i32) -> (i32, i32) {
    %c0_i32 = arith.constant 0 : i32
    %c0_i32_0 = arith.constant 0 : i32
    %c0_i32_1 = arith.constant 0 : i32
    return %c0_i32, %c0_i32_0 : i32, i32
  }
  func.func @transform_5(%arg0: i32) -> (i32, i32) {
    %c0_i32 = arith.constant 0 : i32
    %c0_i32_0 = arith.constant 0 : i32
    %c0_i32_1 = arith.constant 0 : i32
    return %c0_i32, %c0_i32_0 : i32, i32
  }
  func.func @transform_6(%arg0: i32) -> (i32, i32) {
    %c0_i32 = arith.constant 0 : i32
    %c0_i32_0 = arith.constant 0 : i32
    %c0_i32_1 = arith.constant 0 : i32
    return %c0_i32, %c0_i32_0 : i32, i32
  }
  func.func @transform_7(%arg0: i32) -> (i32, i32) {
    %c0_i32 = arith.constant 0 : i32
    %c0_i32_0 = arith.constant 0 : i32
    %c0_i32_1 = arith.constant 0 : i32
    return %c0_i32, %c0_i32_0 : i32, i32
  }
  func.func @transform_8(%arg0: i32) -> (i32, i32) {
    %c0_i32 = arith.constant 0 : i32
    %c0_i32_0 = arith.constant 0 : i32
    %c0_i32_1 = arith.constant 0 : i32
    return %c0_i32, %c0_i32_0 : i32, i32
  }
  func.func @transform_9(%arg0: i32) -> (i32, i32, i32, i32) {
    %c0_i32 = arith.constant 0 : i32
    %c0_i32_0 = arith.constant 0 : i32
    %c0_i32_1 = arith.constant 0 : i32
    %c0_i32_2 = arith.constant 0 : i32
    return %arg0, %c0_i32, %c0_i32_0, %c0_i32_1 : i32, i32, i32, i32
  }
}

</mosaic_0001>

<bundles_post_ra>
// kernel: tpu_custom_call.1
= control target key start
LH: loop header
LB: loop body
LE: loop exit
PB: predicated region body
PF: predicated region fallthrough
CT: control target
= control target key end

     0   :  { %s5937_s0 = inlined_call_operand.hbm [shape: bf16[2,16,16,128], index: 0, kind: input, shape index: {}]   ;;  %s5938_s1 = inlined_call_operand.hbm [shape: bf16[128,128], index: 1, kind: input, shape index: {}]   ;;  %s5939_s2 = inlined_call_operand.vmem [shape: f32[1,128], index: 2, kind: input, shape index: {}]   ;;  %s5940_s3 = inlined_call_operand.hbm [shape: bf16[1152,128], index: 3, kind: input, shape index: {}]   ;;  %s5941_s4 = inlined_call_operand.vmem [shape: f32[1,128], index: 4, kind: input, shape index: {}]   ;;  %s5942_s5 = inlined_call_operand.hbm [shape: bf16[128,128], index: 5, kind: input, shape index: {}]   ;;  %s5943_s6 = inlined_call_operand.vmem [shape: f32[1,128], index: 6, kind: input, shape index: {}]   ;;  %s5944_s7 = inlined_call_operand.hbm [shape: bf16[128,128], index: 7, kind: input, shape index: {}]   ;;  %s5945_s8 = inlined_call_operand.vmem [shape: f32[1,128], index: 8, kind: input, shape index: {}]   ;;  %s5946_s9 = inlined_call_operand.hbm [shape: f32[2,16,16,128], index: 9, kind: output, shape index: {}]  }
   0x1   :  { %5953 = sst [smem:[#allocation19_spill]] %s5946_s9 }
   0x2   :  { %14 = vsyncpa [#allocation4], 0 }
   0x3   :  { %16 = vsyncpa [#allocation4 + $0x1], 0 }
   0x4   :  { %17 = vsyncpa [#allocation7], 0 }
   0x5   :  { %18 = vsyncpa [#allocation10], 0 }
   0x6   :  { %19 = vsyncpa [#allocation5], 0 }
   0x7   :  { %21 = vsyncpa [#allocation5 + $0x1], 0  ;;  %s5048_s30 = smov 0   ;;  %s5050_s10 = smov 0  }
   0x8   :  { %s5052_s11 = smov 0   ;;  %s5054_s12 = smov 0  }
   0x9 LB: > { %5954 = sst [smem:[#allocation17_spill]] %s4973_s30  ;;  %s5069_s13 = sadd.s32 4294967295, %s4985_s12   ;;  %s4985_s12 = sphi %s5054_s12, %s5978_s12   ;;  %s4981_s11 = sphi %s5052_s11, %s5977_s11   ;;  %s4977_s10 = sphi %s5050_s10, %s5976_s10   ;;  %s4973_s30 = sphi %s5048_s30, %s5975_s30  }
   0xa   : > { %s3560_s14 = sadd.s32 4294967294, %s4985_s12   ;;  %p47_p0 = scmp.ne.s32.totalorder %s4977_s10, %s4973_s30 }
   0xb   : > { %p5947_p1 = scmp.eq.s32.totalorder %s5069_s13, 0  ;;  %p245_p3 = scmp.eq.s32.totalorder %s3560_s14, 1 }
   0xc   : > { %p3561_p5 = scmp.ge.s32.totalorder %s4985_s12, 1  ;;  %p252_p7 = scmp.lt.s32.totalorder %s4985_s12, 3 }
   0xd   : > { %p5078_p4 = por %p5947_p1, %p47_p0  ;;  %p5083_p6 = por %p245_p3, %p47_p0 }
   0xe   : > { %p5088_p8 = pnand %p3561_p5, %p252_p7  ;;  %s4987_s18 = smov [#allocation6]  }
   0xf   : > { %s5955_s15 = scalar_select %p5078_p4, 1, 0 }
  0x10   : > { %s5956_s16 = scalar_select %p5083_p6, 1, 0 }
  0x11   : > { %s5958_s17 = scalar_select %p5088_p8, 1, 0 }
  0x12   : > { %5957 = sst [smem:[#allocation18_spill]] %s5956_s16  ;;  %s264_s19 = sshll.u32 %s4987_s18, 4  ;;  %s5092_s19 = int_to_ptr.vmem [resolvable:$true] %s264_s19 }
  0x13   : > { %p4568_p9 = pneg %p5088_p8  ;;  %s4988_s21 = smov [#allocation9]  }
  0x14   : > { %s296_s22 = sshll.u32 %s4988_s21, 4  ;;  %s4989_s23 = smov [#allocation8]   ;;  %s5103_s22 = int_to_ptr.vmem [resolvable:$true] %s296_s22 }
  0x15   : > { %p5099_p11 = pnand %p4568_p9, %p5947_p1  ;;  %s5105_s24 = sshll.u32 %s4989_s23, 4  ;;  %s281_s24 = int_to_ptr.vmem [resolvable:$true] %s5105_s24 }
  0x16   : > { %s4769_s27 = scalar_lea.hbm %s5938_s1, 1024 }
  0x17   : > { %p4770_p12 = scmp.ne.s32.totalorder %s5938_s1, %s4769_s27  ;;  %p5115_p13 = pneg %p5099_p11 }
  0x18   : > { %p4776_p5 = scmp.lt.u32.totalorder %s4769_s27, %s5938_s1 }
  0x19   : > { %p4772_p0 = pnand %p5115_p13, %p4770_p12 }
  0x1b   : > { %p4773_p3 = pneg %p4772_p0 }
  0x1d   : > { %p4778_p7 = pnand %p4776_p5, %p4773_p3 }
  0x1f   : > { %4781 = shalt.err (!%p4778_p7)
}
  0x20   : > { %s4782_s23 = scalar_lea.vmem %s5092_s19, 1024  ;;  %p4790_p2 = scmp.lt.s32.totalorder %s5092_s19, %s5092_s19 }
  0x21   : > { %p4783_p9 = scmp.ne.s32.totalorder %s5092_s19, %s4782_s23  ;;  %p4791_p6 = scmp.lt.s32.totalorder %s4782_s23, %s4782_s23 }
  0x23   : > { %p4785_p10 = pnand %p4783_p9, %p5115_p13  ;;  %p4792_p12 = por %p4791_p6, %p4790_p2 }
  0x25   : > { %p4786_p1 = pneg %p4785_p10 }
  0x27   : > { %p4793_p0 = pnand %p4792_p12, %p4786_p1 }
  0x29   : > { %4796 = shalt.err (!%p4793_p0)
}
  0x2a   : > { %s4990_s25 = smov 64   ;;  %s4991_s26 = smov 4  }
  0x2b   : > { %4571 = dma.hbm_to_vmem [thread:$0]  (!%p5099_p11), %s5938_s1, 1024, %s5092_s19, [#allocation7], %s4990_s25, %s4990_s25, %s4991_s26  }
  0x2c   : > { %s4797_s21 = scalar_lea.hbm %s5942_s5, 1024 }
  0x2d   : > { %p4798_p1 = scmp.ne.s32.totalorder %s5942_s5, %s4797_s21  ;;  %p4804_p10 = scmp.lt.u32.totalorder %s4797_s21, %s5942_s5 }
  0x2f   : > { %p4800_p2 = pnand %p4798_p1, %p5115_p13 }
  0x31   : > { %p4801_p6 = pneg %p4800_p2 }
  0x33   : > { %p4806_p3 = pnand %p4804_p10, %p4801_p6 }
  0x35   : > { %4809 = shalt.err (!%p4806_p3)
}
  0x36   : > { %s4810_s19 = scalar_lea.vmem %s5103_s22, 1024  ;;  %p4818_p12 = scmp.lt.s32.totalorder %s5103_s22, %s5103_s22 }
  0x37   : > { %p4811_p5 = scmp.ne.s32.totalorder %s5103_s22, %s4810_s19  ;;  %p4819_p0 = scmp.lt.s32.totalorder %s4810_s19, %s4810_s19 }
  0x39   : > { %p4813_p7 = pnand %p4811_p5, %p5115_p13  ;;  %p4820_p1 = por %p4819_p0, %p4818_p12 }
  0x3b   : > { %p4814_p9 = pneg %p4813_p7 }
  0x3d   : > { %p4821_p2 = pnand %p4820_p1, %p4814_p9 }
  0x3f   : > { %4824 = shalt.err (!%p4821_p2)
}
  0x40   : > { %4577 = dma.hbm_to_vmem [thread:$0]  (!%p5099_p11), %s5942_s5, 1024, %s5103_s22, [#allocation10], %s4990_s25, %s4990_s25, %s4991_s26  }
  0x41   : > { %s4825_s28 = scalar_lea.hbm %s5940_s3, 9216 }
  0x42   : > { %p4826_p6 = scmp.ne.s32.totalorder %s5940_s3, %s4825_s28  ;;  %p4832_p5 = scmp.lt.u32.totalorder %s4825_s28, %s5940_s3 }
  0x44   : > { %p4828_p10 = pnand %p4826_p6, %p5115_p13 }
  0x46   : > { %p4829_p3 = pneg %p4828_p10 }
  0x48   : > { %p4834_p7 = pnand %p4832_p5, %p4829_p3 }
  0x4a   : > { %4837 = shalt.err (!%p4834_p7)
}
  0x4b   : > { %s4838_s19 = scalar_lea.vmem %s281_s24, 9216  ;;  %p4846_p1 = scmp.lt.s32.totalorder %s281_s24, %s281_s24 }
  0x4c   : > { %p4839_p9 = scmp.ne.s32.totalorder %s281_s24, %s4838_s19  ;;  %p4847_p2 = scmp.lt.s32.totalorder %s4838_s19, %s4838_s19 }
  0x4e   : > { %p4841_p12 = pnand %p4839_p9, %p5115_p13  ;;  %p4848_p4 = por %p4847_p2, %p4846_p1 }
  0x50   : > { %p4842_p0 = pneg %p4841_p12 }
  0x52   : > { %p4849_p8 = pnand %p4848_p4, %p4842_p0 }
  0x54   : > { %4852 = shalt.err (!%p4849_p8)
}
  0x55   : > { %4574 = dma.hbm_to_vmem [thread:$0]  (!%p5099_p11), %s5940_s3, 9216, %s281_s24, [#allocation7], %s4990_s25, %s4990_s25, %s4991_s26  }
  0x56   : > { %s4992_s30 = smov [#allocation11]   ;;  %s4853_s29 = scalar_lea.hbm %s5944_s7, 1024 }
  0x57   : > { %s312_s16 = sshll.u32 %s4992_s30, 4  ;;  %p4854_p4 = scmp.ne.s32.totalorder %s5944_s7, %s4853_s29  ;;  %s313_s16 = int_to_ptr.vmem [resolvable:$true] %s312_s16 }
  0x58   : > { %p4860_p10 = scmp.lt.u32.totalorder %s4853_s29, %s5944_s7 }
  0x59   : > { %p4856_p8 = pnand %p4854_p4, %p5115_p13 }
  0x5b   : > { %p4857_p6 = pneg %p4856_p8 }
  0x5d   : > { %p4862_p3 = pnand %p4860_p10, %p4857_p6 }
  0x5f   : > { %4865 = shalt.err (!%p4862_p3)
}
  0x60   : > { %s4866_s24 = scalar_lea.vmem %s313_s16, 1024  ;;  %p4874_p12 = scmp.lt.s32.totalorder %s313_s16, %s313_s16 }
  0x61   : > { %p4867_p5 = scmp.ne.s32.totalorder %s313_s16, %s4866_s24  ;;  %p4875_p0 = scmp.lt.s32.totalorder %s4866_s24, %s4866_s24 }
  0x63   : > { %p4869_p7 = pnand %p4867_p5, %p5115_p13  ;;  %p4876_p1 = por %p4875_p0, %p4874_p12 }
  0x65   : > { %p4870_p9 = pneg %p4869_p7 }
  0x67   : > { %p4877_p2 = pnand %p4876_p1, %p4870_p9 }
  0x69   : > { %4880 = shalt.err (!%p4877_p2)
}
  0x6a   : > { %4580 = dma.hbm_to_vmem [thread:$0]  (!%p5099_p11), %s5944_s7, 1024, %s313_s16, [#allocation10], %s4990_s25, %s4990_s25, %s4991_s26  }
  0x6b   : > { %s5209_s14 = sadd.s32 1, %s4985_s12   ;;  %s34_s20 = sadd.s32 1, %s4981_s11 }
  0x6c   : > { %s31_s30 = ssub.s32 %s4985_s12, %s5209_s14  ;;  %p41_p13 = scmp.ne.s32.totalorder %s4981_s11, %s4977_s10 }
  0x6d   : > { %p32_p4 = scmp.eq.s32.totalorder %s31_s30, 0  ;;  %p42_p8 = scmp.eq.s32.totalorder %s4985_s12, 0 }
  0x6e   : > { %p5961_p6 = scmp.eq.s32.totalorder %s5069_s13, 1  ;;  %p4593_p3 = scmp.lt.s32.totalorder %s4985_s12, 2 }
  0x6f   : > { %s5225_s28 = scalar_select %p32_p4, %s4981_s11, %s34_s20  }
  0x70   : > { %p5219_p10 = por %p5961_p6, %p41_p13  ;;  %p43_p5 = por %p42_p8, %p41_p13 }
  0x71   : > { %s329_s29 = sand.u32 1, %s4981_s11   ;;  %s3714_s16 = sshll.u32 %s4985_s12, 11 }
  0x72   : > { %s3567_s18 = sshll.u32 %s329_s29, 7  ;;  %s5232_s19 = scalar_lea.hbm %s5937_s0, %s3714_s16 }
  0x73   : > { %s333_s24 = scalar_lea.vmem [#allocation3], %s3567_s18  ;;  %p5236_p11 = pnand %p4593_p3, %p43_p5 }
  0x74   : > { %s340_s22 = sshll.u32 %s333_s24, 4  ;;  %s5240_s20 = scalar_lea.sflag [#allocation4], %s329_s29  ;;  %s5234_s22 = int_to_ptr.vmem [resolvable:$true] %s340_s22 }
  0x75   : > { %s4881_s30 = scalar_lea.hbm %s5232_s19, 2048  ;;  %p4883_p9 = pneg %p5236_p11 }
  0x76   : > { %p4882_p7 = scmp.ne.s32.totalorder %s5232_s19, %s4881_s30  ;;  %s4886_s21 = scalar_lea.hbm %s5937_s0, 4096 }
  0x77   : > { %p4887_p1 = scmp.lt.u32.totalorder %s5232_s19, %s5937_s0  ;;  %p4888_p2 = scmp.lt.u32.totalorder %s4886_s21, %s4881_s30 }
  0x78   : > { %p4884_p12 = pnand %p4883_p9, %p4882_p7  ;;  %p4890_p4 = scmp.lt.u32.totalorder %s4881_s30, %s5232_s19 }
  0x79   : > { %p4889_p13 = por %p4888_p2, %p4887_p1 }
  0x7a   : > { %p4885_p0 = pneg %p4884_p12 }
  0x7b   : > { %p4891_p8 = por %p4890_p4, %p4889_p13 }
  0x7d   : > { %p4892_p6 = pnand %p4891_p8, %p4885_p0 }
  0x7f   : > { %4895 = shalt.err (!%p4892_p6)
}
  0x80   : > { %s4896_s29 = scalar_lea.vmem %s5234_s22, 2048  ;;  %s4993_s18 = smov [#allocation3]  }
  0x81   : > { %p4897_p3 = scmp.ne.s32.totalorder %s5234_s22, %s4896_s29  ;;  %s4901_s16 = sshll.u32 %s4993_s18, 4  ;;  %s4902_s16 = int_to_ptr.vmem [resolvable:$false] %s4901_s16 }
  0x82   : > { %s4903_s23 = scalar_lea.vmem %s4902_s16, 4096  ;;  %p4904_p12 = scmp.lt.s32.totalorder %s5234_s22, %s4902_s16 }
  0x83   : > { %p4899_p5 = pnand %p4897_p3, %p4883_p9  ;;  %p4905_p1 = scmp.lt.s32.totalorder %s4903_s23, %s4896_s29 }
  0x85   : > { %p4900_p7 = pneg %p4899_p5  ;;  %p4906_p2 = por %p4905_p1, %p4904_p12 }
  0x87   : > { %p4907_p13 = pnand %p4906_p2, %p4900_p7 }
  0x89   : > { %4910 = shalt.err (!%p4907_p13)
}
  0x8a   : > { %4584 = dma.hbm_to_vmem [thread:$0]  (!%p5236_p11), %s5232_s19, 2048, %s5234_s22, %s5240_s20, %s4990_s25, %s4990_s25, %s4991_s26  }
  0x8b   : > { %p5964_p9 = scmp.ne.s32.totalorder %s5958_s17, 0 }
  0x8c   : > { %s5274_s30 = sand.u32 (!%p5964_p9), 1, %s4977_s10   ;;  %p5965_p0 = scmp.ne.s32.totalorder (!%p5964_p9), %s5955_s15, 0 }
  0x8d   : > { %352 = sbr.rel (%p5964_p9) target bundleno = 1242 (0x4da), region = 56  ;;  %s3571_s21 = sshll.u32 (!%p5964_p9), %s5274_s30, 7 }
  0x8e   : > { %s355_s24 = scalar_lea.sflag (!%p5964_p9), [#allocation4], %s5274_s30  ;;  %s5278_s29 = scalar_lea.vmem (!%p5964_p9), [#allocation3], %s3571_s21 }
  0x94   : > { %4956 = dma.done.wait (%p5965_p0), %s355_s24, 2048  }
  0x95   : > { %4958 = vsyncadd (%p5965_p0), %s355_s24, 4294965248  ;;  %p5966_p11 = scmp.eq.s32.totalorder %s5069_s13, 0 }
  0x97   : > { %4960 = dma.done.wait (%p5966_p11), [#allocation7], 10240   ;;  %p5967_p4 = pmov %p5966_p11 }
  0x99   : > { %4962 = vsyncadd (%p5967_p4), [#allocation7], 4294957056  ;;  %p5968_p8 = pmov %p5967_p4 }
  0x9a   : > { %p5969_p6 = pmov %p5967_p4 }
  0x9b   : > { %4964 = dma.done.wait (%p5968_p8), [#allocation10], 2048  }
  0x9c   : > { %4966 = vsyncadd (%p5969_p6), [#allocation10], 4294965248  ;;  %v4640_v0 = vld [vmem:[#allocation6] sm:$0xff]   ;;  %v4641_v1 = vld [vmem:[#allocation6 + $0x8] sm:$0xff]   ;;  %v4994_v45 = vmov 0.0   ;;  %s3576_s18 = sshll.u32 %s5274_s30, 8 }
  0x9d   : > { %4260 = vmatprep.subr.bf16.mxu1 %v4640_v0  ;;  %v4642_v2 = vld [vmem:[#allocation6 + $0x10] sm:$0xff]   ;;  %v4643_v3 = vld [vmem:[#allocation6 + $0x18] sm:$0xff]   ;;  %v4648_v4 = vld [vmem:[%s5278_s29] sm:$0xff]   ;;  %802 = vst [vmem:[#allocation2] sm:$0xff] %v4994_v45  ;;  %s5824_s16 = scalar_lea.vmem [#allocation12], %s3576_s18  ;;  %s3715_s23 = sshll.u32 %s5069_s13, 12 }
  0x9e   : > { %4261 = vmatpush3.bf16.msra.mxu1 %v4640_v0  ;;  %4276 = vmatprep.mubr.bf16.mxu1 %v4648_v4  ;;  %v4644_v5 = vld [vmem:[#allocation6 + $0x20] sm:$0xff]   ;;  %v4645_v6 = vld [vmem:[#allocation6 + $0x28] sm:$0xff]   ;;  %v4646_v7 = vld [vmem:[#allocation6 + $0x30] sm:$0xff]   ;;  %803 = vst [vmem:[#allocation2 + $0x8] sm:$0xff] %v4994_v45  ;;  %s3449_s21 = sshll.u32 %s5824_s16, 4  ;;  %s5970_s15 = sld [smem:[#allocation19_spill]]  ;;  %s5890_s21 = int_to_ptr.vmem [resolvable:$true] %s3449_s21 }
  0x9f   : > { %4262 = vmatprep.subr.bf16.mxu1 %v4641_v1  ;;  %v4647_v8 = vld [vmem:[#allocation6 + $0x38] sm:$0xff]   ;;  %v4664_v9 = vld [vmem:[#allocation8 + $0x40] sm:$0xff]   ;;  %v4649_v10 = vld [vmem:[%s5278_s29 + $0x8] sm:$0xff]   ;;  %804 = vst [vmem:[#allocation2 + $0x10] sm:$0x3] %v4994_v45  ;;  %s3436_s13 = scalar_lea.sflag [#allocation5], %s5274_s30 }
  0xa0   : > { %v4650_v11 = vld [vmem:[%s5278_s29 + $0x10] sm:$0xff]   ;;  %v4665_v12 = vld [vmem:[#allocation8] sm:$0xff]   ;;  %v4666_v13 = vld [vmem:[#allocation8 + $0x48] sm:$0xff]   ;;  %806 = vst [vmem:[#allocation2 + $0x198] sm:$0xff] %v4994_v45  ;;  %s4911_s25 = scalar_lea.vmem %s5890_s21, 4096  ;;  %s4995_s26 = smov [#allocation12]  }
  0xa1   : > { %v4667_v14 = vld [vmem:[#allocation8 + $0x8] sm:$0xff]   ;;  %v4668_v15 = vld [vmem:[#allocation8 + $0x50] sm:$0xff]   ;;  %v4651_v16 = vld [vmem:[%s5278_s29 + $0x18] sm:$0xff]   ;;  %807 = vst [vmem:[#allocation2 + $0x1a0] sm:$0xff] %v4994_v45  ;;  %p4912_p3 = scmp.ne.s32.totalorder %s5890_s21, %s4911_s25  ;;  %s4915_s19 = sshll.u32 %s4995_s26, 4  ;;  %s4916_s19 = int_to_ptr.vmem [resolvable:$false] %s4915_s19 }
  0xa2   : > { %4263 = vmatpush3.bf16.msra.mxu1 %v4641_v1  ;;  %v4676_v17 = vld [vmem:[#allocation8 + $0xc0] sm:$0xff]   ;;  %v4669_v19 = vld [vmem:[#allocation8 + $0x10] sm:$0xff]   ;;  %v4678_v21 = vld [vmem:[#allocation8 + $0xc8] sm:$0xff]   ;;  %808 = vst [vmem:[#allocation2 + $0x1a8] sm:$0x3] %v4994_v45  ;;  %s4917_s22 = scalar_lea.vmem %s4916_s19, 8192  ;;  %p4918_p12 = scmp.lt.s32.totalorder %s5890_s21, %s4916_s19 }
  0xa3   : > { %4264 = vmatprep.subr.bf16.mxu1 %v4642_v2  ;;  %v4652_v18 = vld [vmem:[%s5278_s29 + $0x20] sm:$0xff]   ;;  %3852 = vmatprep.subr.bf16.mxu0 %v4676_v17  ;;  %v4670_v22 = vld [vmem:[#allocation8 + $0x58] sm:$0xff]   ;;  %v4679_v23 = vld [vmem:[#allocation8 + $0x88] sm:$0xff]   ;;  %810 = vst [vmem:[#allocation2 + $0x18] sm:$0x1] %v4994_v45  ;;  %p4913_p5 = pnand %p4912_p3, %p5219_p10  ;;  %p4919_p1 = scmp.lt.s32.totalorder %s4917_s22, %s4911_s25 }
  0xa4   : > { %v4677_v20 = vld [vmem:[#allocation8 + $0x80] sm:$0xff]   ;;  %v4671_v24 = vld [vmem:[#allocation8 + $0x18] sm:$0xff]   ;;  %v4682_v26 = vld [vmem:[#allocation8 + $0xd0] sm:$0xff]   ;;  %811 = vst [vmem:[#allocation2 + $0x30] sm:$0x1] %v4994_v45  ;;  %s5888_s17 = scalar_lea.hbm %s5970_s15, %s3715_s23 }
  0xa5   : > { %3853 = vmatpush3.bf16.msra.mxu0 %v4677_v20  ;;  %v4672_v25 = vld [vmem:[#allocation8 + $0x60] sm:$0xff]   ;;  %v4683_v27 = vld [vmem:[#allocation8 + $0x90] sm:$0xff]   ;;  %v4653_v28 = vld [vmem:[%s5278_s29 + $0x28] sm:$0xff]   ;;  %812 = vst [vmem:[#allocation2 + $0x48] sm:$0x1] %v4994_v45  ;;  %p4914_p7 = pneg %p4913_p5  ;;  %p4920_p2 = por %p4919_p1, %p4918_p12 }
  0xa6   : > { %4265 = vmatpush3.bf16.msra.mxu1 %v4642_v2  ;;  %3854 = vmatprep.subr.bf16.mxu0 %v4678_v21  ;;  %v4684_v29 = vld [vmem:[#allocation8 + $0xd8] sm:$0xff]   ;;  %v4654_v30 = vld [vmem:[%s5278_s29 + $0x30] sm:$0xff]   ;;  %v4673_v31 = vld [vmem:[#allocation8 + $0x20] sm:$0xff]   ;;  %813 = vst [vmem:[#allocation2 + $0x60] sm:$0x1] %v4994_v45 }
  0xa7   : > { %4266 = vmatprep.subr.bf16.mxu1 %v4643_v3  ;;  %v4674_v32 = vld [vmem:[#allocation8 + $0x68] sm:$0xff]   ;;  %v4680_v34 = vld [vmem:[#allocation8 + $0x70] sm:$0xff]   ;;  %v4655_v35 = vld [vmem:[%s5278_s29 + $0x38] sm:$0xff]   ;;  %814 = vst [vmem:[#allocation2 + $0x78] sm:$0x1] %v4994_v45  ;;  %p4921_p13 = pnand %p4920_p2, %p4914_p7 }
  0xa8   : > { %v4675_v33 = vld [vmem:[#allocation8 + $0x28] sm:$0xff]   ;;  %v4656_v36 = vld [vmem:[%s5278_s29 + $0x40] sm:$0xff]   ;;  %v4681_v37 = vld [vmem:[#allocation8 + $0x30] sm:$0xff]   ;;  %815 = vst [vmem:[#allocation2 + $0x90] sm:$0x1] %v4994_v45 }
  0xa9   : > { %3855 = vmatpush3.bf16.msra.mxu0 %v4679_v23  ;;  %v4657_v38 = vld [vmem:[%s5278_s29 + $0x48] sm:$0xff]   ;;  %v4658_v39 = vld [vmem:[%s5278_s29 + $0x50] sm:$0xff]   ;;  %v4659_v40 = vld [vmem:[%s5278_s29 + $0x58] sm:$0xff]   ;;  %816 = vst [vmem:[#allocation2 + $0xa8] sm:$0x1] %v4994_v45 }
  0xaa   : > { %4267 = vmatpush3.bf16.msra.mxu1 %v4643_v3  ;;  %3856 = vmatprep.subr.bf16.mxu0 %v4682_v26  ;;  %v4660_v41 = vld [vmem:[%s5278_s29 + $0x60] sm:$0xff]   ;;  %v4661_v42 = vld [vmem:[%s5278_s29 + $0x68] sm:$0xff]   ;;  %v4662_v43 = vld [vmem:[%s5278_s29 + $0x70] sm:$0xff]   ;;  %817 = vst [vmem:[#allocation2 + $0xc0] sm:$0x1] %v4994_v45 }
  0xab   : > { %4268 = vmatprep.subr.bf16.mxu1 %v4644_v5  ;;  %v4663_v44 = vld [vmem:[%s5278_s29 + $0x78] sm:$0xff]   ;;  %818 = vst [vmem:[#allocation2 + $0xd8] sm:$0x1] %v4994_v45  ;;  %819 = vst [vmem:[#allocation2 + $0xf0] sm:$0x1] %v4994_v45  ;;  %v4688_v48 = vld [vmem:[#allocation8 + $0xe0] sm:$0xff]  }
  0xac   : > { %820 = vst [vmem:[#allocation2 + $0x108] sm:$0x1] %v4994_v45  ;;  %821 = vst [vmem:[#allocation2 + $0x120] sm:$0x1] %v4994_v45  ;;  %v4685_v46 = vld [vmem:[#allocation8 + $0x98] sm:$0xff]   ;;  %v4689_v50 = vld [vmem:[#allocation8 + $0xa0] sm:$0xff]  }
  0xad   : > { %3857 = vmatpush3.bf16.msra.mxu0 %v4683_v27  ;;  %822 = vst [vmem:[#allocation2 + $0x138] sm:$0x1] %v4994_v45  ;;  %823 = vst [vmem:[#allocation2 + $0x150] sm:$0x1] %v4994_v45  ;;  %v4686_v47 = vld [vmem:[#allocation8 + $0x78] sm:$0xff]   ;;  %v4690_v55 = vld [vmem:[#allocation8 + $0xe8] sm:$0xff]  }
  0xae   : > { %4269 = vmatpush3.bf16.msra.mxu1 %v4644_v5  ;;  %3858 = vmatprep.subr.bf16.mxu0 %v4684_v29  ;;  %824 = vst [vmem:[#allocation2 + $0x168] sm:$0x1] %v4994_v45  ;;  %825 = vst [vmem:[#allocation2 + $0x180] sm:$0x1] %v4994_v45  ;;  %v4687_v49 = vld [vmem:[#allocation8 + $0x38] sm:$0xff]   ;;  %v4691_v57 = vld [vmem:[#allocation8 + $0xa8] sm:$0xff]  }
  0xaf   : > { %4270 = vmatprep.subr.bf16.mxu1 %v4645_v6  ;;  %828 = vst [vmem:[#allocation2 + $0x29] sm:$0x1] %v4994_v45  ;;  %829 = vst [vmem:[#allocation2 + $0x41] sm:$0x1] %v4994_v45  ;;  %v926_v51 = vld [vmem:[#allocation2 + $0x1] sm:$0xff]  ;;  %v927_v52 = vld [vmem:[#allocation2 + $0x9] sm:$0xff] }
  0xb0   : > { %830 = vst [vmem:[#allocation2 + $0x59] sm:$0x1] %v4994_v45  ;;  %831 = vst [vmem:[#allocation2 + $0x71] sm:$0x1] %v4994_v45  ;;  %v958_v53 = vpack.c.bf16 %v927_v52, %v926_v51  ;;  %v4692_v58 = vld [vmem:[#allocation8 + $0x140] sm:$0xff]   ;;  %v4693_v59 = vld [vmem:[#allocation8 + $0xf0] sm:$0xff]  }
  0xb1   : > { %832 = vst [vmem:[#allocation2 + $0x89] sm:$0x1] %v4994_v45  ;;  %833 = vst [vmem:[#allocation2 + $0xa1] sm:$0x1] %v4994_v45  ;;  %3859 = vmatpush3.bf16.msra.mxu0 %v4685_v46  ;;  %v4694_v60 = vld [vmem:[#allocation8 + $0x100] sm:$0xff]   ;;  %v4695_v61 = vld [vmem:[#allocation8 + $0xb0] sm:$0xff]  }
  0xb2   : > { %4271 = vmatpush3.bf16.msra.mxu1 %v4645_v6  ;;  %834 = vst [vmem:[#allocation2 + $0xb9] sm:$0x1] %v4994_v45  ;;  %835 = vst [vmem:[#allocation2 + $0xd1] sm:$0x1] %v4994_v45  ;;  %3860 = vmatprep.subr.bf16.mxu0 %v4688_v48  ;;  %v4696_v62 = vld [vmem:[#allocation8 + $0xf8] sm:$0xff]   ;;  %v4698_v0 = vld [vmem:[#allocation8 + $0x148] sm:$0xff]  }
  0xb3   : > { %4272 = vmatprep.subr.bf16.mxu1 %v4646_v7  ;;  %836 = vst [vmem:[#allocation2 + $0xe9] sm:$0x1] %v4994_v45  ;;  %837 = vst [vmem:[#allocation2 + $0x101] sm:$0x1] %v4994_v45  ;;  %v4697_v63 = vld [vmem:[#allocation8 + $0xb8] sm:$0xff]   ;;  %v4699_v1 = vld [vmem:[#allocation8 + $0x108] sm:$0xff]  }
  0xb4   : > { %838 = vst [vmem:[#allocation2 + $0x119] sm:$0x1] %v4994_v45  ;;  %839 = vst [vmem:[#allocation2 + $0x131] sm:$0x1] %v4994_v45  ;;  %v4700_v2 = vld [vmem:[#allocation8 + $0x150] sm:$0xff]   ;;  %v4702_v4 = vld [vmem:[#allocation8 + $0x158] sm:$0xff]  }
  0xb5   : > { %840 = vst [vmem:[#allocation2 + $0x149] sm:$0x1] %v4994_v45  ;;  %841 = vst [vmem:[#allocation2 + $0x161] sm:$0x1] %v4994_v45  ;;  %3861 = vmatpush3.bf16.msra.mxu0 %v4689_v50  ;;  %v4701_v3 = vld [vmem:[#allocation8 + $0x110] sm:$0xff]   ;;  %v4703_v5 = vld [vmem:[#allocation8 + $0x118] sm:$0xff]  }
  0xb6   : > { %4273 = vmatpush3.bf16.msra.mxu1 %v4646_v7  ;;  %842 = vst [vmem:[#allocation2 + $0x179] sm:$0x1] %v4994_v45  ;;  %843 = vst [vmem:[#allocation2 + $0x191] sm:$0x1] %v4994_v45  ;;  %3862 = vmatprep.subr.bf16.mxu0 %v4690_v55  ;;  %v4704_v6 = vld [vmem:[#allocation8 + $0x1c0] sm:$0xff]  }
  0xb7   : > { %4274 = vmatprep.subr.bf16.mxu1 %v4647_v8  ;;  %809 = vst [vmem:[#allocation2] sm:$0x1] %v4994_v45  ;;  %827 = vst [vmem:[#allocation2 + $0x11] sm:$0x1] %v4994_v45  ;;  %v4706_v7 = vld [vmem:[#allocation8 + $0x160] sm:$0xff]  }
  0xb8   : > { %826 = vst [vmem:[#allocation2 + $0x198] sm:$0x1] %v4994_v45  ;;  %844 = vst [vmem:[#allocation2 + $0x1a9] sm:$0x1] %v4994_v45  ;;  %v5317_v26 = vld [vmem:[#allocation8 + $0x200] sm:$0xff]  }
  0xb9   : > { %3863 = vmatpush3.bf16.msra.mxu0 %v4691_v57  ;;  %v4708_v57 = vld [vmem:[#allocation8 + $0x1c8] sm:$0xff]  }
  0xba   : > { %4275 = vmatpush3.bf16.msra.mxu1 %v4647_v8  ;;  %3864 = vmatprep.subr.bf16.mxu0 %v4693_v59  ;;  %v4707_v8 = vld [vmem:[#allocation8 + $0x120] sm:$0xff]  }
  0xbb   : > { %3740 = vmatprep.subr.bf16.mxu1 %v4664_v9  ;;  %v4710_v9 = vld [vmem:[#allocation8 + $0x168] sm:$0xff]  }
  0xbd   : > { %4277 = vmatmul.mubr.bf16.vlgmr.msra.gmra.mrb[0].mxu1 %v4649_v10  ;;  %3865 = vmatpush3.bf16.msra.mxu0 %v4695_v61  ;;  %v4711_v10 = vld [vmem:[#allocation8 + $0x128] sm:$0xff]  }
  0xbe   : > { %4280 = vmatprep.mubr.bf16.mxu1 %v4650_v11  ;;  %3741 = vmatpush3.bf16.msra.mxu1 %v4665_v12  ;;  %v878_v54 = vld [vmem:[#allocation2] sm:$0xff] }
  0xbf   : > { %3742 = vmatprep.subr.bf16.mxu1 %v4666_v13  ;;  %v910_v56 = vpack.c.bf16 %v4994_v45, %v878_v54  ;;  %3866 = vmatprep.subr.bf16.mxu0 %v4696_v62  ;;  %v4714_v11 = vld [vmem:[#allocation8 + $0x170] sm:$0xff]   ;;  %v4718_v13 = vld [vmem:[#allocation8 + $0x178] sm:$0xff]  }
  0xc0   : > { %v4715_v12 = vld [vmem:[#allocation8 + $0x130] sm:$0xff]  }
  0xc1   : > { %3867 = vmatpush3.bf16.msra.mxu0 %v4697_v63 }
  0xc2   : > { %3743 = vmatpush3.bf16.msra.mxu1 %v4667_v14  ;;  %4076 = vmatprep.subr.bf16.mxu0 %v4704_v6  ;;  %v4719_v14 = vld [vmem:[#allocation8 + $0x138] sm:$0xff]  }
  0xc3   : > { %3744 = vmatprep.subr.bf16.mxu1 %v4668_v15  ;;  %v5311_v15 = vld [vmem:[%s5939_s2] ss:$0 sm:$0xff] }
  0xc5   : > { %4281 = vmatmul.mubr.bf16.gmra.mrb[4].mxu1 %v4651_v16 }
  0xc6   : > { %4284 = vmatprep.mubr.bf16.mxu1 %v4652_v18  ;;  %3745 = vmatpush3.bf16.msra.mxu1 %v4669_v19 }
  0xc7   : > { %3746 = vmatprep.subr.bf16.mxu1 %v4670_v22 }
  0xca   : > { %3747 = vmatpush3.bf16.msra.mxu1 %v4671_v24 }
  0xcb   : > { %3748 = vmatprep.subr.bf16.mxu1 %v4672_v25 }
  0xcd   : > { %4285 = vmatmul.mubr.bf16.gmra.mrb[8].mxu1 %v4653_v28 }
  0xce   : > { %4288 = vmatprep.mubr.bf16.mxu1 %v4654_v30  ;;  %3749 = vmatpush3.bf16.msra.mxu1 %v4673_v31 }
  0xcf   : > { %3750 = vmatprep.subr.bf16.mxu1 %v4674_v32 }
  0xd2   : > { %3751 = vmatpush3.bf16.msra.mxu1 %v4675_v33 }
  0xd3   : > { %3752 = vmatprep.subr.bf16.mxu1 %v4680_v34 }
  0xd5   : > { %4289 = vmatmul.mubr.bf16.gmra.mrb[12].mxu1 %v4655_v35 }
  0xd6   : > { %4292 = vmatprep.mubr.bf16.mxu1 %v4656_v36  ;;  %3753 = vmatpush3.bf16.msra.mxu1 %v4681_v37 }
  0xd7   : > { %3754 = vmatprep.subr.bf16.mxu1 %v4686_v47 }
  0xda   : > { %3755 = vmatpush3.bf16.msra.mxu1 %v4687_v49 }
  0xdb   : > { %3964 = vmatprep.subr.bf16.mxu1 %v4692_v58 }
  0xdd   : > { %4293 = vmatmul.mubr.bf16.gmra.mrb[16].mxu1 %v4657_v38 }
  0xde   : > { %4296 = vmatprep.mubr.bf16.mxu1 %v4658_v39 }
  0xe5   : > { %4297 = vmatmul.mubr.bf16.gmra.mrb[20].mxu1 %v4659_v40 }
  0xe6   : > { %4300 = vmatprep.mubr.bf16.mxu1 %v4660_v41  ;;  %v974_v41 = vld [vmem:[#allocation2 + $0x2] sm:$0xff] }
  0xed   : > { %4301 = vmatmul.mubr.bf16.gmra.mrb[24].mxu1 %v4661_v42  ;;  %v975_v42 = vld [vmem:[#allocation2 + $0xa] sm:$0xff] }
  0xee   : > { %4304 = vmatprep.mubr.bf16.mxu1 %v4662_v43  ;;  %v1006_v47 = vpack.c.bf16 %v975_v42, %v974_v41 }
  0xf5   : > { %4305 = vmatmul.mubr.bf16.gmra.mrb[28].mxu1 %v4663_v44 }
  0xf6   : > { %1926 = vmatprep.mubr.bf16.mxu1 %v958_v53  ;;  %v4705_v53 = vld [vmem:[#allocation8 + $0x180] sm:$0xff]  }
  0xfd   : > { %1927 = vmatmul.mubr.bf16.vlgmr.msra.gmra.mrb[32].mxu1 %v910_v56 }
  0xfe   : > { %3965 = vmatpush3.bf16.msra.mxu1 %v4694_v60 }
  0xff   : > { %3966 = vmatprep.subr.bf16.mxu1 %v4698_v0 }
 0x102   : > { %3967 = vmatpush3.bf16.msra.mxu1 %v4699_v1 }
 0x103   : > { %3968 = vmatprep.subr.bf16.mxu1 %v4700_v2  ;;  %v4709_v2 = vld [vmem:[#allocation8 + $0x188] sm:$0xff]  }
 0x106   : > { %3969 = vmatpush3.bf16.msra.mxu1 %v4701_v3 }
 0x107   : > { %3970 = vmatprep.subr.bf16.mxu1 %v4702_v4 }
 0x10a   : > { %3971 = vmatpush3.bf16.msra.mxu1 %v4703_v5  ;;  %v4712_v5 = vld [vmem:[#allocation8 + $0x1d0] sm:$0xff]  }
 0x10b   : > { %3972 = vmatprep.subr.bf16.mxu1 %v4706_v7 }
 0x10e   : > { %3973 = vmatpush3.bf16.msra.mxu1 %v4707_v8 }
 0x10f   : > { %3974 = vmatprep.subr.bf16.mxu1 %v4710_v9 }
 0x112   : > { %3975 = vmatpush3.bf16.msra.mxu1 %v4711_v10 }
 0x113   : > { %3976 = vmatprep.subr.bf16.mxu1 %v4714_v11 }
 0x116   : > { %3977 = vmatpush3.bf16.msra.mxu1 %v4715_v12 }
 0x117   : > { %3978 = vmatprep.subr.bf16.mxu1 %v4718_v13 }
 0x11a   : > { %3979 = vmatpush3.bf16.msra.mxu1 %v4719_v14  ;;  %v4713_v14 = vld [vmem:[#allocation8 + $0x190] sm:$0xff]  }
 0x11b   : > { %4308 = vmatprep.subr.bf16.mxu1 %v5317_v26 }
 0x190   : > { %v4278_v16 = vpop.f32.mrb[0].mxu1 }
 0x191   : > { %v652_v17 = vadd.f32 %v4278_v16, %v5311_v15  ;;  %v643_v18 = vpop.f32.mrb[1].mxu1 }
 0x192   : > { %v644_v19 = vadd.f32 %v5311_v15, %v643_v18  ;;  %v4279_v20 = vpop.f32.mrb[2].mxu1 }
 0x193   : > { %v772_v21 = vmax.f32 %v652_v17, 0.0  ;;  %v655_v22 = vadd.f32 %v4279_v20, %v5311_v15  ;;  %v646_v23 = vpop.f32.mrb[3].mxu1 }
 0x194   : > { %v770_v24 = vmax.f32 %v644_v19, 0.0  ;;  %v647_v25 = vadd.f32 %v5311_v15, %v646_v23  ;;  %v4716_v19 = vld [vmem:[#allocation8 + $0x1d8] sm:$0xff]  }
 0x195   : > { %848 = vst [vmem:[#allocation2 + $0x31] sm:$0xff] %v772_v21  ;;  %v773_v27 = vmax.f32 %v655_v22, 0.0 }
 0x196   : > { %846 = vst [vmem:[#allocation2 + $0x19] sm:$0xff] %v770_v24  ;;  %v771_v28 = vmax.f32 %v647_v25, 0.0 }
 0x197   : > { %849 = vst [vmem:[#allocation2 + $0x39] sm:$0xff] %v773_v27  ;;  %v960_v29 = vpack.c.bf16 %v773_v27, %v772_v21 }
 0x198   : > { %847 = vst [vmem:[#allocation2 + $0x21] sm:$0xff] %v771_v28  ;;  %v4282_v30 = vpop.f32.mrb[4].mxu1  ;;  %v959_v31 = vpack.c.bf16 %v771_v28, %v770_v24  ;;  %v4717_v28 = vld [vmem:[#allocation8 + $0x198] sm:$0xff]  }
 0x199   : > { %v668_v32 = vadd.f32 %v4282_v30, %v5311_v15  ;;  %v659_v33 = vpop.f32.mrb[5].mxu1  ;;  %v4720_v30 = vld [vmem:[#allocation8 + $0x1e0] sm:$0xff]  }
 0x19a   : > { %v660_v34 = vadd.f32 %v5311_v15, %v659_v33  ;;  %v4283_v35 = vpop.f32.mrb[6].mxu1  ;;  %1934 = vmatprep.mubr.bf16.mxu1 %v959_v31 }
 0x19b   : > { %v776_v36 = vmax.f32 %v668_v32, 0.0  ;;  %v671_v37 = vadd.f32 %v4283_v35, %v5311_v15  ;;  %v662_v38 = vpop.f32.mrb[7].mxu1 }
 0x19c   : > { %v774_v39 = vmax.f32 %v660_v34, 0.0  ;;  %v663_v40 = vadd.f32 %v5311_v15, %v662_v38  ;;  %v1024_v54 = vld [vmem:[#allocation2 + $0x30] sm:$0xff] }
 0x19d   : > { %852 = vst [vmem:[#allocation2 + $0x61] sm:$0xff] %v776_v36  ;;  %v777_v43 = vmax.f32 %v671_v37, 0.0  ;;  %v1022_v45 = vld [vmem:[#allocation2 + $0x18] sm:$0xff] }
 0x19e   : > { %850 = vst [vmem:[#allocation2 + $0x49] sm:$0xff] %v774_v39  ;;  %v5324_v44 = vmax.f32 %v663_v40, 0.0  ;;  %v1025_v48 = vld [vmem:[#allocation2 + $0x38] sm:$0xff] }
 0x19f   : > { %853 = vst [vmem:[#allocation2 + $0x69] sm:$0xff] %v777_v43  ;;  %v1023_v46 = vld [vmem:[#allocation2 + $0x20] sm:$0xff]  ;;  %v5326_v49 = vpack.c.bf16 %v777_v43, %v776_v36  ;;  %v5331_v58 = vpack.c.bf16 %v1025_v48, %v1024_v54  ;;  %v978_v31 = vld [vmem:[#allocation2 + $0x32] sm:$0xff] }
 0x1a0   : > { %851 = vst [vmem:[#allocation2 + $0x51] sm:$0xff] %v5324_v44  ;;  %v1054_v50 = vpack.c.bf16 %v1023_v46, %v1022_v45  ;;  %v4286_v51 = vpop.f32.mrb[8].mxu1  ;;  %v961_v52 = vpack.c.bf16 %v5324_v44, %v774_v39  ;;  %v976_v6 = vld [vmem:[#allocation2 + $0x1a] sm:$0xff]  ;;  %v977_v7 = vld [vmem:[#allocation2 + $0x22] sm:$0xff]  ;;  %v4721_v39 = vld [vmem:[#allocation8 + $0x1a0] sm:$0xff]  }
 0x1a1   : > { %v684_v55 = vadd.f32 %v4286_v51, %v5311_v15  ;;  %v675_v56 = vpop.f32.mrb[9].mxu1  ;;  %v5347_v16 = vpack.c.bf16 %v977_v7, %v976_v6  ;;  %v979_v32 = vld [vmem:[#allocation2 + $0x3a] sm:$0xff]  ;;  %v4727_v7 = vld [vmem:[#allocation8 + $0x1f8] sm:$0xff]  }
 0x1a2   : > { %2087 = vmatprep.mubr.bf16.mxu0 %v1054_v50  ;;  %1935 = vmatmul.mubr.bf16.gmra.mrb[36].mxu1 %v1054_v50  ;;  %v676_v59 = vadd.f32 %v5311_v15, %v675_v56  ;;  %v4287_v60 = vpop.f32.mrb[10].mxu1  ;;  %v5360_v40 = vpack.c.bf16 %v979_v32, %v978_v31  ;;  %v4722_v43 = vld [vmem:[#allocation8 + $0x1e8] sm:$0xff]  }
 0x1a3   : > { %2088 = vmatmul.mubr.bf16.vlgmr.msra.gmra.mrb[0].mxu0 %v1006_v47  ;;  %1942 = vmatprep.mubr.bf16.mxu1 %v960_v29  ;;  %v780_v61 = vmax.f32 %v684_v55, 0.0  ;;  %v687_v62 = vadd.f32 %v4287_v60, %v5311_v15  ;;  %v678_v63 = vpop.f32.mrb[11].mxu1  ;;  %v4723_v54 = vld [vmem:[#allocation8 + $0x1a8] sm:$0xff]  }
 0x1a4   : > { %2095 = vmatprep.mubr.bf16.mxu0 %v5331_v58  ;;  %v778_v0 = vmax.f32 %v676_v59, 0.0  ;;  %v679_v1 = vadd.f32 %v5311_v15, %v678_v63  ;;  %4077 = vmatpush3.bf16.msra.mxu0 %v4705_v53  ;;  %v1028_v34 = vld [vmem:[#allocation2 + $0x60] sm:$0xff] }
 0x1a5   : > { %856 = vst [vmem:[#allocation2 + $0x91] sm:$0xff] %v780_v61  ;;  %v5337_v3 = vmax.f32 %v687_v62, 0.0  ;;  %v1026_v4 = vld [vmem:[#allocation2 + $0x48] sm:$0xff]  ;;  %4078 = vmatprep.subr.bf16.mxu0 %v4708_v57  ;;  %v4725_v59 = vld [vmem:[#allocation8 + $0x1f0] sm:$0xff]  }
 0x1a6   : > { %854 = vst [vmem:[#allocation2 + $0x79] sm:$0xff] %v778_v0  ;;  %v779_v8 = vmax.f32 %v679_v1, 0.0  ;;  %v1029_v35 = vld [vmem:[#allocation2 + $0x68] sm:$0xff] }
 0x1a7   : > { %857 = vst [vmem:[#allocation2 + $0x99] sm:$0xff] %v5337_v3  ;;  %v1027_v9 = vld [vmem:[#allocation2 + $0x50] sm:$0xff]  ;;  %v5341_v10 = vpack.c.bf16 %v5337_v3, %v780_v61  ;;  %v5364_v45 = vpack.c.bf16 %v1029_v35, %v1028_v34 }
 0x1a8   : > { %v5343_v11 = vpack.c.bf16 %v1027_v9, %v1026_v4  ;;  %855 = vst [vmem:[#allocation2 + $0x81] sm:$0xff] %v779_v8  ;;  %v4290_v12 = vpop.f32.mrb[12].mxu1  ;;  %v5345_v13 = vpack.c.bf16 %v779_v8, %v778_v0  ;;  %4079 = vmatpush3.bf16.msra.mxu0 %v4709_v2  ;;  %v980_v60 = vld [vmem:[#allocation2 + $0x4a] sm:$0xff]  ;;  %v981_v61 = vld [vmem:[#allocation2 + $0x52] sm:$0xff]  ;;  %v4726_v2 = vld [vmem:[#allocation8 + $0x1b0] sm:$0xff]  }
 0x1a9   : > { %v700_v17 = vadd.f32 %v4290_v12, %v5311_v15  ;;  %v691_v18 = vpop.f32.mrb[13].mxu1  ;;  %4080 = vmatprep.subr.bf16.mxu0 %v4712_v5  ;;  %v5378_v4 = vpack.c.bf16 %v981_v61, %v980_v60 }
 0x1aa   : > { %1943 = vmatmul.mubr.bf16.gmra.mrb[40].mxu1 %v5331_v58  ;;  %v692_v20 = vadd.f32 %v5311_v15, %v691_v18  ;;  %v4291_v21 = vpop.f32.mrb[14].mxu1 }
 0x1ab   : > { %2096 = vmatmul.mubr.bf16.gmra.mrb[4].mxu0 %v5347_v16  ;;  %1950 = vmatprep.mubr.bf16.mxu1 %v961_v52  ;;  %v784_v22 = vmax.f32 %v700_v17, 0.0  ;;  %v703_v23 = vadd.f32 %v4291_v21, %v5311_v15  ;;  %v694_v24 = vpop.f32.mrb[15].mxu1 }
 0x1ac   : > { %2103 = vmatprep.mubr.bf16.mxu0 %v5343_v11  ;;  %v782_v25 = vmax.f32 %v692_v20, 0.0  ;;  %v695_v27 = vadd.f32 %v5311_v15, %v694_v24  ;;  %4081 = vmatpush3.bf16.msra.mxu0 %v4713_v14  ;;  %v4728_v20 = vld [vmem:[#allocation8 + $0x1b8] sm:$0xff]  }
 0x1ad   : > { %860 = vst [vmem:[#allocation2 + $0xc1] sm:$0xff] %v784_v22  ;;  %v785_v29 = vmax.f32 %v703_v23, 0.0  ;;  %4082 = vmatprep.subr.bf16.mxu0 %v4716_v19  ;;  %v1030_v55 = vld [vmem:[#allocation2 + $0x78] sm:$0xff]  ;;  %v983_v23 = vld [vmem:[#allocation2 + $0x6a] sm:$0xff] }
 0x1ae   : > { %858 = vst [vmem:[#allocation2 + $0xa9] sm:$0xff] %v782_v25  ;;  %v783_v33 = vmax.f32 %v695_v27, 0.0  ;;  %v1033_v27 = vld [vmem:[#allocation2 + $0x98] sm:$0xff] }
 0x1af   : > { %861 = vst [vmem:[#allocation2 + $0xc9] sm:$0xff] %v785_v29  ;;  %v5356_v36 = vpack.c.bf16 %v785_v29, %v784_v22  ;;  %v1031_v56 = vld [vmem:[#allocation2 + $0x80] sm:$0xff] }
 0x1b0   : > { %859 = vst [vmem:[#allocation2 + $0xb1] sm:$0xff] %v783_v33  ;;  %v4294_v37 = vpop.f32.mrb[16].mxu1  ;;  %v5358_v38 = vpack.c.bf16 %v783_v33, %v782_v25  ;;  %4083 = vmatpush3.bf16.msra.mxu0 %v4717_v28  ;;  %v5374_v63 = vpack.c.bf16 %v1031_v56, %v1030_v55  ;;  %v982_v22 = vld [vmem:[#allocation2 + $0x62] sm:$0xff]  ;;  %v1032_v25 = vld [vmem:[#allocation2 + $0x90] sm:$0xff] }
 0x1b1   : > { %v716_v41 = vadd.f32 %v4294_v37, %v5311_v15  ;;  %v707_v42 = vpop.f32.mrb[17].mxu1  ;;  %4084 = vmatprep.subr.bf16.mxu0 %v4720_v30  ;;  %v5392_v31 = vpack.c.bf16 %v983_v23, %v982_v22  ;;  %v5396_v34 = vpack.c.bf16 %v1033_v27, %v1032_v25 }
 0x1b2   : > { %1951 = vmatmul.mubr.bf16.gmra.mrb[44].mxu1 %v5343_v11  ;;  %v708_v46 = vadd.f32 %v5311_v15, %v707_v42  ;;  %v4295_v47 = vpop.f32.mrb[18].mxu1 }
 0x1b3   : > { %2104 = vmatmul.mubr.bf16.gmra.mrb[8].mxu0 %v5360_v40  ;;  %1958 = vmatprep.mubr.bf16.mxu1 %v5326_v49  ;;  %v788_v48 = vmax.f32 %v716_v41, 0.0  ;;  %v719_v50 = vadd.f32 %v4295_v47, %v5311_v15  ;;  %v710_v51 = vpop.f32.mrb[19].mxu1 }
 0x1b4   : > { %2111 = vmatprep.mubr.bf16.mxu0 %v5364_v45  ;;  %v786_v52 = vmax.f32 %v708_v46, 0.0  ;;  %v711_v53 = vadd.f32 %v5311_v15, %v710_v51  ;;  %4085 = vmatpush3.bf16.msra.mxu0 %v4721_v39  ;;  %v984_v51 = vld [vmem:[#allocation2 + $0x7a] sm:$0xff] }
 0x1b5   : > { %864 = vst [vmem:[#allocation2 + $0xf1] sm:$0xff] %v788_v48  ;;  %v789_v57 = vmax.f32 %v719_v50, 0.0  ;;  %4086 = vmatprep.subr.bf16.mxu0 %v4722_v43  ;;  %v1034_v47 = vld [vmem:[#allocation2 + $0xa8] sm:$0xff] }
 0x1b6   : > { %862 = vst [vmem:[#allocation2 + $0xd9] sm:$0xff] %v786_v52  ;;  %v787_v49 = vmax.f32 %v711_v53, 0.0 }
 0x1b7   : > { %865 = vst [vmem:[#allocation2 + $0xf9] sm:$0xff] %v789_v57  ;;  %v5372_v62 = vpack.c.bf16 %v789_v57, %v788_v48  ;;  %v1035_v48 = vld [vmem:[#allocation2 + $0xb0] sm:$0xff] }
 0x1b8   : > { %863 = vst [vmem:[#allocation2 + $0xe1] sm:$0xff] %v787_v49  ;;  %v4298_v0 = vpop.f32.mrb[20].mxu1  ;;  %v5376_v1 = vpack.c.bf16 %v787_v49, %v786_v52  ;;  %4087 = vmatpush3.bf16.msra.mxu0 %v4723_v54  ;;  %v985_v52 = vld [vmem:[#allocation2 + $0x82] sm:$0xff]  ;;  %v5406_v55 = vpack.c.bf16 %v1035_v48, %v1034_v47  ;;  %v988_v25 = vld [vmem:[#allocation2 + $0xaa] sm:$0xff]  ;;  %v989_v27 = vld [vmem:[#allocation2 + $0xb2] sm:$0xff] }
 0x1b9   : > { %v732_v5 = vadd.f32 %v4298_v0, %v5311_v15  ;;  %v723_v6 = vpop.f32.mrb[21].mxu1  ;;  %4088 = vmatprep.subr.bf16.mxu0 %v4725_v59  ;;  %v5410_v59 = vpack.c.bf16 %v985_v52, %v984_v51 }
 0x1ba   : > { %1959 = vmatmul.mubr.bf16.gmra.mrb[48].mxu1 %v5364_v45  ;;  %v724_v8 = vadd.f32 %v5311_v15, %v723_v6  ;;  %v4299_v9 = vpop.f32.mrb[22].mxu1 }
 0x1bb   : > { %2112 = vmatmul.mubr.bf16.gmra.mrb[12].mxu0 %v5378_v4  ;;  %1966 = vmatprep.mubr.bf16.mxu1 %v5345_v13  ;;  %v792_v12 = vmax.f32 %v732_v5, 0.0  ;;  %v735_v14 = vadd.f32 %v4299_v9, %v5311_v15  ;;  %v726_v17 = vpop.f32.mrb[23].mxu1 }
 0x1bc   : > { %2119 = vmatprep.mubr.bf16.mxu0 %v5374_v63  ;;  %v790_v18 = vmax.f32 %v724_v8, 0.0  ;;  %v727_v19 = vadd.f32 %v5311_v15, %v726_v17  ;;  %4089 = vmatpush3.bf16.msra.mxu0 %v4726_v2 }
 0x1bd   : > { %868 = vst [vmem:[#allocation2 + $0x121] sm:$0xff] %v792_v12  ;;  %v793_v21 = vmax.f32 %v735_v14, 0.0  ;;  %4090 = vmatprep.subr.bf16.mxu0 %v4727_v7  ;;  %v987_v14 = vld [vmem:[#allocation2 + $0x9a] sm:$0xff] }
 0x1be   : > { %866 = vst [vmem:[#allocation2 + $0x109] sm:$0xff] %v790_v18  ;;  %v791_v24 = vmax.f32 %v727_v19, 0.0  ;;  %v1037_v19 = vld [vmem:[#allocation2 + $0xc8] sm:$0xff] }
 0x1bf   : > { %869 = vst [vmem:[#allocation2 + $0x129] sm:$0xff] %v793_v21  ;;  %v5388_v28 = vpack.c.bf16 %v793_v21, %v792_v12  ;;  %v986_v12 = vld [vmem:[#allocation2 + $0x92] sm:$0xff]  ;;  %v992_v47 = vld [vmem:[#allocation2 + $0xda] sm:$0xff]  ;;  %v993_v48 = vld [vmem:[#allocation2 + $0xe2] sm:$0xff] }
 0x1c0   : > { %867 = vst [vmem:[#allocation2 + $0x111] sm:$0xff] %v791_v24  ;;  %v4302_v29 = vpop.f32.mrb[24].mxu1  ;;  %v5390_v30 = vpack.c.bf16 %v791_v24, %v790_v18  ;;  %4091 = vmatpush3.bf16.msra.mxu0 %v4728_v20  ;;  %v1036_v18 = vld [vmem:[#allocation2 + $0xc0] sm:$0xff]  ;;  %v5424_v22 = vpack.c.bf16 %v987_v14, %v986_v12  ;;  %v5450_v51 = vpack.c.bf16 %v993_v48, %v992_v47 }
 0x1c1   : > { %v748_v32 = vadd.f32 %v4302_v29, %v5311_v15  ;;  %v739_v33 = vpop.f32.mrb[25].mxu1  ;;  %v5427_v23 = vpack.c.bf16 %v1037_v19, %v1036_v18  ;;  %v1039_v24 = vld [vmem:[#allocation2 + $0xe0] sm:$0xff] }
 0x1c2   : > { %1967 = vmatmul.mubr.bf16.gmra.mrb[52].mxu1 %v5374_v63  ;;  %v740_v35 = vadd.f32 %v5311_v15, %v739_v33  ;;  %v4303_v37 = vpop.f32.mrb[26].mxu1  ;;  %v990_v33 = vld [vmem:[#allocation2 + $0xc2] sm:$0xff] }
 0x1c3   : > { %2120 = vmatmul.mubr.bf16.gmra.mrb[16].mxu0 %v5392_v31  ;;  %1974 = vmatprep.mubr.bf16.mxu1 %v5341_v10  ;;  %v796_v39 = vmax.f32 %v748_v32, 0.0  ;;  %v751_v41 = vadd.f32 %v4303_v37, %v5311_v15  ;;  %v742_v42 = vpop.f32.mrb[27].mxu1  ;;  %v5434_v32 = vpack.c.bf16 %v989_v27, %v988_v25  ;;  %v1040_v37 = vld [vmem:[#allocation2 + $0xf0] sm:$0xff] }
 0x1c4   : > { %2127 = vmatprep.mubr.bf16.mxu0 %v5396_v34  ;;  %v794_v43 = vmax.f32 %v740_v35, 0.0  ;;  %v743_v46 = vadd.f32 %v5311_v15, %v742_v42  ;;  %v991_v35 = vld [vmem:[#allocation2 + $0xca] sm:$0xff] }
 0x1c5   : > { %872 = vst [vmem:[#allocation2 + $0x151] sm:$0xff] %v796_v39  ;;  %v797_v50 = vmax.f32 %v751_v41, 0.0  ;;  %v5440_v41 = vpack.c.bf16 %v991_v35, %v990_v33 }
 0x1c6   : > { %870 = vst [vmem:[#allocation2 + $0x139] sm:$0xff] %v794_v43  ;;  %v795_v53 = vmax.f32 %v743_v46, 0.0 }
 0x1c7   : > { %873 = vst [vmem:[#allocation2 + $0x159] sm:$0xff] %v797_v50  ;;  %v5404_v54 = vpack.c.bf16 %v797_v50, %v796_v39  ;;  %v1041_v39 = vld [vmem:[#allocation2 + $0xf8] sm:$0xff]  ;;  %v1043_v46 = vld [vmem:[#allocation2 + $0x110] sm:$0xff] }
 0x1c8   : > { %871 = vst [vmem:[#allocation2 + $0x141] sm:$0xff] %v795_v53  ;;  %v4306_v56 = vpop.f32.mrb[28].mxu1  ;;  %v5408_v57 = vpack.c.bf16 %v795_v53, %v794_v43  ;;  %v5443_v42 = vpack.c.bf16 %v1041_v39, %v1040_v37  ;;  %v1042_v43 = vld [vmem:[#allocation2 + $0x108] sm:$0xff] }
 0x1c9   : > { %v764_v60 = vadd.f32 %v4306_v56, %v5311_v15  ;;  %v755_v61 = vpop.f32.mrb[29].mxu1  ;;  %v5448_v50 = vpack.c.bf16 %v1043_v46, %v1042_v43  ;;  %v996_v14 = vld [vmem:[#allocation2 + $0x10a] sm:$0xff] }
 0x1ca   : > { %1975 = vmatmul.mubr.bf16.gmra.mrb[56].mxu1 %v5396_v34  ;;  %v756_v49 = vadd.f32 %v5311_v15, %v755_v61  ;;  %v4307_v0 = vpop.f32.mrb[30].mxu1 }
 0x1cb   : > { %2128 = vmatmul.mubr.bf16.gmra.mrb[20].mxu0 %v5410_v59  ;;  %1982 = vmatprep.mubr.bf16.mxu1 %v5358_v38  ;;  %v800_v2 = vmax.f32 %v764_v60, 0.0  ;;  %v767_v5 = vadd.f32 %v4307_v0, %v5311_v15  ;;  %v758_v6 = vpop.f32.mrb[31].mxu1  ;;  %v995_v0 = vld [vmem:[#allocation2 + $0xfa] sm:$0xff] }
 0x1cc   : > { %2135 = vmatprep.mubr.bf16.mxu0 %v5406_v55  ;;  %v798_v7 = vmax.f32 %v756_v49, 0.0  ;;  %v759_v8 = vadd.f32 %v5311_v15, %v758_v6  ;;  %v1038_v15 = vld [vmem:[#allocation2 + $0xd8] sm:$0xff]  ;;  %v1045_v6 = vld [vmem:[#allocation2 + $0x128] sm:$0xff]  ;;  %v1048_v25 = vld [vmem:[#allocation2 + $0x150] sm:$0xff] }
 0x1cd   : > { %876 = vst [vmem:[#allocation2 + $0x181] sm:$0xff] %v800_v2  ;;  %v801_v9 = vmax.f32 %v767_v5, 0.0  ;;  %v5432_v29 = vpack.c.bf16 %v1039_v24, %v1038_v15  ;;  %v994_v49 = vld [vmem:[#allocation2 + $0xf2] sm:$0xff]  ;;  %v1044_v5 = vld [vmem:[#allocation2 + $0x120] sm:$0xff]  ;;  %v999_v24 = vld [vmem:[#allocation2 + $0x12a] sm:$0xff] }
 0x1ce   : > { %874 = vst [vmem:[#allocation2 + $0x169] sm:$0xff] %v798_v7  ;;  %v799_v17 = vmax.f32 %v759_v8, 0.0  ;;  %v5463_v8 = vpack.c.bf16 %v1045_v6, %v1044_v5  ;;  %v998_v15 = vld [vmem:[#allocation2 + $0x122] sm:$0xff]  ;;  %v1049_v27 = vld [vmem:[#allocation2 + $0x158] sm:$0xff] }
 0x1cf   : > { %877 = vst [vmem:[#allocation2 + $0x189] sm:$0xff] %v801_v9  ;;  %v5420_v20 = vpack.c.bf16 %v801_v9, %v800_v2  ;;  %v1046_v9 = vld [vmem:[#allocation2 + $0x138] sm:$0xff]  ;;  %v1047_v12 = vld [vmem:[#allocation2 + $0x140] sm:$0xff]  ;;  %v5476_v33 = vpack.c.bf16 %v999_v24, %v998_v15  ;;  %v5479_v35 = vpack.c.bf16 %v1049_v27, %v1048_v25 }
 0x1d0   : > { %875 = vst [vmem:[#allocation2 + $0x171] sm:$0xff] %v799_v17  ;;  %v5422_v21 = vpack.c.bf16 %v799_v17, %v798_v7  ;;  %v3756_v52 = vpop.f32.mrb[32].mxu1  ;;  %v5460_v7 = vpack.c.bf16 %v995_v0, %v994_v49  ;;  %v997_v17 = vld [vmem:[#allocation2 + $0x112] sm:$0xff]  ;;  %v5468_v18 = vpack.c.bf16 %v1047_v12, %v1046_v9  ;;  %v1000_v43 = vld [vmem:[#allocation2 + $0x13a] sm:$0xff]  ;;  %v1001_v46 = vld [vmem:[#allocation2 + $0x142] sm:$0xff] }
 0x1d1   : > { %v3757_v53 = vpop.f32.mrb[33].mxu1  ;;  %v5470_v19 = vpack.c.bf16 %v997_v17, %v996_v14  ;;  %v5486_v48 = vpack.c.bf16 %v1001_v46, %v1000_v43  ;;  %v1071_v5 = vld [vmem:[#allocation2 + $0x21] sm:$0xff]  ;;  %v1070_v12 = vld [vmem:[#allocation2 + $0x19] sm:$0xff]  ;;  %v1215_v24 = vld [vmem:[#allocation2 + $0x31] sm:$0xff] }
 0x1d2   : > { %1983 = vmatmul.mubr.bf16.gmra.mrb[60].mxu1 %v5406_v55  ;;  %v5456_v56 = vadd.f32 %v3757_v53, %v3756_v52  ;;  %v3759_v60 = vpop.f32.mrb[34].mxu1  ;;  %v1002_v52 = vld [vmem:[#allocation2 + $0x152] sm:$0xff]  ;;  %v1003_v53 = vld [vmem:[#allocation2 + $0x15a] sm:$0xff]  ;;  %v1102_v17 = vpack.c.bf16 %v1071_v5, %v1070_v12 }
 0x1d3   : > { %2136 = vmatmul.mubr.bf16.gmra.mrb[24].mxu0 %v5424_v22  ;;  %1990 = vmatprep.mubr.bf16.mxu1 %v5356_v36  ;;  %v3760_v61 = vpop.f32.mrb[35].mxu1  ;;  %v5492_v49 = vpack.c.bf16 %v1003_v53, %v1002_v52  ;;  %v1216_v14 = vld [vmem:[#allocation2 + $0x39] sm:$0xff]  ;;  %v1219_v46 = vld [vmem:[#allocation2 + $0x61] sm:$0xff] }
 0x1d4   : > { %2143 = vmatprep.mubr.bf16.mxu0 %v5427_v23  ;;  %v5458_v2 = vadd.f32 %v3760_v61, %v3759_v60  ;;  %v1052_v60 = vld [vmem:[#allocation2 + $0x180] sm:$0xff]  ;;  %v4729_v25 = vld [vmem:[#allocation8 + $0x208] sm:$0xff]   ;;  %v1247_v27 = vpack.c.bf16 %v1216_v14, %v1215_v24 }
 0x1d5   : > { %v1050_v37 = vld [vmem:[#allocation2 + $0x168] sm:$0xff]  ;;  %v4733_v52 = vld [vmem:[#allocation8 + $0x228] sm:$0xff]  }
 0x1d6   : > { %v1053_v61 = vld [vmem:[#allocation2 + $0x188] sm:$0xff] }
 0x1d7   : > { %v1051_v39 = vld [vmem:[#allocation2 + $0x170] sm:$0xff]  ;;  %v5495_v0 = vpack.c.bf16 %v1053_v61, %v1052_v60 }
 0x1d8   : > { %v5484_v47 = vpack.c.bf16 %v1051_v39, %v1050_v37  ;;  %v1004_v6 = vld [vmem:[#allocation2 + $0x16a] sm:$0xff]  ;;  %v1005_v9 = vld [vmem:[#allocation2 + $0x172] sm:$0xff] }
 0x1d9   : > { %v5500_v15 = vpack.c.bf16 %v1005_v9, %v1004_v6  ;;  %v1217_v37 = vld [vmem:[#allocation2 + $0x49] sm:$0xff] }
 0x1da   : > { %1991 = vmatmul.mubr.bf16.gmra.mrb[64].mxu1 %v5427_v23  ;;  %v4731_v39 = vld [vmem:[#allocation8 + $0x218] sm:$0xff]   ;;  %v1248_v43 = vpack.c.bf16 %v5324_v44, %v1217_v37  ;;  %v4734_v44 = vld [vmem:[#allocation8 + $0x230] sm:$0xff]  }
 0x1db   : > { %2144 = vmatmul.mubr.bf16.gmra.mrb[28].mxu0 %v5434_v32  ;;  %1998 = vmatprep.mubr.bf16.mxu1 %v5376_v1  ;;  %v1148_v9 = vld [vmem:[#allocation2 + $0x182] sm:$0xff]  ;;  %v1149_v12 = vld [vmem:[#allocation2 + $0x18a] sm:$0xff] }
 0x1dc   : > { %2151 = vmatprep.mubr.bf16.mxu0 %v5432_v29 }
 0x1e2   : > { %1999 = vmatmul.mubr.bf16.gmra.mrb[68].mxu1 %v5432_v29 }
 0x1e3   : > { %2152 = vmatmul.mubr.bf16.gmra.mrb[32].mxu0 %v5440_v41  ;;  %2006 = vmatprep.mubr.bf16.mxu1 %v5372_v62 }
 0x1e4   : > { %2159 = vmatprep.mubr.bf16.mxu0 %v5443_v42 }
 0x1ea   : > { %2007 = vmatmul.mubr.bf16.gmra.mrb[72].mxu1 %v5443_v42 }
 0x1eb   : > { %2160 = vmatmul.mubr.bf16.gmra.mrb[36].mxu0 %v5450_v51  ;;  %2014 = vmatprep.mubr.bf16.mxu1 %v5390_v30 }
 0x1ec   : > { %2167 = vmatprep.mubr.bf16.mxu0 %v5448_v50 }
 0x1f2   : > { %2015 = vmatmul.mubr.bf16.gmra.mrb[76].mxu1 %v5448_v50 }
 0x1f3   : > { %2168 = vmatmul.mubr.bf16.gmra.mrb[40].mxu0 %v5460_v7  ;;  %2022 = vmatprep.mubr.bf16.mxu1 %v5388_v28 }
 0x1f4   : > { %2175 = vmatprep.mubr.bf16.mxu0 %v5463_v8 }
 0x1fa   : > { %2023 = vmatmul.mubr.bf16.gmra.mrb[80].mxu1 %v5463_v8 }
 0x1fb   : > { %2176 = vmatmul.mubr.bf16.gmra.mrb[44].mxu0 %v5470_v19  ;;  %2030 = vmatprep.mubr.bf16.mxu1 %v5408_v57 }
 0x1fc   : > { %2183 = vmatprep.mubr.bf16.mxu0 %v5468_v18 }
 0x202   : > { %2031 = vmatmul.mubr.bf16.gmra.mrb[84].mxu1 %v5468_v18 }
 0x203   : > { %2184 = vmatmul.mubr.bf16.gmra.mrb[48].mxu0 %v5476_v33  ;;  %2038 = vmatprep.mubr.bf16.mxu1 %v5404_v54 }
 0x204   : > { %2191 = vmatprep.mubr.bf16.mxu0 %v5479_v35 }
 0x20a   : > { %2039 = vmatmul.mubr.bf16.gmra.mrb[88].mxu1 %v5479_v35 }
 0x20b   : > { %2192 = vmatmul.mubr.bf16.gmra.mrb[52].mxu0 %v5486_v48  ;;  %2046 = vmatprep.mubr.bf16.mxu1 %v5422_v21 }
 0x20c   : > { %2199 = vmatprep.mubr.bf16.mxu0 %v5484_v47 }
 0x212   : > { %2047 = vmatmul.mubr.bf16.gmra.mrb[92].mxu1 %v5484_v47 }
 0x213   : > { %2200 = vmatmul.mubr.bf16.gmra.mrb[56].mxu0 %v5492_v49  ;;  %2248 = vmatprep.mubr.bf16.mxu1 %v5347_v16  ;;  %v4730_v16 = vld [vmem:[#allocation8 + $0x210] sm:$0xff]  }
 0x214   : > { %2207 = vmatprep.mubr.bf16.mxu0 %v5495_v0 }
 0x21a   : > { %2249 = vmatmul.mubr.bf16.vlgmr.msra.gmra.mrb[96].mxu1 %v1102_v17 }
 0x21b   : > { %2208 = vmatmul.mubr.bf16.gmra.mrb[60].mxu0 %v5500_v15  ;;  %4309 = vmatpush3.bf16.msra.mxu1 %v5317_v26  ;;  %v4732_v26 = vld [vmem:[#allocation8 + $0x220] sm:$0xff]  }
 0x21c   : > { %2256 = vmatprep.mubr.bf16.mxu1 %v5360_v40  ;;  %2409 = vmatprep.mubr.bf16.mxu0 %v1247_v27  ;;  %v1220_v40 = vld [vmem:[#allocation2 + $0x69] sm:$0xff] }
 0x21d   : > { %4310 = vmatprep.subr.bf16.mxu1 %v4729_v25  ;;  %v1249_v53 = vpack.c.bf16 %v1220_v40, %v1219_v46 }
 0x21f   : > { %4311 = vmatpush3.bf16.msra.mxu1 %v4729_v25 }
 0x220   : > { %4312 = vmatprep.subr.bf16.mxu1 %v4730_v16 }
 0x222   : > { %2257 = vmatmul.mubr.bf16.gmra.mrb[100].mxu1 %v1247_v27 }
 0x223   : > { %2410 = vmatmul.mubr.bf16.vlgmr.msra.gmra.mrb[64].mxu0 %v5331_v58  ;;  %2264 = vmatprep.mubr.bf16.mxu1 %v5378_v4  ;;  %v4735_v58 = vld [vmem:[#allocation8 + $0x238] sm:$0xff]  }
 0x224   : > { %2417 = vmatprep.mubr.bf16.mxu0 %v1248_v43  ;;  %4313 = vmatpush3.bf16.msra.mxu1 %v4730_v16 }
 0x225   : > { %4314 = vmatprep.subr.bf16.mxu1 %v4731_v39 }
 0x228   : > { %4315 = vmatpush3.bf16.msra.mxu1 %v4731_v39  ;;  %v4737_v39 = vld [vmem:[#allocation9 + $0x8] sm:$0xff]  }
 0x229   : > { %4316 = vmatprep.subr.bf16.mxu1 %v4732_v26 }
 0x22a   : > { %2265 = vmatmul.mubr.bf16.gmra.mrb[104].mxu1 %v1248_v43 }
 0x22b   : > { %2418 = vmatmul.mubr.bf16.gmra.mrb[68].mxu0 %v5343_v11  ;;  %2272 = vmatprep.mubr.bf16.mxu1 %v5392_v31  ;;  %v1080_v11 = vld [vmem:[#allocation2 + $0x91] sm:$0xff] }
 0x22c   : > { %2425 = vmatprep.mubr.bf16.mxu0 %v1249_v53  ;;  %4317 = vmatpush3.bf16.msra.mxu1 %v4732_v26  ;;  %v1107_v4 = vpack.c.bf16 %v5337_v3, %v1080_v11  ;;  %v5548_v3 = vld [vmem:[%s5941_s4] ss:$0 sm:$0xff] }
 0x22d   : > { %4318 = vmatprep.subr.bf16.mxu1 %v4733_v52 }
 0x230   : > { %4319 = vmatpush3.bf16.msra.mxu1 %v4733_v52 }
 0x231   : > { %4320 = vmatprep.subr.bf16.mxu1 %v4734_v44 }
 0x232   : > { %2273 = vmatmul.mubr.bf16.gmra.mrb[108].mxu1 %v1249_v53  ;;  %v1245_v53 = vld [vmem:[#allocation2 + $0x199] sm:$0xff] }
 0x233   : > { %2426 = vmatmul.mubr.bf16.gmra.mrb[72].mxu0 %v5364_v45  ;;  %2280 = vmatprep.mubr.bf16.mxu1 %v5410_v59  ;;  %v1932_v59 = vadd.f32 %v5458_v2, %v5548_v3 }
 0x234   : > { %2433 = vmatprep.mubr.bf16.mxu0 %v5345_v13  ;;  %4321 = vmatpush3.bf16.msra.mxu1 %v4734_v44  ;;  %v1246_v44 = vld [vmem:[#allocation2 + $0x1a1] sm:$0xff] }
 0x235   : > { %4322 = vmatprep.subr.bf16.mxu1 %v4735_v58 }
 0x238   : > { %4323 = vmatpush3.bf16.msra.mxu1 %v4735_v58 }
 0x23a   : > { %2281 = vmatmul.mubr.bf16.gmra.mrb[112].mxu1 %v5345_v13 }
 0x23b   : > { %2434 = vmatmul.mubr.bf16.gmra.mrb[76].mxu0 %v5374_v63  ;;  %2288 = vmatprep.mubr.bf16.mxu1 %v5424_v22  ;;  %v1929_v63 = vadd.f32 %v5456_v56, %v5548_v3 }
 0x23c   : > { %2441 = vmatprep.mubr.bf16.mxu0 %v5341_v10 }
 0x242   : > { %2289 = vmatmul.mubr.bf16.gmra.mrb[116].mxu1 %v1107_v4  ;;  %v1263_v4 = vld [vmem:[#allocation2 + $0x32] sm:$0xff] }
 0x243   : > { %2442 = vmatmul.mubr.bf16.gmra.mrb[80].mxu0 %v5396_v34  ;;  %2296 = vmatprep.mubr.bf16.mxu1 %v5434_v32 }
 0x244   : > { %2449 = vmatprep.mubr.bf16.mxu0 %v5358_v38 }
 0x24a   : > { %2297 = vmatmul.mubr.bf16.gmra.mrb[120].mxu1 %v5358_v38 }
 0x24b   : > { %2450 = vmatmul.mubr.bf16.gmra.mrb[84].mxu0 %v5406_v55  ;;  %2304 = vmatprep.mubr.bf16.mxu1 %v5440_v41  ;;  %v4736_v55 = vld [vmem:[#allocation9] sm:$0xff]  }
 0x24c   : > { %2457 = vmatprep.mubr.bf16.mxu0 %v5356_v36  ;;  %4356 = vmatprep.subr.bf16.mxu0 %v4736_v55 }
 0x24d   : > { %4357 = vmatpush3.bf16.msra.mxu0 %v4736_v55 }
 0x24e   : > { %4358 = vmatprep.subr.bf16.mxu0 %v4737_v39 }
 0x251   : > { %4359 = vmatpush3.bf16.msra.mxu0 %v4737_v39  ;;  %v1271_v39 = vld [vmem:[#allocation2 + $0x92] sm:$0xff] }
 0x252   : > { %2305 = vmatmul.mubr.bf16.gmra.mrb[124].mxu1 %v5356_v36 }
 0x253   : > { %2458 = vmatmul.mubr.bf16.gmra.mrb[88].mxu0 %v5427_v23  ;;  %2312 = vmatprep.mubr.bf16.mxu1 %v5450_v51 }
 0x254   : > { %2465 = vmatprep.mubr.bf16.mxu0 %v5376_v1 }
 0x25a   : > { %2313 = vmatmul.mubr.bf16.gmra.mrb[128].mxu1 %v5376_v1 }
 0x25b   : > { %2466 = vmatmul.mubr.bf16.gmra.mrb[92].mxu0 %v5432_v29  ;;  %2320 = vmatprep.mubr.bf16.mxu1 %v5460_v7 }
 0x25c   : > { %2473 = vmatprep.mubr.bf16.mxu0 %v5372_v62 }
 0x262   : > { %2321 = vmatmul.mubr.bf16.gmra.mrb[132].mxu1 %v5372_v62 }
 0x263   : > { %2474 = vmatmul.mubr.bf16.gmra.mrb[96].mxu0 %v5443_v42  ;;  %2328 = vmatprep.mubr.bf16.mxu1 %v5470_v19 }
 0x264   : > { %2481 = vmatprep.mubr.bf16.mxu0 %v5390_v30 }
 0x26a   : > { %2329 = vmatmul.mubr.bf16.gmra.mrb[136].mxu1 %v5390_v30 }
 0x26b   : > { %2482 = vmatmul.mubr.bf16.gmra.mrb[100].mxu0 %v5448_v50  ;;  %2336 = vmatprep.mubr.bf16.mxu1 %v5476_v33 }
 0x26c   : > { %2489 = vmatprep.mubr.bf16.mxu0 %v5388_v28 }
 0x272   : > { %2337 = vmatmul.mubr.bf16.gmra.mrb[140].mxu1 %v5388_v28 }
 0x273   : > { %2490 = vmatmul.mubr.bf16.gmra.mrb[104].mxu0 %v5463_v8  ;;  %2344 = vmatprep.mubr.bf16.mxu1 %v5486_v48 }
 0x274   : > { %2497 = vmatprep.mubr.bf16.mxu0 %v5408_v57 }
 0x275   : > { %v3762_v10 = vpop.f32.mrb[36].mxu1 }
 0x276   : > { %v3868_v13 = vpop.f32.mrb[0].mxu0  ;;  %v3763_v36 = vpop.f32.mrb[37].mxu1 }
 0x277   : > { %v3764_v38 = vadd.f32 %v3763_v36, %v3762_v10  ;;  %v3869_v45 = vpop.f32.mrb[1].mxu0  ;;  %v3765_v62 = vpop.f32.mrb[38].mxu1  ;;  %v1264_v10 = vld [vmem:[#allocation2 + $0x3a] sm:$0xff] }
 0x278   : > { %v3870_v1 = vadd.f32 %v3869_v45, %v3868_v13  ;;  %v3871_v28 = vpop.f32.mrb[2].mxu0  ;;  %v3766_v30 = vpop.f32.mrb[39].mxu1 }
 0x279   : > { %v3767_v31 = vadd.f32 %v3766_v30, %v3765_v62  ;;  %v3872_v34 = vpop.f32.mrb[3].mxu0  ;;  %v1937_v2 = vadd.f32 %v3764_v38, %v5548_v3  ;;  %v1295_v30 = vpack.c.bf16 %v1264_v10, %v1263_v4 }
 0x27a   : > { %v5554_v22 = vadd.f32 %v3870_v1, %v1929_v63  ;;  %v3873_v23 = vadd.f32 %v3872_v34, %v3871_v28  ;;  %2345 = vmatmul.mubr.bf16.gmra.mrb[144].mxu1 %v5408_v57  ;;  %v1262_v63 = vpack.c.bf16 %v1246_v44, %v1245_v53 }
 0x27b   : > { %2498 = vmatmul.mubr.bf16.gmra.mrb[108].mxu0 %v5468_v18  ;;  %2352 = vmatprep.mubr.bf16.mxu1 %v5492_v49  ;;  %v1940_v33 = vadd.f32 %v3767_v31, %v5548_v3 }
 0x27c   : > { %v5559_v29 = vadd.f32 %v3873_v23, %v1932_v59  ;;  %2505 = vmatprep.mubr.bf16.mxu0 %v5404_v54  ;;  %v1197_v23 = vld [vmem:[#allocation2 + $0x198] sm:$0xff] }
 0x27d   : > { %v3768_v32 = vpop.f32.mrb[40].mxu1 }
 0x27e   : > { %v3874_v41 = vpop.f32.mrb[4].mxu0  ;;  %v3769_v42 = vpop.f32.mrb[41].mxu1 }
 0x27f   : > { %v3770_v50 = vadd.f32 %v3769_v42, %v3768_v32  ;;  %v3875_v51 = vpop.f32.mrb[5].mxu0  ;;  %v3771_v56 = vpop.f32.mrb[42].mxu1  ;;  %v1266_v42 = vld [vmem:[#allocation2 + $0x52] sm:$0xff] }
 0x280   : > { %v3876_v7 = vadd.f32 %v3875_v51, %v3874_v41  ;;  %v3877_v57 = vpop.f32.mrb[6].mxu0  ;;  %v3772_v8 = vpop.f32.mrb[43].mxu1  ;;  %v1265_v41 = vld [vmem:[#allocation2 + $0x4a] sm:$0xff] }
 0x281   : > { %v3773_v18 = vadd.f32 %v3772_v8, %v3771_v56  ;;  %v3878_v19 = vpop.f32.mrb[7].mxu0  ;;  %v1945_v25 = vadd.f32 %v3770_v50, %v5548_v3  ;;  %v1267_v56 = vld [vmem:[#allocation2 + $0x62] sm:$0xff] }
 0x282   : > { %v5564_v48 = vadd.f32 %v3876_v7, %v1937_v2  ;;  %v3879_v60 = vadd.f32 %v3878_v19, %v3877_v57  ;;  %2353 = vmatmul.mubr.bf16.gmra.mrb[148].mxu1 %v5404_v54  ;;  %v1268_v2 = vld [vmem:[#allocation2 + $0x6a] sm:$0xff] }
 0x283   : > { %2506 = vmatmul.mubr.bf16.gmra.mrb[112].mxu0 %v5479_v35  ;;  %2360 = vmatprep.mubr.bf16.mxu1 %v5500_v15  ;;  %v5573_v15 = vpack.c.bf16 %v1149_v12, %v1148_v9  ;;  %v1948_v43 = vadd.f32 %v3773_v18, %v5548_v3  ;;  %v4768_v18 = vld [vmem:[#allocation2 + $0x8] sm:$0xff]  ;;  %v1297_v9 = vpack.c.bf16 %v1268_v2, %v1267_v56  ;;  %v4738_v12 = vld [vmem:[#allocation9 + $0x10] sm:$0xff]  }
 0x284   : > { %v5569_v61 = vadd.f32 %v3879_v60, %v1940_v33  ;;  %2513 = vmatprep.mubr.bf16.mxu0 %v5422_v21  ;;  %v1214_v19 = vpack.c.bf16 %v4768_v18, %v1197_v23  ;;  %4360 = vmatprep.subr.bf16.mxu0 %v4738_v12  ;;  %v1276_v23 = vld [vmem:[#allocation2 + $0xca] sm:$0xff] }
 0x285   : > { %v3774_v49 = vpop.f32.mrb[44].mxu1  ;;  %4361 = vmatpush3.bf16.msra.mxu0 %v4738_v12 }
 0x286   : > { %v3880_v5 = vpop.f32.mrb[8].mxu0  ;;  %v3775_v6 = vpop.f32.mrb[45].mxu1 }
 0x287   : > { %v3776_v14 = vadd.f32 %v3775_v6, %v3774_v49  ;;  %v3881_v17 = vpop.f32.mrb[9].mxu0  ;;  %v3777_v24 = vpop.f32.mrb[46].mxu1  ;;  %v1296_v49 = vpack.c.bf16 %v1266_v42, %v1265_v41 }
 0x288   : > { %v3882_v27 = vadd.f32 %v3881_v17, %v3880_v5  ;;  %v3883_v54 = vpop.f32.mrb[10].mxu0  ;;  %v3778_v16 = vpop.f32.mrb[47].mxu1 }
 0x289   : > { %v3779_v35 = vadd.f32 %v3778_v16, %v3777_v24  ;;  %v3884_v37 = vpop.f32.mrb[11].mxu0  ;;  %v1270_v16 = vld [vmem:[#allocation2 + $0x82] sm:$0xff] }
 0x28a   : > { %v5576_v26 = vadd.f32 %v3882_v27, %v1945_v25  ;;  %v3885_v46 = vadd.f32 %v3884_v37, %v3883_v54  ;;  %2361 = vmatmul.mubr.bf16.gmra.mrb[152].mxu1 %v5422_v21  ;;  %v1269_v54 = vld [vmem:[#allocation2 + $0x7a] sm:$0xff] }
 0x28b   : > { %2514 = vmatmul.mubr.bf16.gmra.mrb[116].mxu0 %v5484_v47  ;;  %2368 = vmatprep.mubr.bf16.mxu1 %v5573_v15  ;;  %v1953_v47 = vadd.f32 %v3776_v14, %v5548_v3  ;;  %v1956_v31 = vadd.f32 %v3779_v35, %v5548_v3  ;;  %v1298_v10 = vpack.c.bf16 %v1270_v16, %v1269_v54 }
 0x28c   : > { %v5581_v40 = vadd.f32 %v3885_v46, %v1948_v43  ;;  %2521 = vmatprep.mubr.bf16.mxu0 %v5420_v20  ;;  %v1272_v43 = vld [vmem:[#allocation2 + $0x9a] sm:$0xff] }
 0x28d   : > { %v3780_v52 = vpop.f32.mrb[48].mxu1 }
 0x28e   : > { %v3886_v58 = vpop.f32.mrb[12].mxu0  ;;  %v3781_v11 = vpop.f32.mrb[49].mxu1 }
 0x28f   : > { %v3782_v13 = vadd.f32 %v3781_v11, %v3780_v52  ;;  %v3887_v36 = vpop.f32.mrb[13].mxu0  ;;  %v3783_v21 = vpop.f32.mrb[50].mxu1 }
 0x290   : > { %v3888_v38 = vadd.f32 %v3887_v36, %v3886_v58  ;;  %v3889_v45 = vpop.f32.mrb[14].mxu0  ;;  %v3784_v62 = vpop.f32.mrb[51].mxu1 }
 0x291   : > { %v3785_v1 = vadd.f32 %v3784_v62, %v3783_v21  ;;  %v3890_v28 = vpop.f32.mrb[15].mxu0  ;;  %v1299_v21 = vpack.c.bf16 %v1272_v43, %v1271_v39 }
 0x292   : > { %v5586_v34 = vadd.f32 %v3888_v38, %v1953_v47  ;;  %v3891_v55 = vadd.f32 %v3890_v28, %v3889_v45  ;;  %2369 = vmatmul.mubr.bf16.gmra.mrb[156].mxu1 %v5420_v20  ;;  %v1961_v20 = vadd.f32 %v3782_v13, %v5548_v3  ;;  %v1274_v28 = vld [vmem:[#allocation2 + $0xb2] sm:$0xff] }
 0x293   : > { %2522 = vmatmul.mubr.bf16.gmra.mrb[120].mxu0 %v5495_v0  ;;  %4324 = vmatprep.mubr.bf16.mxu1 %v1295_v30  ;;  %v1964_v14 = vadd.f32 %v3785_v1, %v5548_v3  ;;  %v1273_v1 = vld [vmem:[#allocation2 + $0xaa] sm:$0xff] }
 0x294   : > { %v5590_v59 = vadd.f32 %v3891_v55, %v1956_v31  ;;  %2529 = vmatprep.mubr.bf16.mxu0 %v1262_v63  ;;  %v1275_v55 = vld [vmem:[#allocation2 + $0xc2] sm:$0xff] }
 0x295   : > { %v3786_v32 = vpop.f32.mrb[52].mxu1  ;;  %v1301_v18 = vpack.c.bf16 %v1276_v23, %v1275_v55 }
 0x296   : > { %v3892_v50 = vpop.f32.mrb[16].mxu0  ;;  %v3787_v51 = vpop.f32.mrb[53].mxu1 }
 0x297   : > { %v3788_v7 = vadd.f32 %v3787_v51, %v3786_v32  ;;  %v3893_v57 = vpop.f32.mrb[17].mxu0  ;;  %v3789_v8 = vpop.f32.mrb[54].mxu1 }
 0x298   : > { %v3894_v0 = vadd.f32 %v3893_v57, %v3892_v50  ;;  %v3895_v33 = vpop.f32.mrb[18].mxu0  ;;  %v3790_v60 = vpop.f32.mrb[55].mxu1 }
 0x299   : > { %v3791_v5 = vadd.f32 %v3790_v60, %v3789_v8  ;;  %v3896_v6 = vpop.f32.mrb[19].mxu0  ;;  %v1969_v44 = vadd.f32 %v3788_v7, %v5548_v3  ;;  %v1300_v7 = vpack.c.bf16 %v1274_v28, %v1273_v1  ;;  %v1284_v1 = vld [vmem:[#allocation2 + $0x12a] sm:$0xff] }
 0x29a   : > { %v5594_v17 = vadd.f32 %v3894_v0, %v1961_v20  ;;  %v3897_v24 = vadd.f32 %v3896_v6, %v3895_v33  ;;  %4325 = vmatmul.mubr.bf16.vlgmr.msra.gmra.mrb[160].mxu1 %v1296_v49  ;;  %v1278_v6 = vld [vmem:[#allocation2 + $0xe2] sm:$0xff] }
 0x29b   : > { %2530 = vmatmul.mubr.bf16.gmra.mrb[124].mxu0 %v1214_v19  ;;  %4328 = vmatprep.mubr.bf16.mxu1 %v1297_v9  ;;  %v1972_v47 = vadd.f32 %v3791_v5, %v5548_v3  ;;  %v4739_v19 = vld [vmem:[#allocation9 + $0x18] sm:$0xff]   ;;  %v1277_v5 = vld [vmem:[#allocation2 + $0xda] sm:$0xff] }
 0x29c   : > { %v5596_v25 = vadd.f32 %v3897_v24, %v1964_v14  ;;  %4362 = vmatprep.subr.bf16.mxu0 %v4739_v19  ;;  %v1279_v14 = vld [vmem:[#allocation2 + $0xf2] sm:$0xff]  ;;  %v1280_v24 = vld [vmem:[#allocation2 + $0xfa] sm:$0xff] }
 0x29d   : > { %v3792_v27 = vpop.f32.mrb[56].mxu1  ;;  %4363 = vmatpush3.bf16.msra.mxu0 %v4739_v19 }
 0x29e   : > { %v3898_v35 = vpop.f32.mrb[20].mxu0  ;;  %v3793_v37 = vpop.f32.mrb[57].mxu1 }
 0x29f   : > { %v3794_v46 = vadd.f32 %v3793_v37, %v3792_v27  ;;  %v3899_v52 = vpop.f32.mrb[21].mxu0  ;;  %v3795_v53 = vpop.f32.mrb[58].mxu1 }
 0x2a0   : > { %v3900_v58 = vadd.f32 %v3899_v52, %v3898_v35  ;;  %v3901_v11 = vpop.f32.mrb[22].mxu0  ;;  %v3796_v4 = vpop.f32.mrb[59].mxu1 }
 0x2a1   : > { %v3797_v13 = vadd.f32 %v3796_v4, %v3795_v53  ;;  %v3902_v36 = vpop.f32.mrb[23].mxu0  ;;  %v1977_v50 = vadd.f32 %v3794_v46, %v5548_v3  ;;  %v1302_v46 = vpack.c.bf16 %v1278_v6, %v1277_v5  ;;  %v1287_v6 = vld [vmem:[#allocation2 + $0x152] sm:$0xff] }
 0x2a2   : > { %v5600_v38 = vadd.f32 %v3900_v58, %v1969_v44  ;;  %v3903_v45 = vadd.f32 %v3902_v36, %v3901_v11  ;;  %4329 = vmatmul.mubr.bf16.gmra.mrb[164].mxu1 %v1298_v10  ;;  %v1303_v44 = vpack.c.bf16 %v1280_v24, %v1279_v14  ;;  %v1281_v36 = vld [vmem:[#allocation2 + $0x10a] sm:$0xff] }
 0x2a3   : > { %4332 = vmatprep.mubr.bf16.mxu1 %v1299_v21  ;;  %v1980_v20 = vadd.f32 %v3797_v13, %v5548_v3  ;;  %v1282_v21 = vld [vmem:[#allocation2 + $0x112] sm:$0xff] }
 0x2a4   : > { %v5602_v62 = vadd.f32 %v3903_v45, %v1972_v47 }
 0x2a5   : > { %v3798_v63 = vpop.f32.mrb[60].mxu1 }
 0x2a6   : > { %v3904_v30 = vpop.f32.mrb[24].mxu0  ;;  %v3799_v31 = vpop.f32.mrb[61].mxu1 }
 0x2a7   : > { %v3800_v32 = vadd.f32 %v3799_v31, %v3798_v63  ;;  %v3905_v41 = vpop.f32.mrb[25].mxu0  ;;  %v3801_v42 = vpop.f32.mrb[62].mxu1  ;;  %v1283_v63 = vld [vmem:[#allocation2 + $0x122] sm:$0xff] }
 0x2a8   : > { %v3906_v51 = vadd.f32 %v3905_v41, %v3904_v30  ;;  %v3907_v56 = vpop.f32.mrb[26].mxu0  ;;  %v3802_v2 = vpop.f32.mrb[63].mxu1 }
 0x2a9   : > { %v3803_v57 = vadd.f32 %v3802_v2, %v3801_v42  ;;  %v3908_v8 = vpop.f32.mrb[27].mxu0  ;;  %v1985_v35 = vadd.f32 %v3800_v32, %v5548_v3  ;;  %v1304_v42 = vpack.c.bf16 %v1282_v21, %v1281_v36  ;;  %v4740_v2 = vld [vmem:[#allocation9 + $0x20] sm:$0xff]  }
 0x2aa   : > { %v5606_v0 = vadd.f32 %v3906_v51, %v1977_v50  ;;  %v3909_v33 = vadd.f32 %v3908_v8, %v3907_v56  ;;  %4333 = vmatmul.mubr.bf16.gmra.mrb[168].mxu1 %v1300_v7  ;;  %v1305_v56 = vpack.c.bf16 %v1284_v1, %v1283_v63  ;;  %4364 = vmatprep.subr.bf16.mxu0 %v4740_v2  ;;  %v1290_v36 = vld [vmem:[#allocation2 + $0x172] sm:$0xff] }
 0x2ab   : > { %4336 = vmatprep.mubr.bf16.mxu1 %v1301_v18  ;;  %v1988_v58 = vadd.f32 %v3803_v57, %v5548_v3  ;;  %4365 = vmatpush3.bf16.msra.mxu0 %v4740_v2  ;;  %v1293_v2 = vld [vmem:[#allocation2 + $0x19a] sm:$0xff] }
 0x2ac   : > { %v5608_v60 = vadd.f32 %v3909_v33, %v1980_v20  ;;  %v1285_v20 = vld [vmem:[#allocation2 + $0x13a] sm:$0xff]  ;;  %v1286_v33 = vld [vmem:[#allocation2 + $0x142] sm:$0xff] }
 0x2ad   : > { %v3804_v49 = vpop.f32.mrb[64].mxu1 }
 0x2ae   : > { %v3910_v9 = vpop.f32.mrb[28].mxu0  ;;  %v3805_v12 = vpop.f32.mrb[65].mxu1 }
 0x2af   : > { %v3806_v27 = vadd.f32 %v3805_v12, %v3804_v49  ;;  %v3911_v54 = vpop.f32.mrb[29].mxu0  ;;  %v3807_v16 = vpop.f32.mrb[66].mxu1 }
 0x2b0   : > { %v3912_v37 = vadd.f32 %v3911_v54, %v3910_v9  ;;  %v3913_v39 = vpop.f32.mrb[30].mxu0  ;;  %v3808_v43 = vpop.f32.mrb[67].mxu1  ;;  %v1288_v9 = vld [vmem:[#allocation2 + $0x15a] sm:$0xff] }
 0x2b1   : > { %v3809_v52 = vadd.f32 %v3808_v43, %v3807_v16  ;;  %v3914_v53 = vpop.f32.mrb[31].mxu0  ;;  %v1993_v55 = vadd.f32 %v3806_v27, %v5548_v3 }
 0x2b2   : > { %v5612_v11 = vadd.f32 %v3912_v37, %v1985_v35  ;;  %v3915_v4 = vadd.f32 %v3914_v53, %v3913_v39  ;;  %4337 = vmatmul.mubr.bf16.gmra.mrb[172].mxu1 %v1302_v46  ;;  %v1306_v37 = vpack.c.bf16 %v1286_v33, %v1285_v20  ;;  %v1307_v46 = vpack.c.bf16 %v1288_v9, %v1287_v6 }
 0x2b3   : > { %4340 = vmatprep.mubr.bf16.mxu1 %v1303_v44  ;;  %v1996_v7 = vadd.f32 %v3809_v52, %v5548_v3 }
 0x2b4   : > { %v5614_v10 = vadd.f32 %v3915_v4, %v1988_v58 }
 0x2b5   : > { %v3810_v13 = vpop.f32.mrb[68].mxu1 }
 0x2b6   : > { %v3916_v47 = vpop.f32.mrb[32].mxu0  ;;  %v3811_v45 = vpop.f32.mrb[69].mxu1 }
 0x2b7   : > { %v3812_v28 = vadd.f32 %v3811_v45, %v3810_v13  ;;  %v3917_v30 = vpop.f32.mrb[33].mxu0  ;;  %v3813_v31 = vpop.f32.mrb[70].mxu1  ;;  %v1289_v13 = vld [vmem:[#allocation2 + $0x16a] sm:$0xff] }
 0x2b8   : > { %v3918_v23 = vadd.f32 %v3917_v30, %v3916_v47  ;;  %v3919_v32 = vpop.f32.mrb[34].mxu0  ;;  %v3814_v41 = vpop.f32.mrb[71].mxu1 }
 0x2b9   : > { %v3815_v50 = vadd.f32 %v3814_v41, %v3813_v31  ;;  %v3920_v51 = vpop.f32.mrb[35].mxu0  ;;  %v2001_v27 = vadd.f32 %v3812_v28, %v5548_v3 }
 0x2ba   : > { %v5618_v57 = vadd.f32 %v3918_v23, %v1993_v55  ;;  %v3921_v8 = vadd.f32 %v3920_v51, %v3919_v32  ;;  %4341 = vmatmul.mubr.bf16.gmra.mrb[176].mxu1 %v1304_v42  ;;  %v1308_v23 = vpack.c.bf16 %v1290_v36, %v1289_v13  ;;  %v4741_v42 = vld [vmem:[#allocation9 + $0x28] sm:$0xff]  }
 0x2bb   : > { %4344 = vmatprep.mubr.bf16.mxu1 %v1305_v56  ;;  %v2004_v52 = vadd.f32 %v3815_v50, %v5548_v3  ;;  %4366 = vmatprep.subr.bf16.mxu0 %v4741_v42 }
 0x2bc   : > { %v5620_v18 = vadd.f32 %v3921_v8, %v1996_v7  ;;  %v1294_v7 = vld [vmem:[#allocation2 + $0x1a2] sm:$0xff]  ;;  %4367 = vmatpush3.bf16.msra.mxu0 %v4741_v42 }
 0x2bd   : > { %v3816_v19 = vpop.f32.mrb[72].mxu1 }
 0x2be   : > { %v3922_v49 = vpop.f32.mrb[36].mxu0  ;;  %v3817_v5 = vpop.f32.mrb[73].mxu1 }
 0x2bf   : > { %v3818_v12 = vadd.f32 %v3817_v5, %v3816_v19  ;;  %v3923_v14 = vpop.f32.mrb[37].mxu0  ;;  %v3819_v24 = vpop.f32.mrb[74].mxu1 }
 0x2c0   : > { %v3924_v54 = vadd.f32 %v3923_v14, %v3922_v49  ;;  %v3925_v16 = vpop.f32.mrb[38].mxu0  ;;  %v3820_v35 = vpop.f32.mrb[75].mxu1  ;;  %v1310_v49 = vpack.c.bf16 %v1294_v7, %v1293_v2 }
 0x2c1   : > { %v3821_v39 = vadd.f32 %v3820_v35, %v3819_v24  ;;  %v3926_v43 = vpop.f32.mrb[39].mxu0  ;;  %v2009_v28 = vadd.f32 %v3818_v12, %v5548_v3 }
 0x2c2   : > { %v5624_v53 = vadd.f32 %v3924_v54, %v2001_v27  ;;  %v3927_v44 = vadd.f32 %v3926_v43, %v3925_v16  ;;  %4345 = vmatmul.mubr.bf16.gmra.mrb[180].mxu1 %v1306_v37 }
 0x2c3   : > { %4348 = vmatprep.mubr.bf16.mxu1 %v1307_v46  ;;  %v2012_v50 = vadd.f32 %v3821_v39, %v5548_v3 }
 0x2c4   : > { %v5626_v58 = vadd.f32 %v3927_v44, %v2004_v52 }
 0x2c5   : > { %v3822_v4 = vpop.f32.mrb[76].mxu1 }
 0x2c6   : > { %v3928_v21 = vpop.f32.mrb[40].mxu0  ;;  %v3823_v47 = vpop.f32.mrb[77].mxu1 }
 0x2c7   : > { %v3824_v45 = vadd.f32 %v3823_v47, %v3822_v4  ;;  %v3929_v63 = vpop.f32.mrb[41].mxu0  ;;  %v3825_v1 = vpop.f32.mrb[78].mxu1 }
 0x2c8   : > { %v3930_v30 = vadd.f32 %v3929_v63, %v3928_v21  ;;  %v3931_v31 = vpop.f32.mrb[42].mxu0  ;;  %v3826_v55 = vpop.f32.mrb[79].mxu1 }
 0x2c9   : > { %v3827_v32 = vadd.f32 %v3826_v55, %v3825_v1  ;;  %v3932_v41 = vpop.f32.mrb[43].mxu0  ;;  %v2017_v12 = vadd.f32 %v3824_v45, %v5548_v3 }
 0x2ca   : > { %v5630_v51 = vadd.f32 %v3930_v30, %v2009_v28  ;;  %v3933_v56 = vadd.f32 %v3932_v41, %v3931_v31  ;;  %4349 = vmatmul.mubr.bf16.gmra.mrb[184].mxu1 %v1308_v23  ;;  %v4742_v28 = vld [vmem:[#allocation9 + $0x30] sm:$0xff]  }
 0x2cb   : > { %4352 = vmatprep.mubr.bf16.mxu1 %v5573_v15  ;;  %v2020_v16 = vadd.f32 %v3827_v32, %v5548_v3  ;;  %4368 = vmatprep.subr.bf16.mxu0 %v4742_v28 }
 0x2cc   : > { %v5633_v8 = vadd.f32 %v3933_v56, %v2012_v50  ;;  %4369 = vmatpush3.bf16.msra.mxu0 %v4742_v28 }
 0x2cd   : > { %v3828_v19 = vpop.f32.mrb[80].mxu1 }
 0x2ce   : > { %v3934_v20 = vpop.f32.mrb[44].mxu0  ;;  %v3829_v33 = vpop.f32.mrb[81].mxu1 }
 0x2cf   : > { %v3830_v5 = vadd.f32 %v3829_v33, %v3828_v19  ;;  %v3935_v6 = vpop.f32.mrb[45].mxu0  ;;  %v3831_v9 = vpop.f32.mrb[82].mxu1 }
 0x2d0   : > { %v3936_v14 = vadd.f32 %v3935_v6, %v3934_v20  ;;  %v3937_v24 = vpop.f32.mrb[46].mxu0  ;;  %v3832_v27 = vpop.f32.mrb[83].mxu1 }
 0x2d1   : > { %v3833_v54 = vadd.f32 %v3832_v27, %v3831_v9  ;;  %v3938_v15 = vpop.f32.mrb[47].mxu0  ;;  %v2025_v36 = vadd.f32 %v3830_v5, %v5548_v3 }
 0x2d2   : > { %v5637_v35 = vadd.f32 %v3936_v14, %v2017_v12  ;;  %v3939_v37 = vadd.f32 %v3938_v15, %v3937_v24  ;;  %4353 = vmatmul.mubr.bf16.gmra.mrb[188].mxu1 %v1310_v49 }
 0x2d3   : > { %v2028_v30 = vadd.f32 %v3833_v54, %v5548_v3 }
 0x2d4   : > { %v5639_v39 = vadd.f32 %v3939_v37, %v2020_v16 }
 0x2d5   : > { %v3834_v43 = vpop.f32.mrb[84].mxu1 }
 0x2d6   : > { %v3940_v46 = vpop.f32.mrb[48].mxu0  ;;  %v3835_v52 = vpop.f32.mrb[85].mxu1 }
 0x2d7   : > { %v3836_v44 = vadd.f32 %v3835_v52, %v3834_v43  ;;  %v3941_v4 = vpop.f32.mrb[49].mxu0  ;;  %v3837_v13 = vpop.f32.mrb[86].mxu1 }
 0x2d8   : > { %v3942_v21 = vadd.f32 %v3941_v4, %v3940_v46  ;;  %v3943_v47 = vpop.f32.mrb[50].mxu0  ;;  %v3838_v45 = vpop.f32.mrb[87].mxu1 }
 0x2d9   : > { %v3839_v63 = vadd.f32 %v3838_v45, %v3837_v13  ;;  %v3944_v1 = vpop.f32.mrb[51].mxu0  ;;  %v2033_v7 = vadd.f32 %v3836_v44, %v5548_v3 }
 0x2da   : > { %v5643_v31 = vadd.f32 %v3942_v21, %v2025_v36  ;;  %v3945_v55 = vadd.f32 %v3944_v1, %v3943_v47  ;;  %v4743_v36 = vld [vmem:[#allocation9 + $0x38] sm:$0xff]  }
 0x2db   : > { %v2036_v6 = vadd.f32 %v3839_v63, %v5548_v3  ;;  %4370 = vmatprep.subr.bf16.mxu0 %v4743_v36 }
 0x2dc   : > { %v5645_v23 = vadd.f32 %v3945_v55, %v2028_v30  ;;  %4371 = vmatpush3.bf16.msra.mxu0 %v4743_v36 }
 0x2dd   : > { %v3840_v32 = vpop.f32.mrb[88].mxu1 }
 0x2de   : > { %v3946_v41 = vpop.f32.mrb[52].mxu0  ;;  %v3841_v42 = vpop.f32.mrb[89].mxu1 }
 0x2df   : > { %v3842_v50 = vadd.f32 %v3841_v42, %v3840_v32  ;;  %v3947_v56 = vpop.f32.mrb[53].mxu0  ;;  %v3843_v2 = vpop.f32.mrb[90].mxu1 }
 0x2e0   : > { %v3948_v19 = vadd.f32 %v3947_v56, %v3946_v41  ;;  %v3949_v20 = vpop.f32.mrb[54].mxu0  ;;  %v3844_v33 = vpop.f32.mrb[91].mxu1 }
 0x2e1   : > { %v3845_v49 = vadd.f32 %v3844_v33, %v3843_v2  ;;  %v3950_v5 = vpop.f32.mrb[55].mxu0  ;;  %v2041_v43 = vadd.f32 %v3842_v50, %v5548_v3 }
 0x2e2   : > { %v5649_v9 = vadd.f32 %v3948_v19, %v2033_v7  ;;  %v3951_v12 = vadd.f32 %v3950_v5, %v3949_v20 }
 0x2e3   : > { %v2044_v21 = vadd.f32 %v3845_v49, %v5548_v3 }
 0x2e4   : > { %v5651_v14 = vadd.f32 %v3951_v12, %v2036_v6 }
 0x2e5   : > { %v3846_v24 = vpop.f32.mrb[92].mxu1 }
 0x2e6   : > { %v3952_v27 = vpop.f32.mrb[56].mxu0  ;;  %v3847_v54 = vpop.f32.mrb[93].mxu1 }
 0x2e7   : > { %v3848_v15 = vadd.f32 %v3847_v54, %v3846_v24  ;;  %v3953_v16 = vpop.f32.mrb[57].mxu0  ;;  %v3849_v37 = vpop.f32.mrb[94].mxu1 }
 0x2e8   : > { %v3954_v46 = vadd.f32 %v3953_v16, %v3952_v27  ;;  %v3955_v52 = vpop.f32.mrb[58].mxu0  ;;  %v3850_v44 = vpop.f32.mrb[95].mxu1 }
 0x2e9   : > { %v3851_v4 = vadd.f32 %v3850_v44, %v3849_v37  ;;  %v3956_v13 = vpop.f32.mrb[59].mxu0  ;;  %v2049_v42 = vadd.f32 %v3848_v15, %v5548_v3 }
 0x2ea   : > { %v5655_v47 = vadd.f32 %v3954_v46, %v2041_v43  ;;  %v3957_v45 = vadd.f32 %v3956_v13, %v3955_v52 }
 0x2eb   : > { %v2052_v33 = vadd.f32 %v3851_v4, %v5548_v3 }
 0x2ec   : > { %v5657_v63 = vadd.f32 %v3957_v45, %v2044_v21  ;;  %v5673_v21 = vld [vmem:[#allocation11] sm:$0xff]  }
 0x2ed   : > { %v3980_v1 = vpop.f32.mrb[96].mxu1  ;;  %4404 = vmatprep.subr.bf16.mxu0 %v5673_v21 }
 0x2ee   : > { %v3958_v28 = vpop.f32.mrb[60].mxu0  ;;  %v3981_v30 = vpop.f32.mrb[97].mxu1 }
 0x2ef   : > { %v3959_v55 = vpop.f32.mrb[61].mxu0  ;;  %v3982_v32 = vadd.f32 %v3981_v30, %v3980_v1  ;;  %v3983_v41 = vpop.f32.mrb[98].mxu1 }
 0x2f0   : > { %v3960_v50 = vadd.f32 %v3959_v55, %v3958_v28  ;;  %v3961_v56 = vpop.f32.mrb[62].mxu0  ;;  %v3984_v2 = vpop.f32.mrb[99].mxu1 }
 0x2f1   : > { %v2251_v7 = vadd.f32 %v3982_v32, %v5554_v22  ;;  %v3962_v19 = vpop.f32.mrb[63].mxu0  ;;  %v3985_v20 = vadd.f32 %v3984_v2, %v3983_v41 }
 0x2f2   : > { %v5662_v49 = vadd.f32 %v3960_v50, %v2049_v42  ;;  %v3963_v5 = vadd.f32 %v3962_v19, %v3961_v56 }
 0x2f3   : > { %v2254_v6 = vadd.f32 %v3985_v20, %v5559_v29 }
 0x2f4   : > { %v5665_v12 = vadd.f32 %v3963_v5, %v2052_v33 }
 0x2f5   : > { %v3986_v24 = vpop.f32.mrb[100].mxu1 }
 0x2f6   : > { %v4092_v27 = vpop.f32.mrb[64].mxu0  ;;  %v3987_v54 = vpop.f32.mrb[101].mxu1 }
 0x2f7   : > { %v3988_v15 = vadd.f32 %v3987_v54, %v3986_v24  ;;  %v4093_v16 = vpop.f32.mrb[65].mxu0  ;;  %v3989_v37 = vpop.f32.mrb[102].mxu1 }
 0x2f8   : > { %v4094_v43 = vadd.f32 %v4093_v16, %v4092_v27  ;;  %v4095_v46 = vpop.f32.mrb[66].mxu0  ;;  %v3990_v22 = vpop.f32.mrb[103].mxu1 }
 0x2f9   : > { %v2259_v52 = vadd.f32 %v3988_v15, %v5564_v48  ;;  %v3991_v44 = vadd.f32 %v3990_v22, %v3989_v37  ;;  %v4096_v3 = vpop.f32.mrb[67].mxu0 }
 0x2fa   : > { %v4097_v4 = vadd.f32 %v4096_v3, %v4095_v46  ;;  %v5668_v13 = vadd.f32 %v4094_v43, %v2251_v7 }
 0x2fb   : > { %v2262_v29 = vadd.f32 %v3991_v44, %v5569_v61 }
 0x2fc   : > { %v5671_v36 = vadd.f32 %v4097_v4, %v2254_v6 }
 0x2fd   : > { %v3992_v45 = vpop.f32.mrb[104].mxu1 }
 0x2fe   : > { %v4098_v1 = vpop.f32.mrb[68].mxu0  ;;  %v3993_v28 = vpop.f32.mrb[105].mxu1 }
 0x2ff   : > { %v3994_v30 = vadd.f32 %v3993_v28, %v3992_v45  ;;  %v4099_v55 = vpop.f32.mrb[69].mxu0  ;;  %v3995_v32 = vpop.f32.mrb[106].mxu1 }
 0x300   : > { %v4100_v48 = vadd.f32 %v4099_v55, %v4098_v1  ;;  %v4101_v41 = vpop.f32.mrb[70].mxu0  ;;  %v3996_v42 = vpop.f32.mrb[107].mxu1 }
 0x301   : > { %v2267_v50 = vadd.f32 %v3994_v30, %v5576_v26  ;;  %v3997_v56 = vadd.f32 %v3996_v42, %v3995_v32  ;;  %v4102_v2 = vpop.f32.mrb[71].mxu0 }
 0x302   : > { %v4103_v61 = vadd.f32 %v4102_v2, %v4101_v41  ;;  %v5677_v7 = vadd.f32 %v4100_v48, %v2259_v52 }
 0x303   : > { %v2270_v19 = vadd.f32 %v3997_v56, %v5581_v40 }
 0x304   : > { %v5680_v20 = vadd.f32 %v4103_v61, %v2262_v29 }
 0x305   : > { %v3998_v33 = vpop.f32.mrb[108].mxu1 }
 0x306   : > { %v4104_v5 = vpop.f32.mrb[72].mxu0  ;;  %v3999_v6 = vpop.f32.mrb[109].mxu1 }
 0x307   : > { %v4000_v24 = vadd.f32 %v3999_v6, %v3998_v33  ;;  %v4105_v27 = vpop.f32.mrb[73].mxu0  ;;  %v4001_v54 = vpop.f32.mrb[110].mxu1 }
 0x308   : > { %v4106_v15 = vadd.f32 %v4105_v27, %v4104_v5  ;;  %v4107_v16 = vpop.f32.mrb[74].mxu0  ;;  %v4002_v37 = vpop.f32.mrb[111].mxu1 }
 0x309   : > { %v2275_v26 = vadd.f32 %v4000_v24, %v5586_v34  ;;  %v4003_v43 = vadd.f32 %v4002_v37, %v4001_v54  ;;  %v4108_v46 = vpop.f32.mrb[75].mxu0 }
 0x30a   : > { %v4109_v22 = vadd.f32 %v4108_v46, %v4107_v16  ;;  %v5683_v52 = vadd.f32 %v4106_v15, %v2267_v50 }
 0x30b   : > { %v2278_v40 = vadd.f32 %v4003_v43, %v5590_v59 }
 0x30c   : > { %v5686_v44 = vadd.f32 %v4109_v22, %v2270_v19 }
 0x30d   : > { %v4004_v3 = vpop.f32.mrb[112].mxu1 }
 0x30e   : > { %v4110_v4 = vpop.f32.mrb[76].mxu0  ;;  %v4005_v29 = vpop.f32.mrb[113].mxu1 }
 0x30f   : > { %v4006_v45 = vadd.f32 %v4005_v29, %v4004_v3  ;;  %v4111_v1 = vpop.f32.mrb[77].mxu0  ;;  %v4007_v28 = vpop.f32.mrb[114].mxu1 }
 0x310   : > { %v4112_v30 = vadd.f32 %v4111_v1, %v4110_v4  ;;  %v4113_v55 = vpop.f32.mrb[78].mxu0  ;;  %v4008_v32 = vpop.f32.mrb[115].mxu1 }
 0x311   : > { %v2283_v34 = vadd.f32 %v4006_v45, %v5594_v17  ;;  %v4009_v48 = vadd.f32 %v4008_v32, %v4007_v28  ;;  %v4114_v41 = vpop.f32.mrb[79].mxu0 }
 0x312   : > { %v4115_v42 = vadd.f32 %v4114_v41, %v4113_v55  ;;  %v5689_v50 = vadd.f32 %v4112_v30, %v2275_v26 }
 0x313   : > { %v2286_v59 = vadd.f32 %v4009_v48, %v5596_v25 }
 0x314   : > { %v5692_v56 = vadd.f32 %v4115_v42, %v2278_v40 }
 0x315   : > { %v4010_v2 = vpop.f32.mrb[116].mxu1 }
 0x316   : > { %v4116_v61 = vpop.f32.mrb[80].mxu0  ;;  %v4011_v19 = vpop.f32.mrb[117].mxu1 }
 0x317   : > { %v4012_v33 = vadd.f32 %v4011_v19, %v4010_v2  ;;  %v4117_v5 = vpop.f32.mrb[81].mxu0  ;;  %v4013_v6 = vpop.f32.mrb[118].mxu1 }
 0x318   : > { %v4118_v24 = vadd.f32 %v4117_v5, %v4116_v61  ;;  %v4119_v27 = vpop.f32.mrb[82].mxu0  ;;  %v4014_v54 = vpop.f32.mrb[119].mxu1 }
 0x319   : > { %v2291_v17 = vadd.f32 %v4012_v33, %v5600_v38  ;;  %v4015_v15 = vadd.f32 %v4014_v54, %v4013_v6  ;;  %v4120_v16 = vpop.f32.mrb[83].mxu0 }
 0x31a   : > { %v4121_v37 = vadd.f32 %v4120_v16, %v4119_v27  ;;  %v5695_v26 = vadd.f32 %v4118_v24, %v2283_v34 }
 0x31b   : > { %v2294_v25 = vadd.f32 %v4015_v15, %v5602_v62 }
 0x31c   : > { %v5698_v43 = vadd.f32 %v4121_v37, %v2286_v59 }
 0x31d   : > { %v4016_v46 = vpop.f32.mrb[120].mxu1 }
 0x31e   : > { %v4122_v22 = vpop.f32.mrb[84].mxu0  ;;  %v4017_v40 = vpop.f32.mrb[121].mxu1 }
 0x31f   : > { %v4018_v3 = vadd.f32 %v4017_v40, %v4016_v46  ;;  %v4123_v4 = vpop.f32.mrb[85].mxu0  ;;  %v4019_v29 = vpop.f32.mrb[122].mxu1 }
 0x320   : > { %v4124_v45 = vadd.f32 %v4123_v4, %v4122_v22  ;;  %v4125_v1 = vpop.f32.mrb[86].mxu0  ;;  %v4020_v28 = vpop.f32.mrb[123].mxu1 }
 0x321   : > { %v2299_v38 = vadd.f32 %v4018_v3, %v5606_v0  ;;  %v4021_v30 = vadd.f32 %v4020_v28, %v4019_v29  ;;  %v4126_v55 = vpop.f32.mrb[87].mxu0 }
 0x322   : > { %v4127_v32 = vadd.f32 %v4126_v55, %v4125_v1  ;;  %v5701_v34 = vadd.f32 %v4124_v45, %v2291_v17 }
 0x323   : > { %v2302_v62 = vadd.f32 %v4021_v30, %v5608_v60 }
 0x324   : > { %v5704_v48 = vadd.f32 %v4127_v32, %v2294_v25 }
 0x325   : > { %v4022_v41 = vpop.f32.mrb[124].mxu1 }
 0x326   : > { %v4128_v42 = vpop.f32.mrb[88].mxu0  ;;  %v4023_v59 = vpop.f32.mrb[125].mxu1 }
 0x327   : > { %v4024_v2 = vadd.f32 %v4023_v59, %v4022_v41  ;;  %v4129_v61 = vpop.f32.mrb[89].mxu0  ;;  %v4025_v19 = vpop.f32.mrb[126].mxu1 }
 0x328   : > { %v4130_v33 = vadd.f32 %v4129_v61, %v4128_v42  ;;  %v4131_v5 = vpop.f32.mrb[90].mxu0  ;;  %v4026_v6 = vpop.f32.mrb[127].mxu1 }
 0x329   : > { %v2307_v0 = vadd.f32 %v4024_v2, %v5612_v11  ;;  %v4027_v24 = vadd.f32 %v4026_v6, %v4025_v19  ;;  %v4132_v27 = vpop.f32.mrb[91].mxu0 }
 0x32a   : > { %v4133_v54 = vadd.f32 %v4132_v27, %v4131_v5  ;;  %v5707_v17 = vadd.f32 %v4130_v33, %v2299_v38 }
 0x32b   : > { %v2310_v60 = vadd.f32 %v4027_v24, %v5614_v10 }
 0x32c   : > { %v5710_v15 = vadd.f32 %v4133_v54, %v2302_v62 }
 0x32d   : > { %v4028_v16 = vpop.f32.mrb[128].mxu1 }
 0x32e   : > { %v4134_v37 = vpop.f32.mrb[92].mxu0  ;;  %v4029_v25 = vpop.f32.mrb[129].mxu1 }
 0x32f   : > { %v4030_v46 = vadd.f32 %v4029_v25, %v4028_v16  ;;  %v4135_v22 = vpop.f32.mrb[93].mxu0  ;;  %v4031_v40 = vpop.f32.mrb[130].mxu1 }
 0x330   : > { %v4136_v3 = vadd.f32 %v4135_v22, %v4134_v37  ;;  %v4137_v4 = vpop.f32.mrb[94].mxu0  ;;  %v4032_v29 = vpop.f32.mrb[131].mxu1 }
 0x331   : > { %v2315_v11 = vadd.f32 %v4030_v46, %v5618_v57  ;;  %v4033_v45 = vadd.f32 %v4032_v29, %v4031_v40  ;;  %v4138_v1 = vpop.f32.mrb[95].mxu0 }
 0x332   : > { %v4139_v28 = vadd.f32 %v4138_v1, %v4137_v4  ;;  %v5713_v38 = vadd.f32 %v4136_v3, %v2307_v0 }
 0x333   : > { %v2318_v10 = vadd.f32 %v4033_v45, %v5620_v18 }
 0x334   : > { %v5716_v30 = vadd.f32 %v4139_v28, %v2310_v60 }
 0x335   : > { %v4034_v55 = vpop.f32.mrb[132].mxu1 }
 0x336   : > { %v4140_v32 = vpop.f32.mrb[96].mxu0  ;;  %v4035_v62 = vpop.f32.mrb[133].mxu1 }
 0x337   : > { %v4036_v41 = vadd.f32 %v4035_v62, %v4034_v55  ;;  %v4141_v42 = vpop.f32.mrb[97].mxu0  ;;  %v4037_v59 = vpop.f32.mrb[134].mxu1 }
 0x338   : > { %v4142_v2 = vadd.f32 %v4141_v42, %v4140_v32  ;;  %v4143_v61 = vpop.f32.mrb[98].mxu0  ;;  %v4038_v19 = vpop.f32.mrb[135].mxu1 }
 0x339   : > { %v2323_v57 = vadd.f32 %v4036_v41, %v5624_v53  ;;  %v4039_v33 = vadd.f32 %v4038_v19, %v4037_v59  ;;  %v4144_v5 = vpop.f32.mrb[99].mxu0 }
 0x33a   : > { %v4145_v6 = vadd.f32 %v4144_v5, %v4143_v61  ;;  %v5719_v0 = vadd.f32 %v4142_v2, %v2315_v11 }
 0x33b   : > { %v2326_v18 = vadd.f32 %v4039_v33, %v5626_v58 }
 0x33c   : > { %v5722_v24 = vadd.f32 %v4145_v6, %v2318_v10 }
 0x33d   : > { %v4040_v27 = vpop.f32.mrb[136].mxu1 }
 0x33e   : > { %v4146_v54 = vpop.f32.mrb[100].mxu0  ;;  %v4041_v60 = vpop.f32.mrb[137].mxu1 }
 0x33f   : > { %v4042_v16 = vadd.f32 %v4041_v60, %v4040_v27  ;;  %v4147_v37 = vpop.f32.mrb[101].mxu0  ;;  %v4043_v25 = vpop.f32.mrb[138].mxu1 }
 0x340   : > { %v4148_v46 = vadd.f32 %v4147_v37, %v4146_v54  ;;  %v4149_v22 = vpop.f32.mrb[102].mxu0  ;;  %v4044_v40 = vpop.f32.mrb[139].mxu1 }
 0x341   : > { %v2331_v53 = vadd.f32 %v4042_v16, %v5630_v51  ;;  %v4045_v3 = vadd.f32 %v4044_v40, %v4043_v25  ;;  %v4150_v4 = vpop.f32.mrb[103].mxu0 }
 0x342   : > { %v4151_v29 = vadd.f32 %v4150_v4, %v4149_v22  ;;  %v5725_v11 = vadd.f32 %v4148_v46, %v2323_v57 }
 0x343   : > { %v2334_v58 = vadd.f32 %v4045_v3, %v5633_v8 }
 0x344   : > { %v5728_v45 = vadd.f32 %v4151_v29, %v2326_v18 }
 0x345   : > { %v4046_v1 = vpop.f32.mrb[140].mxu1 }
 0x346   : > { %v4152_v28 = vpop.f32.mrb[104].mxu0  ;;  %v4047_v10 = vpop.f32.mrb[141].mxu1 }
 0x347   : > { %v4048_v55 = vadd.f32 %v4047_v10, %v4046_v1  ;;  %v4153_v32 = vpop.f32.mrb[105].mxu0  ;;  %v4049_v62 = vpop.f32.mrb[142].mxu1 }
 0x348   : > { %v4154_v41 = vadd.f32 %v4153_v32, %v4152_v28  ;;  %v4155_v42 = vpop.f32.mrb[106].mxu0  ;;  %v4050_v59 = vpop.f32.mrb[143].mxu1 }
 0x349   : > { %v2339_v51 = vadd.f32 %v4048_v55, %v5637_v35  ;;  %v4051_v2 = vadd.f32 %v4050_v59, %v4049_v62  ;;  %v4156_v61 = vpop.f32.mrb[107].mxu0 }
 0x34a   : > { %v4157_v19 = vadd.f32 %v4156_v61, %v4155_v42  ;;  %v5731_v57 = vadd.f32 %v4154_v41, %v2331_v53 }
 0x34b   : > { %v2342_v8 = vadd.f32 %v4051_v2, %v5639_v39 }
 0x34c   : > { %v5734_v33 = vadd.f32 %v4157_v19, %v2334_v58 }
 0x34d   : > { %v4052_v5 = vpop.f32.mrb[144].mxu1 }
 0x34e   : > { %v4158_v6 = vpop.f32.mrb[108].mxu0  ;;  %v4053_v18 = vpop.f32.mrb[145].mxu1 }
 0x34f   : > { %v4054_v27 = vadd.f32 %v4053_v18, %v4052_v5  ;;  %v4159_v54 = vpop.f32.mrb[109].mxu0  ;;  %v4055_v60 = vpop.f32.mrb[146].mxu1 }
 0x350   : > { %v4160_v16 = vadd.f32 %v4159_v54, %v4158_v6  ;;  %v4161_v37 = vpop.f32.mrb[110].mxu0  ;;  %v4056_v25 = vpop.f32.mrb[147].mxu1 }
 0x351   : > { %v2347_v35 = vadd.f32 %v4054_v27, %v5643_v31  ;;  %v4057_v46 = vadd.f32 %v4056_v25, %v4055_v60  ;;  %v4162_v22 = vpop.f32.mrb[111].mxu0 }
 0x352   : > { %v4163_v40 = vadd.f32 %v4162_v22, %v4161_v37  ;;  %v5737_v53 = vadd.f32 %v4160_v16, %v2339_v51 }
 0x353   : > { %v2350_v39 = vadd.f32 %v4057_v46, %v5645_v23 }
 0x354   : > { %v5740_v3 = vadd.f32 %v4163_v40, %v2342_v8 }
 0x355   : > { %v4058_v4 = vpop.f32.mrb[148].mxu1 }
 0x356   : > { %v4164_v29 = vpop.f32.mrb[112].mxu0  ;;  %v4059_v58 = vpop.f32.mrb[149].mxu1 }
 0x357   : > { %v4060_v1 = vadd.f32 %v4059_v58, %v4058_v4  ;;  %v4165_v28 = vpop.f32.mrb[113].mxu0  ;;  %v4061_v10 = vpop.f32.mrb[150].mxu1 }
 0x358   : > { %v4166_v55 = vadd.f32 %v4165_v28, %v4164_v29  ;;  %v4167_v32 = vpop.f32.mrb[114].mxu0  ;;  %v4062_v62 = vpop.f32.mrb[151].mxu1 }
 0x359   : > { %v2355_v31 = vadd.f32 %v4060_v1, %v5649_v9  ;;  %v4063_v41 = vadd.f32 %v4062_v62, %v4061_v10  ;;  %v4168_v42 = vpop.f32.mrb[115].mxu0 }
 0x35a   : > { %v4169_v59 = vadd.f32 %v4168_v42, %v4167_v32  ;;  %v5743_v51 = vadd.f32 %v4166_v55, %v2347_v35 }
 0x35b   : > { %v2358_v23 = vadd.f32 %v4063_v41, %v5651_v14 }
 0x35c   : > { %v5746_v2 = vadd.f32 %v4169_v59, %v2350_v39 }
 0x35d   : > { %v4064_v61 = vpop.f32.mrb[152].mxu1 }
 0x35e   : > { %v4170_v19 = vpop.f32.mrb[116].mxu0  ;;  %v4065_v8 = vpop.f32.mrb[153].mxu1 }
 0x35f   : > { %v4066_v5 = vadd.f32 %v4065_v8, %v4064_v61  ;;  %v4171_v6 = vpop.f32.mrb[117].mxu0  ;;  %v4067_v18 = vpop.f32.mrb[154].mxu1 }
 0x360   : > { %v4172_v27 = vadd.f32 %v4171_v6, %v4170_v19  ;;  %v4173_v54 = vpop.f32.mrb[118].mxu0  ;;  %v4068_v60 = vpop.f32.mrb[155].mxu1 }
 0x361   : > { %v2363_v9 = vadd.f32 %v4066_v5, %v5655_v47  ;;  %v4069_v16 = vadd.f32 %v4068_v60, %v4067_v18  ;;  %v4174_v37 = vpop.f32.mrb[119].mxu0 }
 0x362   : > { %v4175_v25 = vadd.f32 %v4174_v37, %v4173_v54  ;;  %v5749_v35 = vadd.f32 %v4172_v27, %v2355_v31 }
 0x363   : > { %v2366_v14 = vadd.f32 %v4069_v16, %v5657_v63 }
 0x364   : > { %v5752_v46 = vadd.f32 %v4175_v25, %v2358_v23 }
 0x365   : > { %v4070_v22 = vpop.f32.mrb[156].mxu1 }
 0x366   : > { %v4176_v40 = vpop.f32.mrb[120].mxu0  ;;  %v4071_v39 = vpop.f32.mrb[157].mxu1 }
 0x367   : > { %v4072_v4 = vadd.f32 %v4071_v39, %v4070_v22  ;;  %v4177_v29 = vpop.f32.mrb[121].mxu0  ;;  %v4073_v58 = vpop.f32.mrb[158].mxu1 }
 0x368   : > { %v4178_v1 = vadd.f32 %v4177_v29, %v4176_v40  ;;  %v4179_v28 = vpop.f32.mrb[122].mxu0  ;;  %v4074_v10 = vpop.f32.mrb[159].mxu1 }
 0x369   : > { %v2371_v47 = vadd.f32 %v4072_v4, %v5662_v49  ;;  %v4075_v55 = vadd.f32 %v4074_v10, %v4073_v58  ;;  %v4180_v32 = vpop.f32.mrb[123].mxu0 }
 0x36a   : > { %v4181_v62 = vadd.f32 %v4180_v32, %v4179_v28  ;;  %v5755_v31 = vadd.f32 %v4178_v1, %v2363_v9 }
 0x36b   : > { %v2374_v63 = vadd.f32 %v4075_v55, %v5665_v12  ;;  %v4746_v55 = vld [vmem:[#allocation11 + $0x10] sm:$0xff]  }
 0x36c   : > { %v5758_v41 = vadd.f32 %v4181_v62, %v2366_v14 }
 0x36d   : > { %v4326_v42 = vpop.f32.mrb[160].mxu1 }
 0x36e   : > { %v4182_v59 = vpop.f32.mrb[124].mxu0  ;;  %v2581_v23 = vadd.f32 %v4326_v42, %v5677_v7  ;;  %v2572_v61 = vpop.f32.mrb[161].mxu1 }
 0x36f   : > { %v4183_v19 = vpop.f32.mrb[125].mxu0  ;;  %v2573_v8 = vadd.f32 %v2572_v61, %v5668_v13  ;;  %v4327_v5 = vpop.f32.mrb[162].mxu1 }
 0x370   : > { %v4184_v6 = vadd.f32 %v4183_v19, %v4182_v59  ;;  %v4185_v49 = vpop.f32.mrb[126].mxu0  ;;  %v2584_v18 = vadd.f32 %v4327_v5, %v5680_v20  ;;  %v2575_v27 = vpop.f32.mrb[163].mxu1  ;;  %v2701_v12 = vmax.f32 %v2581_v23, 0.0  ;;  %v4745_v20 = vld [vmem:[#allocation11 + $0x8] sm:$0xff]  }
 0x371   : > { %v4186_v54 = vpop.f32.mrb[127].mxu0  ;;  %v2576_v60 = vadd.f32 %v2575_v27, %v5671_v36  ;;  %v2699_v25 = vmax.f32 %v2573_v8, 0.0 }
 0x372   : > { %v2702_v9 = vmax.f32 %v2584_v18, 0.0  ;;  %v4187_v16 = vadd.f32 %v4186_v54, %v4185_v49  ;;  %v5764_v37 = vadd.f32 %v4184_v6, %v2371_v47  ;;  %v4748_v6 = vld [vmem:[#allocation11 + $0x20] sm:$0xff]  }
 0x373   : > { %v2700_v7 = vmax.f32 %v2576_v60, 0.0 }
 0x374   : > { %v2732_v14 = vpack.c.bf16 %v2702_v9, %v2701_v12  ;;  %v5766_v22 = vadd.f32 %v4187_v16, %v2374_v63 }
 0x375   : > { %v2731_v13 = vpack.c.bf16 %v2700_v7, %v2699_v25  ;;  %v4330_v40 = vpop.f32.mrb[164].mxu1 }
 0x376   : > { %v2597_v39 = vadd.f32 %v4330_v40, %v5689_v50  ;;  %v2588_v4 = vpop.f32.mrb[165].mxu1 }
 0x377   : > { %v2589_v29 = vadd.f32 %v2588_v4, %v5683_v52  ;;  %v4331_v58 = vpop.f32.mrb[166].mxu1  ;;  %4372 = vmatprep.mubr.bf16.mxu0 %v2731_v13  ;;  %v4750_v13 = vld [vmem:[#allocation11 + $0x30] sm:$0xff]  }
 0x378   : > { %v2600_v36 = vadd.f32 %v4331_v58, %v5692_v56  ;;  %v2591_v1 = vpop.f32.mrb[167].mxu1  ;;  %4373 = vmatmul.mubr.bf16.vlgmr.msra.gmra.mrb[128].mxu0 %v2732_v14  ;;  %v2705_v10 = vmax.f32 %v2597_v39, 0.0  ;;  %v4747_v56 = vld [vmem:[#allocation11 + $0x18] sm:$0xff]  }
 0x379   : > { %v2592_v28 = vadd.f32 %v2591_v1, %v5686_v44  ;;  %4405 = vmatpush3.bf16.msra.mxu0 %v5673_v21  ;;  %v2703_v32 = vmax.f32 %v2589_v29, 0.0 }
 0x37a   : > { %v2706_v47 = vmax.f32 %v2600_v36, 0.0  ;;  %4406 = vmatprep.subr.bf16.mxu0 %v4745_v20 }
 0x37b   : > { %v2704_v50 = vmax.f32 %v2592_v28, 0.0 }
 0x37c   : > { %v2734_v62 = vpack.c.bf16 %v2706_v47, %v2705_v10 }
 0x37d   : > { %v2733_v63 = vpack.c.bf16 %v2704_v50, %v2703_v32  ;;  %v4334_v42 = vpop.f32.mrb[168].mxu1  ;;  %4407 = vmatpush3.bf16.msra.mxu0 %v4745_v20 }
 0x37e   : > { %v2613_v52 = vadd.f32 %v4334_v42, %v5701_v34  ;;  %v2604_v59 = vpop.f32.mrb[169].mxu1  ;;  %4408 = vmatprep.subr.bf16.mxu0 %v4746_v55 }
 0x37f   : > { %v2605_v23 = vadd.f32 %v2604_v59, %v5695_v26  ;;  %v4335_v44 = vpop.f32.mrb[170].mxu1  ;;  %4376 = vmatprep.mubr.bf16.mxu0 %v2733_v63 }
 0x380   : > { %v2616_v21 = vadd.f32 %v4335_v44, %v5704_v48  ;;  %v2607_v61 = vpop.f32.mrb[171].mxu1  ;;  %4377 = vmatmul.mubr.bf16.gmra.mrb[132].mxu0 %v2734_v62  ;;  %v2709_v8 = vmax.f32 %v2613_v52, 0.0  ;;  %v4749_v48 = vld [vmem:[#allocation11 + $0x28] sm:$0xff]  }
 0x381   : > { %v2608_v19 = vadd.f32 %v2607_v61, %v5698_v43  ;;  %4409 = vmatpush3.bf16.msra.mxu0 %v4746_v55  ;;  %v2707_v49 = vmax.f32 %v2605_v23, 0.0 }
 0x382   : > { %v2710_v5 = vmax.f32 %v2616_v21, 0.0  ;;  %4410 = vmatprep.subr.bf16.mxu0 %v4747_v56 }
 0x383   : > { %v2708_v34 = vmax.f32 %v2608_v19, 0.0 }
 0x384   : > { %v2736_v18 = vpack.c.bf16 %v2710_v5, %v2709_v8 }
 0x385   : > { %v2735_v27 = vpack.c.bf16 %v2708_v34, %v2707_v49  ;;  %v4338_v54 = vpop.f32.mrb[172].mxu1  ;;  %4411 = vmatpush3.bf16.msra.mxu0 %v4747_v56 }
 0x386   : > { %v2629_v26 = vadd.f32 %v4338_v54, %v5713_v38  ;;  %v2620_v60 = vpop.f32.mrb[173].mxu1  ;;  %4412 = vmatprep.subr.bf16.mxu0 %v4748_v6 }
 0x387   : > { %v2621_v12 = vadd.f32 %v2620_v60, %v5707_v17  ;;  %v4339_v9 = vpop.f32.mrb[174].mxu1  ;;  %4380 = vmatprep.mubr.bf16.mxu0 %v2735_v27 }
 0x388   : > { %v2632_v43 = vadd.f32 %v4339_v9, %v5716_v30  ;;  %v2623_v16 = vpop.f32.mrb[175].mxu1  ;;  %4381 = vmatmul.mubr.bf16.gmra.mrb[136].mxu0 %v2736_v18  ;;  %v2713_v7 = vmax.f32 %v2629_v26, 0.0  ;;  %v4751_v30 = vld [vmem:[#allocation11 + $0x38] sm:$0xff]  }
 0x389   : > { %v2624_v25 = vadd.f32 %v2623_v16, %v5710_v15  ;;  %4413 = vmatpush3.bf16.msra.mxu0 %v4748_v6  ;;  %v2711_v40 = vmax.f32 %v2621_v12, 0.0 }
 0x38a   : > { %v2714_v14 = vmax.f32 %v2632_v43, 0.0  ;;  %4414 = vmatprep.subr.bf16.mxu0 %v4749_v48 }
 0x38b   : > { %v2712_v38 = vmax.f32 %v2624_v25, 0.0 }
 0x38c   : > { %v2738_v39 = vpack.c.bf16 %v2714_v14, %v2713_v7 }
 0x38d   : > { %v2737_v4 = vpack.c.bf16 %v2712_v38, %v2711_v40  ;;  %v4342_v20 = vpop.f32.mrb[176].mxu1  ;;  %4415 = vmatpush3.bf16.msra.mxu0 %v4749_v48  ;;  %v4754_v40 = vld [vmem:[%s5278_s29 + $0x10] sm:$0xff]   ;;  %v4756_v38 = vld [vmem:[%s5278_s29 + $0x20] sm:$0xff]  }
 0x38e   : > { %v2645_v17 = vadd.f32 %v4342_v20, %v5725_v11  ;;  %v2636_v29 = vpop.f32.mrb[177].mxu1  ;;  %4416 = vmatprep.subr.bf16.mxu0 %v4750_v13  ;;  %v4759_v20 = vld [vmem:[%s5278_s29 + $0x38] sm:$0xff]  }
 0x38f   : > { %v2637_v58 = vadd.f32 %v2636_v29, %v5719_v0  ;;  %v4343_v36 = vpop.f32.mrb[178].mxu1  ;;  %4384 = vmatprep.mubr.bf16.mxu0 %v2737_v4  ;;  %v4758_v4 = vld [vmem:[%s5278_s29 + $0x30] sm:$0xff]   ;;  %v4761_v29 = vld [vmem:[%s5278_s29 + $0x48] sm:$0xff]  }
 0x390   : > { %v2648_v15 = vadd.f32 %v4343_v36, %v5728_v45  ;;  %v2639_v1 = vpop.f32.mrb[179].mxu1  ;;  %4385 = vmatmul.mubr.bf16.gmra.mrb[140].mxu0 %v2738_v39  ;;  %v2717_v10 = vmax.f32 %v2645_v17, 0.0  ;;  %v4757_v39 = vld [vmem:[%s5278_s29 + $0x28] sm:$0xff]   ;;  %v4760_v17 = vld [vmem:[%s5278_s29 + $0x40] sm:$0xff]  }
 0x391   : > { %v2640_v28 = vadd.f32 %v2639_v1, %v5722_v24  ;;  %4417 = vmatpush3.bf16.msra.mxu0 %v4750_v13  ;;  %v2715_v55 = vmax.f32 %v2637_v58, 0.0  ;;  %v4752_v13 = vld [vmem:[%s5278_s29] sm:$0xff]   ;;  %v4763_v58 = vld [vmem:[%s5278_s29 + $0x58] sm:$0xff]   ;;  %v4766_v1 = vld [vmem:[%s5278_s29 + $0x70] sm:$0xff]  }
 0x392   : > { %v2718_v47 = vmax.f32 %v2648_v15, 0.0  ;;  %4418 = vmatprep.subr.bf16.mxu0 %v4751_v30  ;;  %v4764_v36 = vld [vmem:[%s5278_s29 + $0x60] sm:$0xff]   ;;  %v4765_v15 = vld [vmem:[%s5278_s29 + $0x68] sm:$0xff]  }
 0x393   : > { %v2716_v32 = vmax.f32 %v2640_v28, 0.0  ;;  %v4767_v28 = vld [vmem:[%s5278_s29 + $0x78] sm:$0xff]  }
 0x394   : > { %v2740_v11 = vpack.c.bf16 %v2718_v47, %v2717_v10  ;;  %v3675_v10 = vld [vmem:[%s5943_s6] ss:$0 sm:$0xff] }
 0x395   : > { %v2739_v50 = vpack.c.bf16 %v2716_v32, %v2715_v55  ;;  %v4346_v62 = vpop.f32.mrb[180].mxu1  ;;  %4419 = vmatpush3.bf16.msra.mxu0 %v4751_v30  ;;  %v4762_v30 = vld [vmem:[%s5278_s29 + $0x50] sm:$0xff]  }
 0x396   : > { %v2661_v0 = vadd.f32 %v4346_v62, %v5737_v53  ;;  %v2652_v63 = vpop.f32.mrb[181].mxu1  ;;  %v3684_v47 = vld [vmem:[%s5945_s8] ss:$0 sm:$0xff] }
 0x397   : > { %v2653_v42 = vadd.f32 %v2652_v63, %v5731_v57  ;;  %v4347_v45 = vpop.f32.mrb[182].mxu1  ;;  %4388 = vmatprep.mubr.bf16.mxu0 %v2739_v50  ;;  %v5819_v55 = vadd.f32 %v3684_v47, %v3675_v10 }
 0x398   : > { %v2664_v52 = vadd.f32 %v4347_v45, %v5740_v3  ;;  %v2655_v24 = vpop.f32.mrb[183].mxu1  ;;  %4389 = vmatmul.mubr.bf16.gmra.mrb[144].mxu0 %v2740_v11  ;;  %v2721_v56 = vmax.f32 %v2661_v0, 0.0 }
 0x399   : > { %v2656_v59 = vadd.f32 %v2655_v24, %v5734_v33  ;;  %v2719_v44 = vmax.f32 %v2653_v42, 0.0 }
 0x39a   : > { %v2722_v23 = vmax.f32 %v2664_v52, 0.0 }
 0x39b   : > { %v2720_v21 = vmax.f32 %v2656_v59, 0.0 }
 0x39c   : > { %v2742_v61 = vpack.c.bf16 %v2722_v23, %v2721_v56 }
 0x39d   : > { %v2741_v19 = vpack.c.bf16 %v2720_v21, %v2719_v44  ;;  %v4350_v8 = vpop.f32.mrb[184].mxu1 }
 0x39e   : > { %v2677_v53 = vadd.f32 %v4350_v8, %v5749_v35  ;;  %v2668_v5 = vpop.f32.mrb[185].mxu1 }
 0x39f   : > { %v2669_v57 = vadd.f32 %v2668_v5, %v5743_v51  ;;  %v4351_v6 = vpop.f32.mrb[186].mxu1  ;;  %4392 = vmatprep.mubr.bf16.mxu0 %v2741_v19 }
 0x3a0   : > { %v2680_v3 = vadd.f32 %v4351_v6, %v5752_v46  ;;  %v2671_v49 = vpop.f32.mrb[187].mxu1  ;;  %4393 = vmatmul.mubr.bf16.gmra.mrb[148].mxu0 %v2742_v61  ;;  %v2725_v34 = vmax.f32 %v2677_v53, 0.0 }
 0x3a1   : > { %v2672_v33 = vadd.f32 %v2671_v49, %v5746_v2  ;;  %v2723_v27 = vmax.f32 %v2669_v57, 0.0 }
 0x3a2   : > { %v2726_v18 = vmax.f32 %v2680_v3, 0.0 }
 0x3a3   : > { %v2724_v54 = vmax.f32 %v2672_v33, 0.0 }
 0x3a4   : > { %v2744_v26 = vpack.c.bf16 %v2726_v18, %v2725_v34 }
 0x3a5   : > { %v2743_v60 = vpack.c.bf16 %v2724_v54, %v2723_v27  ;;  %v4354_v48 = vpop.f32.mrb[188].mxu1 }
 0x3a6   : > { %v2693_v35 = vadd.f32 %v4354_v48, %v5764_v37  ;;  %v2684_v12 = vpop.f32.mrb[189].mxu1 }
 0x3a7   : > { %v2685_v51 = vadd.f32 %v2684_v12, %v5755_v31  ;;  %v4355_v9 = vpop.f32.mrb[190].mxu1  ;;  %4396 = vmatprep.mubr.bf16.mxu0 %v2743_v60 }
 0x3a8   : > { %v2696_v46 = vadd.f32 %v4355_v9, %v5766_v22  ;;  %v2687_v2 = vpop.f32.mrb[191].mxu1  ;;  %4397 = vmatmul.mubr.bf16.gmra.mrb[152].mxu0 %v2744_v26  ;;  %v2729_v16 = vmax.f32 %v2693_v35, 0.0  ;;  %v4753_v22 = vld [vmem:[%s5278_s29 + $0x8] sm:$0xff]  }
 0x3a9   : > { %v2688_v43 = vadd.f32 %v2687_v2, %v5758_v41  ;;  %v2727_v7 = vmax.f32 %v2685_v51, 0.0  ;;  %v4755_v41 = vld [vmem:[%s5278_s29 + $0x18] sm:$0xff]  }
 0x3aa   : > { %v2730_v25 = vmax.f32 %v2696_v46, 0.0 }
 0x3ab   : > { %v2728_v37 = vmax.f32 %v2688_v43, 0.0 }
 0x3ac   : > { %v2746_v14 = vpack.c.bf16 %v2730_v25, %v2729_v16 }
 0x3ad   : > { %v2745_v31 = vpack.c.bf16 %v2728_v37, %v2727_v7 }
 0x3af   : > { %4400 = vmatprep.mubr.bf16.mxu0 %v2745_v31 }
 0x3b0   : > { %4401 = vmatmul.mubr.bf16.gmra.mrb[156].mxu0 %v2746_v14 }
 0x3b1   : > { %4420 = vmatprep.mubr.bf16.mxu0 %v4752_v13 }
 0x3b8   : > { %4421 = vmatmul.mubr.bf16.vlgmr.msra.gmra.mrb[128].mxu0 %v4753_v22 }
 0x3b9   : > { %4424 = vmatprep.mubr.bf16.mxu0 %v4754_v40 }
 0x3c0   : > { %4425 = vmatmul.mubr.bf16.gmra.mrb[132].mxu0 %v4755_v41 }
 0x3c1   : > { %4428 = vmatprep.mubr.bf16.mxu0 %v4756_v38 }
 0x3c8   : > { %4429 = vmatmul.mubr.bf16.gmra.mrb[136].mxu0 %v4757_v39 }
 0x3c9   : > { %4432 = vmatprep.mubr.bf16.mxu0 %v4758_v4 }
 0x3d0   : > { %4433 = vmatmul.mubr.bf16.gmra.mrb[140].mxu0 %v4759_v20 }
 0x3d1   : > { %4436 = vmatprep.mubr.bf16.mxu0 %v4760_v17 }
 0x3d8   : > { %4437 = vmatmul.mubr.bf16.gmra.mrb[144].mxu0 %v4761_v29 }
 0x3d9   : > { %4440 = vmatprep.mubr.bf16.mxu0 %v4762_v30 }
 0x3e0   : > { %4441 = vmatmul.mubr.bf16.gmra.mrb[148].mxu0 %v4763_v58 }
 0x3e1   : > { %4444 = vmatprep.mubr.bf16.mxu0 %v4764_v36 }
 0x3e8   : > { %4445 = vmatmul.mubr.bf16.gmra.mrb[152].mxu0 %v4765_v15 }
 0x3e9   : > { %4448 = vmatprep.mubr.bf16.mxu0 %v4766_v1 }
 0x3f0   : > { %4449 = vmatmul.mubr.bf16.gmra.mrb[156].mxu0 %v4767_v28 }
 0x48b   : > { %v4422_v32 = vpop.f32.mrb[128].mxu0 }
 0x48c   : > { %v4452_v11 = vadd.f32 %v4422_v32, %v3675_v10  ;;  %v3212_v50 = vpop.f32.mrb[129].mxu0 }
 0x48d   : > { %v4454_v62 = vadd.f32 %v3675_v10, %v3212_v50  ;;  %v4423_v0 = vpop.f32.mrb[130].mxu0 }
 0x48e   : > { %v4453_v63 = vadd.f32 %v4452_v11, %v3684_v47  ;;  %v4457_v42 = vadd.f32 %v5819_v55, %v4423_v0  ;;  %v3215_v45 = vpop.f32.mrb[131].mxu0 }
 0x48f   : > { %v4455_v52 = vadd.f32 %v4454_v62, %v3684_v47  ;;  %v4459_v24 = vadd.f32 %v5819_v55, %v3215_v45 }
 0x490   : > { %v3373_v59 = vmax.f32 %v4453_v63, 0.0  ;;  %v3374_v56 = vmax.f32 %v4457_v42, 0.0 }
 0x491   : > { %v3371_v23 = vmax.f32 %v4455_v52, 0.0  ;;  %v3372_v44 = vmax.f32 %v4459_v24, 0.0 }
 0x492   : > { %3405 = vst [vmem:[%s5824_s16 + $0x10] sm:$0xff] %v3373_v59  ;;  %3406 = vst [vmem:[%s5824_s16 + $0x18] sm:$0xff] %v3374_v56 }
 0x493   : > { %3403 = vst [vmem:[%s5824_s16] sm:$0xff] %v3371_v23  ;;  %3404 = vst [vmem:[%s5824_s16 + $0x8] sm:$0xff] %v3372_v44  ;;  %v4426_v21 = vpop.f32.mrb[132].mxu0 }
 0x494   : > { %v4461_v61 = vadd.f32 %v5819_v55, %v4426_v21  ;;  %v3228_v19 = vpop.f32.mrb[133].mxu0 }
 0x495   : > { %v4463_v8 = vadd.f32 %v5819_v55, %v3228_v19  ;;  %v4427_v53 = vpop.f32.mrb[134].mxu0 }
 0x496   : > { %v3377_v5 = vmax.f32 %v4461_v61, 0.0  ;;  %v4465_v57 = vadd.f32 %v5819_v55, %v4427_v53  ;;  %v3231_v6 = vpop.f32.mrb[135].mxu0 }
 0x497   : > { %v3375_v3 = vmax.f32 %v4463_v8, 0.0  ;;  %v4467_v49 = vadd.f32 %v5819_v55, %v3231_v6 }
 0x498   : > { %3409 = vst [vmem:[%s5824_s16 + $0x30] sm:$0xff] %v3377_v5  ;;  %v3378_v33 = vmax.f32 %v4465_v57, 0.0 }
 0x499   : > { %3407 = vst [vmem:[%s5824_s16 + $0x20] sm:$0xff] %v3375_v3  ;;  %v3376_v34 = vmax.f32 %v4467_v49, 0.0 }
 0x49a   : > { %3410 = vst [vmem:[%s5824_s16 + $0x38] sm:$0xff] %v3378_v33 }
 0x49b   : > { %3408 = vst [vmem:[%s5824_s16 + $0x28] sm:$0xff] %v3376_v34  ;;  %v4430_v18 = vpop.f32.mrb[136].mxu0 }
 0x49c   : > { %v4469_v27 = vadd.f32 %v5819_v55, %v4430_v18  ;;  %v3244_v54 = vpop.f32.mrb[137].mxu0 }
 0x49d   : > { %v4471_v26 = vadd.f32 %v5819_v55, %v3244_v54  ;;  %v4431_v60 = vpop.f32.mrb[138].mxu0 }
 0x49e   : > { %v3381_v48 = vmax.f32 %v4469_v27, 0.0  ;;  %v4473_v35 = vadd.f32 %v5819_v55, %v4431_v60  ;;  %v3247_v12 = vpop.f32.mrb[139].mxu0 }
 0x49f   : > { %v3379_v51 = vmax.f32 %v4471_v26, 0.0  ;;  %v4475_v9 = vadd.f32 %v5819_v55, %v3247_v12 }
 0x4a0   : > { %3413 = vst [vmem:[%s5824_s16 + $0x50] sm:$0xff] %v3381_v48  ;;  %v3382_v46 = vmax.f32 %v4473_v35, 0.0 }
 0x4a1   : > { %3411 = vst [vmem:[%s5824_s16 + $0x40] sm:$0xff] %v3379_v51  ;;  %v3380_v2 = vmax.f32 %v4475_v9, 0.0 }
 0x4a2   : > { %3414 = vst [vmem:[%s5824_s16 + $0x58] sm:$0xff] %v3382_v46 }
 0x4a3   : > { %3412 = vst [vmem:[%s5824_s16 + $0x48] sm:$0xff] %v3380_v2  ;;  %v4434_v43 = vpop.f32.mrb[140].mxu0 }
 0x4a4   : > { %v4477_v16 = vadd.f32 %v5819_v55, %v4434_v43  ;;  %v3260_v25 = vpop.f32.mrb[141].mxu0 }
 0x4a5   : > { %v4479_v7 = vadd.f32 %v5819_v55, %v3260_v25  ;;  %v4435_v37 = vpop.f32.mrb[142].mxu0 }
 0x4a6   : > { %v3385_v14 = vmax.f32 %v4477_v16, 0.0  ;;  %v4481_v31 = vadd.f32 %v5819_v55, %v4435_v37  ;;  %v3263_v13 = vpop.f32.mrb[143].mxu0 }
 0x4a7   : > { %v3383_v22 = vmax.f32 %v4479_v7, 0.0  ;;  %v4483_v40 = vadd.f32 %v5819_v55, %v3263_v13 }
 0x4a8   : > { %3417 = vst [vmem:[%s5824_s16 + $0x70] sm:$0xff] %v3385_v14  ;;  %v3386_v41 = vmax.f32 %v4481_v31, 0.0 }
 0x4a9   : > { %3415 = vst [vmem:[%s5824_s16 + $0x60] sm:$0xff] %v3383_v22  ;;  %v3384_v38 = vmax.f32 %v4483_v40, 0.0 }
 0x4aa   : > { %3418 = vst [vmem:[%s5824_s16 + $0x78] sm:$0xff] %v3386_v41 }
 0x4ab   : > { %3416 = vst [vmem:[%s5824_s16 + $0x68] sm:$0xff] %v3384_v38  ;;  %v4438_v39 = vpop.f32.mrb[144].mxu0 }
 0x4ac   : > { %v4485_v4 = vadd.f32 %v5819_v55, %v4438_v39  ;;  %v3276_v20 = vpop.f32.mrb[145].mxu0 }
 0x4ad   : > { %v4487_v17 = vadd.f32 %v5819_v55, %v3276_v20  ;;  %v4439_v29 = vpop.f32.mrb[146].mxu0 }
 0x4ae   : > { %v3389_v30 = vmax.f32 %v4485_v4, 0.0  ;;  %v4489_v58 = vadd.f32 %v5819_v55, %v4439_v29  ;;  %v3279_v36 = vpop.f32.mrb[147].mxu0 }
 0x4af   : > { %v3387_v15 = vmax.f32 %v4487_v17, 0.0  ;;  %v4491_v1 = vadd.f32 %v5819_v55, %v3279_v36 }
 0x4b0   : > { %3421 = vst [vmem:[%s5824_s16 + $0x90] sm:$0xff] %v3389_v30  ;;  %v3390_v28 = vmax.f32 %v4489_v58, 0.0 }
 0x4b1   : > { %3419 = vst [vmem:[%s5824_s16 + $0x80] sm:$0xff] %v3387_v15  ;;  %v3388_v10 = vmax.f32 %v4491_v1, 0.0 }
 0x4b2   : > { %3422 = vst [vmem:[%s5824_s16 + $0x98] sm:$0xff] %v3390_v28 }
 0x4b3   : > { %3420 = vst [vmem:[%s5824_s16 + $0x88] sm:$0xff] %v3388_v10  ;;  %v4442_v47 = vpop.f32.mrb[148].mxu0 }
 0x4b4   : > { %v4493_v32 = vadd.f32 %v5819_v55, %v4442_v47  ;;  %v3292_v11 = vpop.f32.mrb[149].mxu0 }
 0x4b5   : > { %v4495_v50 = vadd.f32 %v5819_v55, %v3292_v11  ;;  %v4443_v62 = vpop.f32.mrb[150].mxu0 }
 0x4b6   : > { %v3393_v0 = vmax.f32 %v4493_v32, 0.0  ;;  %v4497_v63 = vadd.f32 %v5819_v55, %v4443_v62  ;;  %v3295_v42 = vpop.f32.mrb[151].mxu0 }
 0x4b7   : > { %v3391_v45 = vmax.f32 %v4495_v50, 0.0  ;;  %v4499_v52 = vadd.f32 %v5819_v55, %v3295_v42 }
 0x4b8   : > { %3425 = vst [vmem:[%s5824_s16 + $0xb0] sm:$0xff] %v3393_v0  ;;  %v3394_v24 = vmax.f32 %v4497_v63, 0.0 }
 0x4b9   : > { %3423 = vst [vmem:[%s5824_s16 + $0xa0] sm:$0xff] %v3391_v45  ;;  %v3392_v59 = vmax.f32 %v4499_v52, 0.0 }
 0x4ba   : > { %3426 = vst [vmem:[%s5824_s16 + $0xb8] sm:$0xff] %v3394_v24 }
 0x4bb   : > { %3424 = vst [vmem:[%s5824_s16 + $0xa8] sm:$0xff] %v3392_v59  ;;  %v4446_v56 = vpop.f32.mrb[152].mxu0 }
 0x4bc   : > { %v4501_v23 = vadd.f32 %v5819_v55, %v4446_v56  ;;  %v3308_v44 = vpop.f32.mrb[153].mxu0 }
 0x4bd   : > { %v4503_v21 = vadd.f32 %v5819_v55, %v3308_v44  ;;  %v4447_v61 = vpop.f32.mrb[154].mxu0 }
 0x4be   : > { %v3397_v19 = vmax.f32 %v4501_v23, 0.0  ;;  %v4505_v8 = vadd.f32 %v5819_v55, %v4447_v61  ;;  %v3311_v53 = vpop.f32.mrb[155].mxu0 }
 0x4bf   : > { %v3395_v5 = vmax.f32 %v4503_v21, 0.0  ;;  %v4507_v57 = vadd.f32 %v5819_v55, %v3311_v53 }
 0x4c0   : > { %3429 = vst [vmem:[%s5824_s16 + $0xd0] sm:$0xff] %v3397_v19  ;;  %v3398_v6 = vmax.f32 %v4505_v8, 0.0 }
 0x4c1   : > { %3427 = vst [vmem:[%s5824_s16 + $0xc0] sm:$0xff] %v3395_v5  ;;  %v3396_v3 = vmax.f32 %v4507_v57, 0.0 }
 0x4c2   : > { %3430 = vst [vmem:[%s5824_s16 + $0xd8] sm:$0xff] %v3398_v6 }
 0x4c3   : > { %3428 = vst [vmem:[%s5824_s16 + $0xc8] sm:$0xff] %v3396_v3  ;;  %v4450_v49 = vpop.f32.mrb[156].mxu0 }
 0x4c4   : > { %v4509_v33 = vadd.f32 %v5819_v55, %v4450_v49  ;;  %v3324_v34 = vpop.f32.mrb[157].mxu0 }
 0x4c5   : > { %v4511_v18 = vadd.f32 %v5819_v55, %v3324_v34  ;;  %v4451_v27 = vpop.f32.mrb[158].mxu0 }
 0x4c6   : > { %v3401_v54 = vmax.f32 %v4509_v33, 0.0  ;;  %v4513_v26 = vadd.f32 %v5819_v55, %v4451_v27  ;;  %v3327_v60 = vpop.f32.mrb[159].mxu0 }
 0x4c7   : > { %v3399_v48 = vmax.f32 %v4511_v18, 0.0  ;;  %v4515_v35 = vadd.f32 %v5819_v55, %v3327_v60 }
 0x4c8   : > { %3433 = vst [vmem:[%s5824_s16 + $0xf0] sm:$0xff] %v3401_v54  ;;  %v3402_v12 = vmax.f32 %v4513_v26, 0.0 }
 0x4c9   : > { %3431 = vst [vmem:[%s5824_s16 + $0xe0] sm:$0xff] %v3399_v48  ;;  %v3400_v51 = vmax.f32 %v4515_v35, 0.0 }
 0x4ca   : > { %3434 = vst [vmem:[%s5824_s16 + $0xf8] sm:$0xff] %v3402_v12 }
 0x4cb   : > { %3432 = vst [vmem:[%s5824_s16 + $0xe8] sm:$0xff] %v3400_v51 }
 0x4cc   : > { %4924 = shalt.err (!%p4921_p13)
}
 0x4cd   : > { %s4925_s9 = scalar_lea.hbm %s5888_s17, 4096  ;;  %s4929_s16 = scalar_lea.hbm %s5970_s15, 8192 }
 0x4ce   : > { %p4926_p9 = scmp.ne.s32.totalorder %s5888_s17, %s4925_s9  ;;  %p4930_p4 = scmp.lt.u32.totalorder %s5888_s17, %s5970_s15 }
 0x4cf   : > { %p4931_p8 = scmp.lt.u32.totalorder %s4929_s16, %s4925_s9  ;;  %p4933_p3 = scmp.lt.u32.totalorder %s4925_s9, %s5888_s17 }
 0x4d0   : > { %p4927_p0 = pnand %p4926_p9, %p5219_p10 }
 0x4d1   : > { %p4932_p6 = por %p4931_p8, %p4930_p4 }
 0x4d2   : > { %p4928_p11 = pneg %p4927_p0 }
 0x4d3   : > { %p4934_p5 = por %p4933_p3, %p4932_p6 }
 0x4d5   : > { %p4935_p7 = pnand %p4934_p5, %p4928_p11 }
 0x4d7   : > { %4938 = shalt.err (!%p4935_p7)
}
 0x4d8   : > { %s4996_s29 = smov 128   ;;  %s4997_s25 = smov 8  }
 0x4d9   : > { %4566 = dma.vmem_to_hbm [thread:$0]  (%p5219_p10), %s5890_s21, 4096, %s5888_s17, %s3436_s13, %s4996_s29, %s4996_s29, %s4997_s25  }
 0x4da PF: > { %s5971_s26 = sld [smem:[#allocation17_spill]]  ;;  %s5972_s19 = sld [smem:[#allocation18_spill]] }
 0x4db   : > { %p5974_p1 = scmp.ge.s32.totalorder %s4985_s12, 2 }
 0x4e0   : > { %s3464_s22 = sand.u32 1, %s5971_s26   ;;  %p5973_p12 = scmp.ne.s32.totalorder %s5972_s19, 0 }
 0x4e1   : > { %s3465_s9 = scalar_lea.sflag [#allocation5], %s3464_s22 }
 0x4e2   : > { %p4586_p2 = pnand %p5974_p1, %p5973_p12 }
 0x4e4   : > { %4968 = dma.done.wait (!%p4586_p2), %s3465_s9, 4096  }
 0x4e5   : > { %4970 = vsyncadd (!%p4586_p2), %s3465_s9, 4294963200  ;;  %p24_p13 = scmp.ge.s32.totalorder %s5209_s14, 4   ;;  %s5975_s30 = smov %s4977_s10 }
 0x4e6   : > { %s5976_s10 = smov %s4981_s11  ;;  %s5977_s11 = smov %s5225_s28 }
 0x4e7   : > { %s5978_s12 = smov %s5209_s14  ;;  %26 = sbr.rel (!%p24_p13) target bundleno = 9 (0x9), region = 120 }
 0x4ee   :  { %3470 = vsyncpa [#allocation4], 1 }
 0x4ef   :  { %3472 = vsyncpa [#allocation4 + $0x1], 1 }
 0x4f0   :  { %3473 = vsyncpa [#allocation7], 1 }
 0x4f1   :  { %3474 = vsyncpa [#allocation10], 1 }
 0x4f2   :  { %3475 = vsyncpa [#allocation5], 1 }
 0x4f3   :  { %3477 = vsyncpa [#allocation5 + $0x1], 1 }

</bundles_post_ra>
